<compile_context>
chip_gen: v5e
topology: v5e:2x2
jax: 0.10.0
libtpu: 0.0.40
codegen_flags: <defaults>
</compile_context>

<pallas_src>
import functools

import jax
import jax.numpy as jnp
from jax import lax
from jax.experimental import pallas as pl
from jax.experimental.pallas import tpu as pltpu


# ----------------------------- Pallas kernel ------------------------------

def _tsa_kernel(x_ref, wih_ref, whh_ref, bias_ref, out_ref, gx_ref, hs_ref):
    """Fused TSA forward for the whole batch (time-major).

    x_ref:    [T, B, I]        time-major input sequence
    wih_ref:  [I, 4*G3p]       packed input weights   (gate-major: i|f|g|o, lane-padded groups)
    whh_ref:  [G3p, 4*G3p]     packed recurrent weights (block-diag per lstm, lane-padded)
    bias_ref: [1, 4*G3p]       packed b_ih + b_hh (lane-padded)
    out_ref:  [B, T*H]         lane-dense output slab; wrapper reshapes to [B, T, H]
    gx_ref:   VMEM [T, B, 4*G3p]  scratch: per-step input projections
    hs_ref:   VMEM [T, B, G3p]    scratch: per-step packed hidden state [h1|h2|h3|pad]
    """
    T, B, I = x_ref.shape
    G3p = hs_ref.shape[-1]                       # padded 3H (128-lane aligned)
    H = out_ref.shape[-1] // T                   # true hidden size

    # (1) One big input-projection matmul for all (t, b) rows and all 3 LSTMs + biases.
    x2 = x_ref[...].reshape(T * B, I)
    gx = jnp.dot(x2, wih_ref[...],
                 preferred_element_type=jnp.float32) + bias_ref[...]   # [T*B, 4*G3p]
    gx_ref[...] = gx.reshape(T, B, 4 * G3p)

    # (2) Serial recurrence: only (h, c) update + one h-row store per step.
    def step(t, carry):
        h, c = carry                                                    # [B, G3p] each
        gates = gx_ref[t] + jnp.dot(h, whh_ref[...],
                                    preferred_element_type=jnp.float32)  # [B, 4*G3p]
        i_g = jax.nn.sigmoid(gates[:, 0 * G3p:1 * G3p])
        f_g = jax.nn.sigmoid(gates[:, 1 * G3p:2 * G3p])
        g_g = jnp.tanh(gates[:, 2 * G3p:3 * G3p])
        o_g = jax.nn.sigmoid(gates[:, 3 * G3p:4 * G3p])
        c = f_g * c + i_g * g_g
        h = o_g * jnp.tanh(c)
        hs_ref[t] = h
        return (h, c)

    h0 = jnp.zeros((B, G3p), jnp.float32)
    c0 = jnp.zeros((B, G3p), jnp.float32)
    lax.fori_loop(0, T, step, (h0, c0), unroll=True)

    # (3) Attention hoisted out of the loop: batched over the whole [T, B, H] block.
    hs = hs_ref[...]                             # [T, B, G3p]
    q = hs[:, :, 0 * H:1 * H]
    k = hs[:, :, 1 * H:2 * H]
    v = hs[:, :, 2 * H:3 * H]
    s = q * k
    m = jnp.max(s, axis=-1, keepdims=True)
    e = jnp.exp(s - m)
    a = e / jnp.sum(e, axis=-1, keepdims=True)
    b_res = v * a                                # [T, B, H]

    # (4) Single lane-dense store: out[b, t*H + h] = b_res[t, b, h].
    out_ref[...] = jnp.concatenate([b_res[t] for t in range(T)], axis=-1)


# ----------------------------- wrapper ------------------------------

def tsa_forward(x, packed, hidden):
    """x: [B, T, in_feature] f32. packed: dict from pack_tsa_params. Returns [B, T, hidden]."""
    B, T, I = x.shape
    H = hidden
    G3p, G12p = packed["whh"].shape

    x_tm = jnp.transpose(x, (1, 0, 2))           # time-major [T, B, I] (hoisted XLA transpose)

    out_flat = pl.pallas_call(
        _tsa_kernel,
        out_shape=jax.ShapeDtypeStruct((B, T * H), jnp.float32),
        in_specs=[
            pl.BlockSpec(memory_space=pltpu.MemorySpace.VMEM),   # x (time-major)
            pl.BlockSpec(memory_space=pltpu.MemorySpace.VMEM),   # wih
            pl.BlockSpec(memory_space=pltpu.MemorySpace.VMEM),   # whh
            pl.BlockSpec(memory_space=pltpu.MemorySpace.VMEM),   # bias
        ],
        out_specs=pl.BlockSpec(memory_space=pltpu.MemorySpace.VMEM),
        scratch_shapes=[
            pltpu.VMEM((T, B, G12p), jnp.float32),               # gx scratch
            pltpu.VMEM((T, B, G3p), jnp.float32),                # hidden-state scratch
        ],
    )(x_tm, packed["wih"], packed["whh"], packed["bias"])

    return out_flat.reshape(B, T, H)


# ----------------------------- parameter prep (hoisted, one-time) ------------------------------

def init_tsa_params(key, in_feature, hidden):
    """PyTorch-style LSTM params for the 3 LSTMs (uniform(-1/sqrt(H), 1/sqrt(H)))."""
    s = hidden ** -0.5
    ks = jax.random.split(key, 12)

    def lstm(k0, k1, k2, k3):
        return {
            "w_ih": jax.random.uniform(k0, (4 * hidden, in_feature), jnp.float32, -s, s),
            "w_hh": jax.random.uniform(k1, (4 * hidden, hidden), jnp.float32, -s, s),
            "b_ih": jax.random.uniform(k2, (4 * hidden,), jnp.float32, -s, s),
            "b_hh": jax.random.uniform(k3, (4 * hidden,), jnp.float32, -s, s),
        }

    return {"lstm1": lstm(*ks[0:4]), "lstm2": lstm(*ks[4:8]), "lstm3": lstm(*ks[8:12])}


def pack_tsa_params(params, hidden):
    """Pack the 3 LSTMs into one gate-major, 128-lane-padded weight set for the fused kernel.

    Layout per gate group (width G3p = pad128(3H)): [lstm1 | lstm2 | lstm3 | zeros].
    Gate order: i | f | g | o  (PyTorch LSTM order).
    """
    H = hidden
    G3 = 3 * H
    G3p = max(128, ((G3 + 127) // 128) * 128)    # lane-align each gate group
    pad = G3p - G3
    lstms = [params["lstm1"], params["lstm2"], params["lstm3"]]

    wih_g, whh_g, bias_g = [], [], []
    for gi in range(4):
        wih = jnp.concatenate(
            [p["w_ih"][gi * H:(gi + 1) * H, :].T for p in lstms], axis=1)        # [I, 3H]
        whh = jax.scipy.linalg.block_diag(
            *[p["w_hh"][gi * H:(gi + 1) * H, :].T for p in lstms])               # [3H, 3H]
        b = jnp.concatenate(
            [p["b_ih"][gi * H:(gi + 1) * H] + p["b_hh"][gi * H:(gi + 1) * H]
             for p in lstms])                                                    # [3H]
        wih_g.append(jnp.pad(wih, ((0, 0), (0, pad))))                           # [I, G3p]
        whh_g.append(jnp.pad(whh, ((0, pad), (0, pad))))                         # [G3p, G3p]
        bias_g.append(jnp.pad(b, (0, pad)))                                      # [G3p]

    return {
        "wih": jnp.concatenate(wih_g, axis=1),            # [I, 4*G3p]
        "whh": jnp.concatenate(whh_g, axis=1),            # [G3p, 4*G3p]
        "bias": jnp.concatenate(bias_g).reshape(1, -1),   # [1, 4*G3p]
    }


# ----------------------------- pure-JAX reference (self-check) ------------------------------

def _lstm_ref(x, p, H):
    hi = lax.Precision.HIGHEST

    def step(carry, x_t):
        h, c = carry
        gates = (jnp.dot(x_t, p["w_ih"].T, precision=hi) + p["b_ih"]
                 + jnp.dot(h, p["w_hh"].T, precision=hi) + p["b_hh"])
        i, f, g, o = jnp.split(gates, 4, axis=-1)
        c = jax.nn.sigmoid(f) * c + jax.nn.sigmoid(i) * jnp.tanh(g)
        h = jax.nn.sigmoid(o) * jnp.tanh(c)
        return (h, c), h

    B = x.shape[0]
    init = (jnp.zeros((B, H), jnp.float32), jnp.zeros((B, H), jnp.float32))
    _, hs = lax.scan(step, init, jnp.swapaxes(x, 0, 1))
    return jnp.swapaxes(hs, 0, 1)                         # [B, T, H]


def tsa_ref(x, params, H):
    q = _lstm_ref(x, params["lstm1"], H)
    k = _lstm_ref(x, params["lstm2"], H)
    v = _lstm_ref(x, params["lstm3"], H)
    a = jax.nn.softmax(q * k, axis=2)
    return v * a


# ----------------------------- main ------------------------------

if __name__ == "__main__":
    B, T, in_feature, out_feature = 2, 8, 16, 32

    key = jax.random.PRNGKey(0)
    kx, kp = jax.random.split(key)
    x = jax.random.normal(kx, (B, T, in_feature), jnp.float32)
    params = init_tsa_params(kp, in_feature, out_feature)
    packed = pack_tsa_params(params, out_feature)

    forward = jax.jit(functools.partial(tsa_forward, packed=packed, hidden=out_feature))
    out = forward(x)
    jax.block_until_ready(out)

    assert out.shape == (B, T, out_feature), out.shape

    ref = tsa_ref(x, params, out_feature)
    if not bool(jnp.allclose(out, ref, atol=2e-3, rtol=2e-3)):
        raise AssertionError(
            f"Pallas output mismatch vs JAX reference, max |err| = "
            f"{float(jnp.max(jnp.abs(out - ref)))}")

    print("KERNEL_OK")
</pallas_src>

<mosaic_0001>
module attributes {stable_mosaic.version = 11 : i64} {
  func.func @_tsa_kernel(%arg0: memref<8x2x16xf32, #tpu.memory_space<vmem>>, %arg1: memref<16x512xf32, #tpu.memory_space<vmem>>, %arg2: memref<128x512xf32, #tpu.memory_space<vmem>>, %arg3: memref<1x512xf32, #tpu.memory_space<vmem>>, %arg4: memref<2x256xf32, #tpu.memory_space<vmem>>, %arg5: memref<8x2x512xf32, #tpu.memory_space<vmem>>, %arg6: memref<8x2x128xf32, #tpu.memory_space<vmem>>) attributes {dimension_semantics = [], scalar_prefetch = 0 : i64, scratch_operands = 2 : i64, tpu.core_type = #tpu.core_type<tc>} {
    %c0 = arith.constant 0 : index
    %c0_0 = arith.constant 0 : index
    %c0_1 = arith.constant 0 : index
    %0 = vector.load %arg0[%c0, %c0_0, %c0_1] : memref<8x2x16xf32, #tpu.memory_space<vmem>>, vector<8x2x16xf32>
    %1 = vector.shape_cast %0 : vector<8x2x16xf32> to vector<16x16xf32>
    %c0_2 = arith.constant 0 : index
    %c0_3 = arith.constant 0 : index
    %2 = vector.load %arg1[%c0_2, %c0_3] : memref<16x512xf32, #tpu.memory_space<vmem>>, vector<16x512xf32>
    %cst = arith.constant dense<0.000000e+00> : vector<16x512xf32>
    %3 = tpu.matmul %1, %2, %cst {dimension_numbers = #tpu.dot_dimension_numbers<[1], [0], [0], [1], [0, 0, 1, 1], [], []>} : vector<16x16xf32>, vector<16x512xf32>, vector<16x512xf32> -> vector<16x512xf32>
    %c0_4 = arith.constant 0 : index
    %c0_5 = arith.constant 0 : index
    %4 = vector.load %arg3[%c0_4, %c0_5] : memref<1x512xf32, #tpu.memory_space<vmem>>, vector<1x512xf32>
    %5 = vector.broadcast %4 : vector<1x512xf32> to vector<16x512xf32>
    %6 = arith.addf %3, %5 : vector<16x512xf32>
    %7 = vector.shape_cast %6 : vector<16x512xf32> to vector<8x2x512xf32>
    %c0_6 = arith.constant 0 : index
    %c0_7 = arith.constant 0 : index
    %c0_8 = arith.constant 0 : index
    %8 = vector.load %arg5[%c0_6, %c0_7, %c0_8] : memref<8x2x512xf32, #tpu.memory_space<vmem>>, vector<8x2x512xf32>
    tpu.vector_store %arg5[%c0_6, %c0_7, %c0_8], %7 {strides = array<i32>} : memref<8x2x512xf32, #tpu.memory_space<vmem>>, vector<8x2x512xf32>,
    %cst_9 = arith.constant 0.000000e+00 : f32
    %9 = vector.broadcast %cst_9 : f32 to vector<2x128xf32>
    %cst_10 = arith.constant 0.000000e+00 : f32
    %10 = vector.broadcast %cst_10 : f32 to vector<2x128xf32>
    %c0_i32 = arith.constant 0 : i32
    %11 = arith.index_cast %c0_i32 : i32 to index
    %c0_11 = arith.constant 0 : index
    %c0_12 = arith.constant 0 : index
    %12 = vector.load %arg5[%11, %c0_11, %c0_12] : memref<8x2x512xf32, #tpu.memory_space<vmem>>, vector<1x2x512xf32>
    %13 = vector.shape_cast %12 : vector<1x2x512xf32> to vector<2x512xf32>
    %c0_13 = arith.constant 0 : index
    %c0_14 = arith.constant 0 : index
    %14 = vector.load %arg2[%c0_13, %c0_14] : memref<128x512xf32, #tpu.memory_space<vmem>>, vector<128x512xf32>
    %cst_15 = arith.constant dense<0.000000e+00> : vector<2x512xf32>
    %15 = tpu.matmul %9, %14, %cst_15 {dimension_numbers = #tpu.dot_dimension_numbers<[1], [0], [0], [1], [0, 0, 1, 1], [], []>} : vector<2x128xf32>, vector<128x512xf32>, vector<2x512xf32> -> vector<2x512xf32>
    %16 = arith.addf %13, %15 : vector<2x512xf32>
    %17 = vector.extract_strided_slice %16 {offsets = [0, 0], sizes = [2, 128], strides = [1, 1]} : vector<2x512xf32> to vector<2x128xf32>
    %18 = arith.negf %17 : vector<2x128xf32>
    %19 = math.exp %18 : vector<2x128xf32>
    %cst_16 = arith.constant 1.000000e+00 : f32
    %20 = vector.broadcast %cst_16 : f32 to vector<2x128xf32>
    %21 = arith.addf %20, %19 : vector<2x128xf32>
    %22 = arith.divf %20, %21 : vector<2x128xf32>
    %23 = vector.extract_strided_slice %16 {offsets = [0, 128], sizes = [2, 128], strides = [1, 1]} : vector<2x512xf32> to vector<2x128xf32>
    %24 = arith.negf %23 : vector<2x128xf32>
    %25 = math.exp %24 : vector<2x128xf32>
    %cst_17 = arith.constant 1.000000e+00 : f32
    %26 = vector.broadcast %cst_17 : f32 to vector<2x128xf32>
    %27 = arith.addf %26, %25 : vector<2x128xf32>
    %28 = arith.divf %26, %27 : vector<2x128xf32>
    %29 = vector.extract_strided_slice %16 {offsets = [0, 256], sizes = [2, 128], strides = [1, 1]} : vector<2x512xf32> to vector<2x128xf32>
    %30 = math.tanh %29 : vector<2x128xf32>
    %31 = vector.extract_strided_slice %16 {offsets = [0, 384], sizes = [2, 128], strides = [1, 1]} : vector<2x512xf32> to vector<2x128xf32>
    %32 = arith.negf %31 : vector<2x128xf32>
    %33 = math.exp %32 : vector<2x128xf32>
    %cst_18 = arith.constant 1.000000e+00 : f32
    %34 = vector.broadcast %cst_18 : f32 to vector<2x128xf32>
    %35 = arith.addf %34, %33 : vector<2x128xf32>
    %36 = arith.divf %34, %35 : vector<2x128xf32>
    %37 = arith.mulf %28, %10 : vector<2x128xf32>
    %38 = arith.mulf %22, %30 : vector<2x128xf32>
    %39 = arith.addf %37, %38 : vector<2x128xf32>
    %40 = math.tanh %39 : vector<2x128xf32>
    %41 = arith.mulf %36, %40 : vector<2x128xf32>
    %42 = arith.index_cast %c0_i32 : i32 to index
    %c0_19 = arith.constant 0 : index
    %c0_20 = arith.constant 0 : index
    %43 = vector.load %arg6[%42, %c0_19, %c0_20] : memref<8x2x128xf32, #tpu.memory_space<vmem>>, vector<1x2x128xf32>
    %44 = vector.shape_cast %43 : vector<1x2x128xf32> to vector<2x128xf32>
    %45 = vector.shape_cast %41 : vector<2x128xf32> to vector<1x2x128xf32>
    tpu.vector_store %arg6[%42, %c0_19, %c0_20], %45 {strides = array<i32>} : memref<8x2x128xf32, #tpu.memory_space<vmem>>, vector<1x2x128xf32>,
    %c1_i32 = arith.constant 1 : i32
    %46 = arith.index_cast %c1_i32 : i32 to index
    %c0_21 = arith.constant 0 : index
    %c0_22 = arith.constant 0 : index
    %47 = vector.load %arg5[%46, %c0_21, %c0_22] : memref<8x2x512xf32, #tpu.memory_space<vmem>>, vector<1x2x512xf32>
    %48 = vector.shape_cast %47 : vector<1x2x512xf32> to vector<2x512xf32>
    %c0_23 = arith.constant 0 : index
    %c0_24 = arith.constant 0 : index
    %49 = vector.load %arg2[%c0_23, %c0_24] : memref<128x512xf32, #tpu.memory_space<vmem>>, vector<128x512xf32>
    %cst_25 = arith.constant dense<0.000000e+00> : vector<2x512xf32>
    %50 = tpu.matmul %41, %49, %cst_25 {dimension_numbers = #tpu.dot_dimension_numbers<[1], [0], [0], [1], [0, 0, 1, 1], [], []>} : vector<2x128xf32>, vector<128x512xf32>, vector<2x512xf32> -> vector<2x512xf32>
    %51 = arith.addf %48, %50 : vector<2x512xf32>
    %52 = vector.extract_strided_slice %51 {offsets = [0, 0], sizes = [2, 128], strides = [1, 1]} : vector<2x512xf32> to vector<2x128xf32>
    %53 = arith.negf %52 : vector<2x128xf32>
    %54 = math.exp %53 : vector<2x128xf32>
    %cst_26 = arith.constant 1.000000e+00 : f32
    %55 = vector.broadcast %cst_26 : f32 to vector<2x128xf32>
    %56 = arith.addf %55, %54 : vector<2x128xf32>
    %57 = arith.divf %55, %56 : vector<2x128xf32>
    %58 = vector.extract_strided_slice %51 {offsets = [0, 128], sizes = [2, 128], strides = [1, 1]} : vector<2x512xf32> to vector<2x128xf32>
    %59 = arith.negf %58 : vector<2x128xf32>
    %60 = math.exp %59 : vector<2x128xf32>
    %cst_27 = arith.constant 1.000000e+00 : f32
    %61 = vector.broadcast %cst_27 : f32 to vector<2x128xf32>
    %62 = arith.addf %61, %60 : vector<2x128xf32>
    %63 = arith.divf %61, %62 : vector<2x128xf32>
    %64 = vector.extract_strided_slice %51 {offsets = [0, 256], sizes = [2, 128], strides = [1, 1]} : vector<2x512xf32> to vector<2x128xf32>
    %65 = math.tanh %64 : vector<2x128xf32>
    %66 = vector.extract_strided_slice %51 {offsets = [0, 384], sizes = [2, 128], strides = [1, 1]} : vector<2x512xf32> to vector<2x128xf32>
    %67 = arith.negf %66 : vector<2x128xf32>
    %68 = math.exp %67 : vector<2x128xf32>
    %cst_28 = arith.constant 1.000000e+00 : f32
    %69 = vector.broadcast %cst_28 : f32 to vector<2x128xf32>
    %70 = arith.addf %69, %68 : vector<2x128xf32>
    %71 = arith.divf %69, %70 : vector<2x128xf32>
    %72 = arith.mulf %63, %39 : vector<2x128xf32>
    %73 = arith.mulf %57, %65 : vector<2x128xf32>
    %74 = arith.addf %72, %73 : vector<2x128xf32>
    %75 = math.tanh %74 : vector<2x128xf32>
    %76 = arith.mulf %71, %75 : vector<2x128xf32>
    %77 = arith.index_cast %c1_i32 : i32 to index
    %c0_29 = arith.constant 0 : index
    %c0_30 = arith.constant 0 : index
    %78 = vector.load %arg6[%77, %c0_29, %c0_30] : memref<8x2x128xf32, #tpu.memory_space<vmem>>, vector<1x2x128xf32>
    %79 = vector.shape_cast %78 : vector<1x2x128xf32> to vector<2x128xf32>
    %80 = vector.shape_cast %76 : vector<2x128xf32> to vector<1x2x128xf32>
    tpu.vector_store %arg6[%77, %c0_29, %c0_30], %80 {strides = array<i32>} : memref<8x2x128xf32, #tpu.memory_space<vmem>>, vector<1x2x128xf32>,
    %c2_i32 = arith.constant 2 : i32
    %81 = arith.index_cast %c2_i32 : i32 to index
    %c0_31 = arith.constant 0 : index
    %c0_32 = arith.constant 0 : index
    %82 = vector.load %arg5[%81, %c0_31, %c0_32] : memref<8x2x512xf32, #tpu.memory_space<vmem>>, vector<1x2x512xf32>
    %83 = vector.shape_cast %82 : vector<1x2x512xf32> to vector<2x512xf32>
    %c0_33 = arith.constant 0 : index
    %c0_34 = arith.constant 0 : index
    %84 = vector.load %arg2[%c0_33, %c0_34] : memref<128x512xf32, #tpu.memory_space<vmem>>, vector<128x512xf32>
    %cst_35 = arith.constant dense<0.000000e+00> : vector<2x512xf32>
    %85 = tpu.matmul %76, %84, %cst_35 {dimension_numbers = #tpu.dot_dimension_numbers<[1], [0], [0], [1], [0, 0, 1, 1], [], []>} : vector<2x128xf32>, vector<128x512xf32>, vector<2x512xf32> -> vector<2x512xf32>
    %86 = arith.addf %83, %85 : vector<2x512xf32>
    %87 = vector.extract_strided_slice %86 {offsets = [0, 0], sizes = [2, 128], strides = [1, 1]} : vector<2x512xf32> to vector<2x128xf32>
    %88 = arith.negf %87 : vector<2x128xf32>
    %89 = math.exp %88 : vector<2x128xf32>
    %cst_36 = arith.constant 1.000000e+00 : f32
    %90 = vector.broadcast %cst_36 : f32 to vector<2x128xf32>
    %91 = arith.addf %90, %89 : vector<2x128xf32>
    %92 = arith.divf %90, %91 : vector<2x128xf32>
    %93 = vector.extract_strided_slice %86 {offsets = [0, 128], sizes = [2, 128], strides = [1, 1]} : vector<2x512xf32> to vector<2x128xf32>
    %94 = arith.negf %93 : vector<2x128xf32>
    %95 = math.exp %94 : vector<2x128xf32>
    %cst_37 = arith.constant 1.000000e+00 : f32
    %96 = vector.broadcast %cst_37 : f32 to vector<2x128xf32>
    %97 = arith.addf %96, %95 : vector<2x128xf32>
    %98 = arith.divf %96, %97 : vector<2x128xf32>
    %99 = vector.extract_strided_slice %86 {offsets = [0, 256], sizes = [2, 128], strides = [1, 1]} : vector<2x512xf32> to vector<2x128xf32>
    %100 = math.tanh %99 : vector<2x128xf32>
    %101 = vector.extract_strided_slice %86 {offsets = [0, 384], sizes = [2, 128], strides = [1, 1]} : vector<2x512xf32> to vector<2x128xf32>
    %102 = arith.negf %101 : vector<2x128xf32>
    %103 = math.exp %102 : vector<2x128xf32>
    %cst_38 = arith.constant 1.000000e+00 : f32
    %104 = vector.broadcast %cst_38 : f32 to vector<2x128xf32>
    %105 = arith.addf %104, %103 : vector<2x128xf32>
    %106 = arith.divf %104, %105 : vector<2x128xf32>
    %107 = arith.mulf %98, %74 : vector<2x128xf32>
    %108 = arith.mulf %92, %100 : vector<2x128xf32>
    %109 = arith.addf %107, %108 : vector<2x128xf32>
    %110 = math.tanh %109 : vector<2x128xf32>
    %111 = arith.mulf %106, %110 : vector<2x128xf32>
    %112 = arith.index_cast %c2_i32 : i32 to index
    %c0_39 = arith.constant 0 : index
    %c0_40 = arith.constant 0 : index
    %113 = vector.load %arg6[%112, %c0_39, %c0_40] : memref<8x2x128xf32, #tpu.memory_space<vmem>>, vector<1x2x128xf32>
    %114 = vector.shape_cast %113 : vector<1x2x128xf32> to vector<2x128xf32>
    %115 = vector.shape_cast %111 : vector<2x128xf32> to vector<1x2x128xf32>
    tpu.vector_store %arg6[%112, %c0_39, %c0_40], %115 {strides = array<i32>} : memref<8x2x128xf32, #tpu.memory_space<vmem>>, vector<1x2x128xf32>,
    %c3_i32 = arith.constant 3 : i32
    %116 = arith.index_cast %c3_i32 : i32 to index
    %c0_41 = arith.constant 0 : index
    %c0_42 = arith.constant 0 : index
    %117 = vector.load %arg5[%116, %c0_41, %c0_42] : memref<8x2x512xf32, #tpu.memory_space<vmem>>, vector<1x2x512xf32>
    %118 = vector.shape_cast %117 : vector<1x2x512xf32> to vector<2x512xf32>
    %c0_43 = arith.constant 0 : index
    %c0_44 = arith.constant 0 : index
    %119 = vector.load %arg2[%c0_43, %c0_44] : memref<128x512xf32, #tpu.memory_space<vmem>>, vector<128x512xf32>
    %cst_45 = arith.constant dense<0.000000e+00> : vector<2x512xf32>
    %120 = tpu.matmul %111, %119, %cst_45 {dimension_numbers = #tpu.dot_dimension_numbers<[1], [0], [0], [1], [0, 0, 1, 1], [], []>} : vector<2x128xf32>, vector<128x512xf32>, vector<2x512xf32> -> vector<2x512xf32>
    %121 = arith.addf %118, %120 : vector<2x512xf32>
    %122 = vector.extract_strided_slice %121 {offsets = [0, 0], sizes = [2, 128], strides = [1, 1]} : vector<2x512xf32> to vector<2x128xf32>
    %123 = arith.negf %122 : vector<2x128xf32>
    %124 = math.exp %123 : vector<2x128xf32>
    %cst_46 = arith.constant 1.000000e+00 : f32
    %125 = vector.broadcast %cst_46 : f32 to vector<2x128xf32>
    %126 = arith.addf %125, %124 : vector<2x128xf32>
    %127 = arith.divf %125, %126 : vector<2x128xf32>
    %128 = vector.extract_strided_slice %121 {offsets = [0, 128], sizes = [2, 128], strides = [1, 1]} : vector<2x512xf32> to vector<2x128xf32>
    %129 = arith.negf %128 : vector<2x128xf32>
    %130 = math.exp %129 : vector<2x128xf32>
    %cst_47 = arith.constant 1.000000e+00 : f32
    %131 = vector.broadcast %cst_47 : f32 to vector<2x128xf32>
    %132 = arith.addf %131, %130 : vector<2x128xf32>
    %133 = arith.divf %131, %132 : vector<2x128xf32>
    %134 = vector.extract_strided_slice %121 {offsets = [0, 256], sizes = [2, 128], strides = [1, 1]} : vector<2x512xf32> to vector<2x128xf32>
    %135 = math.tanh %134 : vector<2x128xf32>
    %136 = vector.extract_strided_slice %121 {offsets = [0, 384], sizes = [2, 128], strides = [1, 1]} : vector<2x512xf32> to vector<2x128xf32>
    %137 = arith.negf %136 : vector<2x128xf32>
    %138 = math.exp %137 : vector<2x128xf32>
    %cst_48 = arith.constant 1.000000e+00 : f32
    %139 = vector.broadcast %cst_48 : f32 to vector<2x128xf32>
    %140 = arith.addf %139, %138 : vector<2x128xf32>
    %141 = arith.divf %139, %140 : vector<2x128xf32>
    %142 = arith.mulf %133, %109 : vector<2x128xf32>
    %143 = arith.mulf %127, %135 : vector<2x128xf32>
    %144 = arith.addf %142, %143 : vector<2x128xf32>
    %145 = math.tanh %144 : vector<2x128xf32>
    %146 = arith.mulf %141, %145 : vector<2x128xf32>
    %147 = arith.index_cast %c3_i32 : i32 to index
    %c0_49 = arith.constant 0 : index
    %c0_50 = arith.constant 0 : index
    %148 = vector.load %arg6[%147, %c0_49, %c0_50] : memref<8x2x128xf32, #tpu.memory_space<vmem>>, vector<1x2x128xf32>
    %149 = vector.shape_cast %148 : vector<1x2x128xf32> to vector<2x128xf32>
    %150 = vector.shape_cast %146 : vector<2x128xf32> to vector<1x2x128xf32>
    tpu.vector_store %arg6[%147, %c0_49, %c0_50], %150 {strides = array<i32>} : memref<8x2x128xf32, #tpu.memory_space<vmem>>, vector<1x2x128xf32>,
    %c4_i32 = arith.constant 4 : i32
    %151 = arith.index_cast %c4_i32 : i32 to index
    %c0_51 = arith.constant 0 : index
    %c0_52 = arith.constant 0 : index
    %152 = vector.load %arg5[%151, %c0_51, %c0_52] : memref<8x2x512xf32, #tpu.memory_space<vmem>>, vector<1x2x512xf32>
    %153 = vector.shape_cast %152 : vector<1x2x512xf32> to vector<2x512xf32>
    %c0_53 = arith.constant 0 : index
    %c0_54 = arith.constant 0 : index
    %154 = vector.load %arg2[%c0_53, %c0_54] : memref<128x512xf32, #tpu.memory_space<vmem>>, vector<128x512xf32>
    %cst_55 = arith.constant dense<0.000000e+00> : vector<2x512xf32>
    %155 = tpu.matmul %146, %154, %cst_55 {dimension_numbers = #tpu.dot_dimension_numbers<[1], [0], [0], [1], [0, 0, 1, 1], [], []>} : vector<2x128xf32>, vector<128x512xf32>, vector<2x512xf32> -> vector<2x512xf32>
    %156 = arith.addf %153, %155 : vector<2x512xf32>
    %157 = vector.extract_strided_slice %156 {offsets = [0, 0], sizes = [2, 128], strides = [1, 1]} : vector<2x512xf32> to vector<2x128xf32>
    %158 = arith.negf %157 : vector<2x128xf32>
    %159 = math.exp %158 : vector<2x128xf32>
    %cst_56 = arith.constant 1.000000e+00 : f32
    %160 = vector.broadcast %cst_56 : f32 to vector<2x128xf32>
    %161 = arith.addf %160, %159 : vector<2x128xf32>
    %162 = arith.divf %160, %161 : vector<2x128xf32>
    %163 = vector.extract_strided_slice %156 {offsets = [0, 128], sizes = [2, 128], strides = [1, 1]} : vector<2x512xf32> to vector<2x128xf32>
    %164 = arith.negf %163 : vector<2x128xf32>
    %165 = math.exp %164 : vector<2x128xf32>
    %cst_57 = arith.constant 1.000000e+00 : f32
    %166 = vector.broadcast %cst_57 : f32 to vector<2x128xf32>
    %167 = arith.addf %166, %165 : vector<2x128xf32>
    %168 = arith.divf %166, %167 : vector<2x128xf32>
    %169 = vector.extract_strided_slice %156 {offsets = [0, 256], sizes = [2, 128], strides = [1, 1]} : vector<2x512xf32> to vector<2x128xf32>
    %170 = math.tanh %169 : vector<2x128xf32>
    %171 = vector.extract_strided_slice %156 {offsets = [0, 384], sizes = [2, 128], strides = [1, 1]} : vector<2x512xf32> to vector<2x128xf32>
    %172 = arith.negf %171 : vector<2x128xf32>
    %173 = math.exp %172 : vector<2x128xf32>
    %cst_58 = arith.constant 1.000000e+00 : f32
    %174 = vector.broadcast %cst_58 : f32 to vector<2x128xf32>
    %175 = arith.addf %174, %173 : vector<2x128xf32>
    %176 = arith.divf %174, %175 : vector<2x128xf32>
    %177 = arith.mulf %168, %144 : vector<2x128xf32>
    %178 = arith.mulf %162, %170 : vector<2x128xf32>
    %179 = arith.addf %177, %178 : vector<2x128xf32>
    %180 = math.tanh %179 : vector<2x128xf32>
    %181 = arith.mulf %176, %180 : vector<2x128xf32>
    %182 = arith.index_cast %c4_i32 : i32 to index
    %c0_59 = arith.constant 0 : index
    %c0_60 = arith.constant 0 : index
    %183 = vector.load %arg6[%182, %c0_59, %c0_60] : memref<8x2x128xf32, #tpu.memory_space<vmem>>, vector<1x2x128xf32>
    %184 = vector.shape_cast %183 : vector<1x2x128xf32> to vector<2x128xf32>
    %185 = vector.shape_cast %181 : vector<2x128xf32> to vector<1x2x128xf32>
    tpu.vector_store %arg6[%182, %c0_59, %c0_60], %185 {strides = array<i32>} : memref<8x2x128xf32, #tpu.memory_space<vmem>>, vector<1x2x128xf32>,
    %c5_i32 = arith.constant 5 : i32
    %186 = arith.index_cast %c5_i32 : i32 to index
    %c0_61 = arith.constant 0 : index
    %c0_62 = arith.constant 0 : index
    %187 = vector.load %arg5[%186, %c0_61, %c0_62] : memref<8x2x512xf32, #tpu.memory_space<vmem>>, vector<1x2x512xf32>
    %188 = vector.shape_cast %187 : vector<1x2x512xf32> to vector<2x512xf32>
    %c0_63 = arith.constant 0 : index
    %c0_64 = arith.constant 0 : index
    %189 = vector.load %arg2[%c0_63, %c0_64] : memref<128x512xf32, #tpu.memory_space<vmem>>, vector<128x512xf32>
    %cst_65 = arith.constant dense<0.000000e+00> : vector<2x512xf32>
    %190 = tpu.matmul %181, %189, %cst_65 {dimension_numbers = #tpu.dot_dimension_numbers<[1], [0], [0], [1], [0, 0, 1, 1], [], []>} : vector<2x128xf32>, vector<128x512xf32>, vector<2x512xf32> -> vector<2x512xf32>
    %191 = arith.addf %188, %190 : vector<2x512xf32>
    %192 = vector.extract_strided_slice %191 {offsets = [0, 0], sizes = [2, 128], strides = [1, 1]} : vector<2x512xf32> to vector<2x128xf32>
    %193 = arith.negf %192 : vector<2x128xf32>
    %194 = math.exp %193 : vector<2x128xf32>
    %cst_66 = arith.constant 1.000000e+00 : f32
    %195 = vector.broadcast %cst_66 : f32 to vector<2x128xf32>
    %196 = arith.addf %195, %194 : vector<2x128xf32>
    %197 = arith.divf %195, %196 : vector<2x128xf32>
    %198 = vector.extract_strided_slice %191 {offsets = [0, 128], sizes = [2, 128], strides = [1, 1]} : vector<2x512xf32> to vector<2x128xf32>
    %199 = arith.negf %198 : vector<2x128xf32>
    %200 = math.exp %199 : vector<2x128xf32>
    %cst_67 = arith.constant 1.000000e+00 : f32
    %201 = vector.broadcast %cst_67 : f32 to vector<2x128xf32>
    %202 = arith.addf %201, %200 : vector<2x128xf32>
    %203 = arith.divf %201, %202 : vector<2x128xf32>
    %204 = vector.extract_strided_slice %191 {offsets = [0, 256], sizes = [2, 128], strides = [1, 1]} : vector<2x512xf32> to vector<2x128xf32>
    %205 = math.tanh %204 : vector<2x128xf32>
    %206 = vector.extract_strided_slice %191 {offsets = [0, 384], sizes = [2, 128], strides = [1, 1]} : vector<2x512xf32> to vector<2x128xf32>
    %207 = arith.negf %206 : vector<2x128xf32>
    %208 = math.exp %207 : vector<2x128xf32>
    %cst_68 = arith.constant 1.000000e+00 : f32
    %209 = vector.broadcast %cst_68 : f32 to vector<2x128xf32>
    %210 = arith.addf %209, %208 : vector<2x128xf32>
    %211 = arith.divf %209, %210 : vector<2x128xf32>
    %212 = arith.mulf %203, %179 : vector<2x128xf32>
    %213 = arith.mulf %197, %205 : vector<2x128xf32>
    %214 = arith.addf %212, %213 : vector<2x128xf32>
    %215 = math.tanh %214 : vector<2x128xf32>
    %216 = arith.mulf %211, %215 : vector<2x128xf32>
    %217 = arith.index_cast %c5_i32 : i32 to index
    %c0_69 = arith.constant 0 : index
    %c0_70 = arith.constant 0 : index
    %218 = vector.load %arg6[%217, %c0_69, %c0_70] : memref<8x2x128xf32, #tpu.memory_space<vmem>>, vector<1x2x128xf32>
    %219 = vector.shape_cast %218 : vector<1x2x128xf32> to vector<2x128xf32>
    %220 = vector.shape_cast %216 : vector<2x128xf32> to vector<1x2x128xf32>
    tpu.vector_store %arg6[%217, %c0_69, %c0_70], %220 {strides = array<i32>} : memref<8x2x128xf32, #tpu.memory_space<vmem>>, vector<1x2x128xf32>,
    %c6_i32 = arith.constant 6 : i32
    %221 = arith.index_cast %c6_i32 : i32 to index
    %c0_71 = arith.constant 0 : index
    %c0_72 = arith.constant 0 : index
    %222 = vector.load %arg5[%221, %c0_71, %c0_72] : memref<8x2x512xf32, #tpu.memory_space<vmem>>, vector<1x2x512xf32>
    %223 = vector.shape_cast %222 : vector<1x2x512xf32> to vector<2x512xf32>
    %c0_73 = arith.constant 0 : index
    %c0_74 = arith.constant 0 : index
    %224 = vector.load %arg2[%c0_73, %c0_74] : memref<128x512xf32, #tpu.memory_space<vmem>>, vector<128x512xf32>
    %cst_75 = arith.constant dense<0.000000e+00> : vector<2x512xf32>
    %225 = tpu.matmul %216, %224, %cst_75 {dimension_numbers = #tpu.dot_dimension_numbers<[1], [0], [0], [1], [0, 0, 1, 1], [], []>} : vector<2x128xf32>, vector<128x512xf32>, vector<2x512xf32> -> vector<2x512xf32>
    %226 = arith.addf %223, %225 : vector<2x512xf32>
    %227 = vector.extract_strided_slice %226 {offsets = [0, 0], sizes = [2, 128], strides = [1, 1]} : vector<2x512xf32> to vector<2x128xf32>
    %228 = arith.negf %227 : vector<2x128xf32>
    %229 = math.exp %228 : vector<2x128xf32>
    %cst_76 = arith.constant 1.000000e+00 : f32
    %230 = vector.broadcast %cst_76 : f32 to vector<2x128xf32>
    %231 = arith.addf %230, %229 : vector<2x128xf32>
    %232 = arith.divf %230, %231 : vector<2x128xf32>
    %233 = vector.extract_strided_slice %226 {offsets = [0, 128], sizes = [2, 128], strides = [1, 1]} : vector<2x512xf32> to vector<2x128xf32>
    %234 = arith.negf %233 : vector<2x128xf32>
    %235 = math.exp %234 : vector<2x128xf32>
    %cst_77 = arith.constant 1.000000e+00 : f32
    %236 = vector.broadcast %cst_77 : f32 to vector<2x128xf32>
    %237 = arith.addf %236, %235 : vector<2x128xf32>
    %238 = arith.divf %236, %237 : vector<2x128xf32>
    %239 = vector.extract_strided_slice %226 {offsets = [0, 256], sizes = [2, 128], strides = [1, 1]} : vector<2x512xf32> to vector<2x128xf32>
    %240 = math.tanh %239 : vector<2x128xf32>
    %241 = vector.extract_strided_slice %226 {offsets = [0, 384], sizes = [2, 128], strides = [1, 1]} : vector<2x512xf32> to vector<2x128xf32>
    %242 = arith.negf %241 : vector<2x128xf32>
    %243 = math.exp %242 : vector<2x128xf32>
    %cst_78 = arith.constant 1.000000e+00 : f32
    %244 = vector.broadcast %cst_78 : f32 to vector<2x128xf32>
    %245 = arith.addf %244, %243 : vector<2x128xf32>
    %246 = arith.divf %244, %245 : vector<2x128xf32>
    %247 = arith.mulf %238, %214 : vector<2x128xf32>
    %248 = arith.mulf %232, %240 : vector<2x128xf32>
    %249 = arith.addf %247, %248 : vector<2x128xf32>
    %250 = math.tanh %249 : vector<2x128xf32>
    %251 = arith.mulf %246, %250 : vector<2x128xf32>
    %252 = arith.index_cast %c6_i32 : i32 to index
    %c0_79 = arith.constant 0 : index
    %c0_80 = arith.constant 0 : index
    %253 = vector.load %arg6[%252, %c0_79, %c0_80] : memref<8x2x128xf32, #tpu.memory_space<vmem>>, vector<1x2x128xf32>
    %254 = vector.shape_cast %253 : vector<1x2x128xf32> to vector<2x128xf32>
    %255 = vector.shape_cast %251 : vector<2x128xf32> to vector<1x2x128xf32>
    tpu.vector_store %arg6[%252, %c0_79, %c0_80], %255 {strides = array<i32>} : memref<8x2x128xf32, #tpu.memory_space<vmem>>, vector<1x2x128xf32>,
    %c7_i32 = arith.constant 7 : i32
    %256 = arith.index_cast %c7_i32 : i32 to index
    %c0_81 = arith.constant 0 : index
    %c0_82 = arith.constant 0 : index
    %257 = vector.load %arg5[%256, %c0_81, %c0_82] : memref<8x2x512xf32, #tpu.memory_space<vmem>>, vector<1x2x512xf32>
    %258 = vector.shape_cast %257 : vector<1x2x512xf32> to vector<2x512xf32>
    %c0_83 = arith.constant 0 : index
    %c0_84 = arith.constant 0 : index
    %259 = vector.load %arg2[%c0_83, %c0_84] : memref<128x512xf32, #tpu.memory_space<vmem>>, vector<128x512xf32>
    %cst_85 = arith.constant dense<0.000000e+00> : vector<2x512xf32>
    %260 = tpu.matmul %251, %259, %cst_85 {dimension_numbers = #tpu.dot_dimension_numbers<[1], [0], [0], [1], [0, 0, 1, 1], [], []>} : vector<2x128xf32>, vector<128x512xf32>, vector<2x512xf32> -> vector<2x512xf32>
    %261 = arith.addf %258, %260 : vector<2x512xf32>
    %262 = vector.extract_strided_slice %261 {offsets = [0, 0], sizes = [2, 128], strides = [1, 1]} : vector<2x512xf32> to vector<2x128xf32>
    %263 = arith.negf %262 : vector<2x128xf32>
    %264 = math.exp %263 : vector<2x128xf32>
    %cst_86 = arith.constant 1.000000e+00 : f32
    %265 = vector.broadcast %cst_86 : f32 to vector<2x128xf32>
    %266 = arith.addf %265, %264 : vector<2x128xf32>
    %267 = arith.divf %265, %266 : vector<2x128xf32>
    %268 = vector.extract_strided_slice %261 {offsets = [0, 128], sizes = [2, 128], strides = [1, 1]} : vector<2x512xf32> to vector<2x128xf32>
    %269 = arith.negf %268 : vector<2x128xf32>
    %270 = math.exp %269 : vector<2x128xf32>
    %cst_87 = arith.constant 1.000000e+00 : f32
    %271 = vector.broadcast %cst_87 : f32 to vector<2x128xf32>
    %272 = arith.addf %271, %270 : vector<2x128xf32>
    %273 = arith.divf %271, %272 : vector<2x128xf32>
    %274 = vector.extract_strided_slice %261 {offsets = [0, 256], sizes = [2, 128], strides = [1, 1]} : vector<2x512xf32> to vector<2x128xf32>
    %275 = math.tanh %274 : vector<2x128xf32>
    %276 = vector.extract_strided_slice %261 {offsets = [0, 384], sizes = [2, 128], strides = [1, 1]} : vector<2x512xf32> to vector<2x128xf32>
    %277 = arith.negf %276 : vector<2x128xf32>
    %278 = math.exp %277 : vector<2x128xf32>
    %cst_88 = arith.constant 1.000000e+00 : f32
    %279 = vector.broadcast %cst_88 : f32 to vector<2x128xf32>
    %280 = arith.addf %279, %278 : vector<2x128xf32>
    %281 = arith.divf %279, %280 : vector<2x128xf32>
    %282 = arith.mulf %273, %249 : vector<2x128xf32>
    %283 = arith.mulf %267, %275 : vector<2x128xf32>
    %284 = arith.addf %282, %283 : vector<2x128xf32>
    %285 = math.tanh %284 : vector<2x128xf32>
    %286 = arith.mulf %281, %285 : vector<2x128xf32>
    %287 = arith.index_cast %c7_i32 : i32 to index
    %c0_89 = arith.constant 0 : index
    %c0_90 = arith.constant 0 : index
    %288 = vector.load %arg6[%287, %c0_89, %c0_90] : memref<8x2x128xf32, #tpu.memory_space<vmem>>, vector<1x2x128xf32>
    %289 = vector.shape_cast %288 : vector<1x2x128xf32> to vector<2x128xf32>
    %290 = vector.shape_cast %286 : vector<2x128xf32> to vector<1x2x128xf32>
    tpu.vector_store %arg6[%287, %c0_89, %c0_90], %290 {strides = array<i32>} : memref<8x2x128xf32, #tpu.memory_space<vmem>>, vector<1x2x128xf32>,
    %c8_i32 = arith.constant 8 : i32
    %c0_91 = arith.constant 0 : index
    %c0_92 = arith.constant 0 : index
    %c0_93 = arith.constant 0 : index
    %291 = vector.load %arg6[%c0_91, %c0_92, %c0_93] : memref<8x2x128xf32, #tpu.memory_space<vmem>>, vector<8x2x128xf32>
    %292 = vector.extract_strided_slice %291 {offsets = [0, 0, 0], sizes = [8, 2, 32], strides = [1, 1, 1]} : vector<8x2x128xf32> to vector<8x2x32xf32>
    %293 = vector.extract_strided_slice %291 {offsets = [0, 0, 32], sizes = [8, 2, 32], strides = [1, 1, 1]} : vector<8x2x128xf32> to vector<8x2x32xf32>
    %294 = vector.extract_strided_slice %291 {offsets = [0, 0, 64], sizes = [8, 2, 32], strides = [1, 1, 1]} : vector<8x2x128xf32> to vector<8x2x32xf32>
    %295 = arith.mulf %292, %293 : vector<8x2x32xf32>
    %cst_94 = arith.constant dense<0xFF800000> : vector<8x2xf32>
    %296 = vector.multi_reduction <maximumf>, %295, %cst_94 [2] : vector<8x2x32xf32> to vector<8x2xf32>
    %297 = vector.shape_cast %296 : vector<8x2xf32> to vector<8x2x1xf32>
    %298 = vector.broadcast %297 : vector<8x2x1xf32> to vector<8x2x32xf32>
    %299 = arith.subf %295, %298 : vector<8x2x32xf32>
    %300 = math.exp %299 : vector<8x2x32xf32>
    %cst_95 = arith.constant dense<0.000000e+00> : vector<8x2xf32>
    %301 = vector.multi_reduction <add>, %300, %cst_95 [2] : vector<8x2x32xf32> to vector<8x2xf32>
    %302 = vector.shape_cast %301 : vector<8x2xf32> to vector<8x2x1xf32>
    %303 = vector.broadcast %302 : vector<8x2x1xf32> to vector<8x2x32xf32>
    %304 = arith.divf %300, %303 : vector<8x2x32xf32>
    %305 = arith.mulf %294, %304 : vector<8x2x32xf32>
    %306 = vector.extract_strided_slice %305 {offsets = [0, 0, 0], sizes = [1, 2, 32], strides = [1, 1, 1]} : vector<8x2x32xf32> to vector<1x2x32xf32>
    %307 = vector.shape_cast %306 : vector<1x2x32xf32> to vector<2x32xf32>
    %308 = vector.extract_strided_slice %305 {offsets = [1, 0, 0], sizes = [1, 2, 32], strides = [1, 1, 1]} : vector<8x2x32xf32> to vector<1x2x32xf32>
    %309 = vector.shape_cast %308 : vector<1x2x32xf32> to vector<2x32xf32>
    %310 = vector.extract_strided_slice %305 {offsets = [2, 0, 0], sizes = [1, 2, 32], strides = [1, 1, 1]} : vector<8x2x32xf32> to vector<1x2x32xf32>
    %311 = vector.shape_cast %310 : vector<1x2x32xf32> to vector<2x32xf32>
    %312 = vector.extract_strided_slice %305 {offsets = [3, 0, 0], sizes = [1, 2, 32], strides = [1, 1, 1]} : vector<8x2x32xf32> to vector<1x2x32xf32>
    %313 = vector.shape_cast %312 : vector<1x2x32xf32> to vector<2x32xf32>
    %314 = vector.extract_strided_slice %305 {offsets = [4, 0, 0], sizes = [1, 2, 32], strides = [1, 1, 1]} : vector<8x2x32xf32> to vector<1x2x32xf32>
    %315 = vector.shape_cast %314 : vector<1x2x32xf32> to vector<2x32xf32>
    %316 = vector.extract_strided_slice %305 {offsets = [5, 0, 0], sizes = [1, 2, 32], strides = [1, 1, 1]} : vector<8x2x32xf32> to vector<1x2x32xf32>
    %317 = vector.shape_cast %316 : vector<1x2x32xf32> to vector<2x32xf32>
    %318 = vector.extract_strided_slice %305 {offsets = [6, 0, 0], sizes = [1, 2, 32], strides = [1, 1, 1]} : vector<8x2x32xf32> to vector<1x2x32xf32>
    %319 = vector.shape_cast %318 : vector<1x2x32xf32> to vector<2x32xf32>
    %320 = vector.extract_strided_slice %305 {offsets = [7, 0, 0], sizes = [1, 2, 32], strides = [1, 1, 1]} : vector<8x2x32xf32> to vector<1x2x32xf32>
    %321 = vector.shape_cast %320 : vector<1x2x32xf32> to vector<2x32xf32>
    %322 = tpu.concatenate %307, %309, %311, %313, %315, %317, %319, %321 in 1 : vector<2x32xf32>, vector<2x32xf32>, vector<2x32xf32>, vector<2x32xf32>, vector<2x32xf32>, vector<2x32xf32>, vector<2x32xf32>, vector<2x32xf32> -> vector<2x256xf32>
    %c0_96 = arith.constant 0 : index
    %c0_97 = arith.constant 0 : index
    %323 = vector.load %arg4[%c0_96, %c0_97] : memref<2x256xf32, #tpu.memory_space<vmem>>, vector<2x256xf32>
    tpu.vector_store %arg4[%c0_96, %c0_97], %322 {strides = array<i32>} : memref<2x256xf32, #tpu.memory_space<vmem>>, vector<2x256xf32>,
    return
  }
}

</mosaic_0001>

<bundles_post_ra>
// kernel: tsa_forward.1
= control target key start
LH: loop header
LB: loop body
LE: loop exit
PB: predicated region body
PF: predicated region fallthrough
CT: control target
= control target key end

     0   :  { %9 = vsyncpa [#allocation5], 0  ;;  %s3947_s0 = inlined_call_operand.vmem [shape: f32[8,2,16], index: 0, kind: input, shape index: {}]   ;;  %s3948_s1 = inlined_call_operand.hbm [shape: f32[16,512], index: 1, kind: input, shape index: {}]   ;;  %s3949_s2 = inlined_call_operand.hbm [shape: f32[128,512], index: 2, kind: input, shape index: {}]   ;;  %s3950_s3 = inlined_call_operand.vmem [shape: f32[1,512], index: 3, kind: input, shape index: {}]   ;;  %s3951_s4 = inlined_call_operand.vmem [shape: f32[2,256], index: 4, kind: output, shape index: {}]  }
   0x1   :  { %s17_s17 = sshll.u32 %s3948_s1, 4  ;;  %s18_s17 = int_to_ptr.hbm [resolvable:$true] %s17_s17 }
   0x2   :  { %10 = vsyncpa [#allocation7], 0  ;;  %s2682_s18 = smov [#allocation4]   ;;  %s30_s22 = sshll.u32 %s3949_s2, 4  ;;  %s31_s22 = int_to_ptr.hbm [resolvable:$true] %s30_s22 }
   0x3   :  { %s19_s19 = sshll.u32 %s2682_s18, 4  ;;  %s2683_s23 = smov 512   ;;  %s20_s19 = int_to_ptr.vmem [resolvable:$true] %s19_s19 }
   0x4   :  { %s2684_s24 = smov 32   ;;  %s2685_s25 = smov [#allocation6]  }
   0x5   :  { %25 = dma.hbm_to_vmem [thread:$0]  %s18_s17, 1024, %s20_s19, [#allocation5], %s2683_s23, %s2683_s23, %s2684_s24  }
   0x6   :  { %s32_s26 = sshll.u32 %s2685_s25, 4  ;;  %s33_s26 = int_to_ptr.vmem [resolvable:$true] %s32_s26 }
   0x7   :  { %38 = dma.hbm_to_vmem [thread:$0]  %s31_s22, 8192, %s33_s26, [#allocation7], %s2683_s23, %s2683_s23, %s2684_s24  }
   0x8   :  { %2678 = dma.done.wait [#allocation5], 1024  }
   0x9   :  { %2679 = vsyncadd [#allocation5], 4294966272 }
   0xa   :  { %2680 = dma.done.wait [#allocation7], 8192  }
   0xb   :  { %2681 = vsyncadd [#allocation7], 4294959104  ;;  %v63_v0 = vld [vmem:[#allocation4 + $0x30] sm:$0xff]  ;;  %v64_v1 = vld [vmem:[#allocation4 + $0x38] sm:$0xff]  ;;  %vm100_vm0 = vcmask 130048   ;;  %vm217_vm1 = vcmask 1043458  }
   0xc   :  { %v59_v2 = vld [vmem:[#allocation4 + $0x10] sm:$0xff]  ;;  %165 = vmatpush.msra.mxu2 %v63_v0  ;;  %188 = vmatpush.msra.mxu3 %v64_v1  ;;  %v60_v3 = vld [vmem:[#allocation4 + $0x18] sm:$0xff]  ;;  %v62_v6 = vld [vmem:[#allocation4 + $0x28] sm:$0xff]  ;;  %vm219_vm2 = vcmask 1045504   ;;  %vm213_vm3 = vcmask 1045508   ;;  %vm211_vm4 = vcmask 1041408  }
   0xd   :  { %v2722_v4 = vld [vmem:[#allocation6 + $0x1f0] sm:$0xff]  ;;  %v2724_v5 = vld [vmem:[#allocation6 + $0x1f8] sm:$0xff]  ;;  %v61_v9 = vld [vmem:[#allocation4 + $0x20] sm:$0xff]  ;;  %142 = vmatpush.msra.mxu1 %v62_v6  ;;  %vm215_vm5 = vcmask 1043456   ;;  %vm221_vm6 = vcmask 1045506   ;;  %s2688_s16 = smov 64  }
   0xe   :  { %166 = vmatpush.msra.mxu2 %v59_v2  ;;  %189 = vmatpush.msra.mxu3 %v60_v3  ;;  %v2726_v7 = vld [vmem:[#allocation6 + $0x1d0] sm:$0xff]  ;;  %v2728_v8 = vld [vmem:[#allocation6 + $0x1d8] sm:$0xff]  ;;  %v58_v10 = vld [vmem:[#allocation4 + $0x8] sm:$0xff] }
   0xf   :  { %v2732_v11 = vld [vmem:[#allocation6 + $0x1b0] sm:$0xff]  ;;  %v2734_v12 = vld [vmem:[#allocation6 + $0x1b8] sm:$0xff]  ;;  %119 = vmatpush.msra.mxu0 %v61_v9  ;;  %v57_v13 = vld [vmem:[#allocation4] sm:$0xff]  ;;  %143 = vmatpush.msra.mxu1 %v58_v10 }
  0x10   :  { %368 = vmatpush.msrb.mxu2 %v2722_v4  ;;  %388 = vmatpush.msrb.mxu3 %v2724_v5  ;;  %v2738_v14 = vld [vmem:[#allocation6 + $0x1e8] sm:$0xff]  ;;  %v2740_v15 = vld [vmem:[#allocation6 + $0x1e0] sm:$0xff]  ;;  %v2742_v16 = vld [vmem:[#allocation6 + $0x190] sm:$0xff] }
  0x11   :  { %v2744_v17 = vld [vmem:[#allocation6 + $0x198] sm:$0xff]  ;;  %120 = vmatpush.msra.mxu0 %v57_v13  ;;  %v2748_v18 = vld [vmem:[#allocation6 + $0x1c8] sm:$0xff]  ;;  %v2750_v19 = vld [vmem:[#allocation6 + $0x1c0] sm:$0xff]  ;;  %348 = vmatpush.msrb.mxu1 %v2738_v14 }
  0x12   :  { %369 = vmatpush.msrb.mxu2 %v2726_v7  ;;  %389 = vmatpush.msrb.mxu3 %v2728_v8  ;;  %v2754_v20 = vld [vmem:[#allocation6 + $0x170] sm:$0xff]  ;;  %v2756_v21 = vld [vmem:[#allocation6 + $0x178] sm:$0xff]  ;;  %v2758_v22 = vld [vmem:[#allocation6 + $0x1a8] sm:$0xff] }
  0x13   :  { %328 = vmatpush.msrb.mxu0 %v2740_v15  ;;  %v2762_v23 = vld [vmem:[#allocation6 + $0x150] sm:$0xff]  ;;  %v2764_v24 = vld [vmem:[#allocation6 + $0x158] sm:$0xff]  ;;  %v2766_v25 = vld [vmem:[#allocation6 + $0x1a0] sm:$0xff]  ;;  %349 = vmatpush.msrb.mxu1 %v2748_v18 }
  0x14   :  { %370 = vmatpush.msrb.mxu2 %v2732_v11  ;;  %390 = vmatpush.msrb.mxu3 %v2734_v12  ;;  %v49_v26 = vld [vmem:[%s3947_s0] sm:$0x3]  ;;  %v50_v27 = vld [vmem:[%s3947_s0 + $0x2] sm:$0x3]  ;;  %v51_v28 = vld [vmem:[%s3947_s0 + $0x4] sm:$0x3] }
  0x15   :  { %329 = vmatpush.msrb.mxu0 %v2750_v19  ;;  %v2781_v29 = vld [vmem:[#allocation6 + $0x188] sm:$0xff]  ;;  %v2783_v30 = vld [vmem:[#allocation6 + $0x180] sm:$0xff]  ;;  %83 = vst [vmem:[#allocation1] ss:$4 sm:$0xff] %v49_v26  ;;  %350 = vmatpush.msrb.mxu1 %v2758_v22  ;;  %v2790_v32 = vld [vmem:[#allocation6 + $0x130] sm:$0xff] }
  0x16   :  { %371 = vmatpush.msrb.mxu2 %v2742_v16  ;;  %391 = vmatpush.msrb.mxu3 %v2744_v17  ;;  %v52_v31 = vld [vmem:[%s3947_s0 + $0x6] sm:$0x3]  ;;  %v2792_v33 = vld [vmem:[#allocation6 + $0x138] sm:$0xff]  ;;  %85 = vst [vmem:[#allocation1 + $0x1] ss:$4 sm:$0xff] %v50_v27  ;;  %v2798_v35 = vld [vmem:[#allocation6 + $0x160] sm:$0xff] }
  0x17   :  { %330 = vmatpush.msrb.mxu0 %v2766_v25  ;;  %v2796_v34 = vld [vmem:[#allocation6 + $0x168] sm:$0xff]  ;;  %87 = vst [vmem:[#allocation1 + $0x2] ss:$4 sm:$0xff] %v51_v28  ;;  %351 = vmatpush.msrb.mxu1 %v2781_v29  ;;  %v2802_v36 = vld [vmem:[#allocation6 + $0x110] sm:$0xff]  ;;  %v2804_v37 = vld [vmem:[#allocation6 + $0x118] sm:$0xff] }
  0x18   :  { %372 = vmatpush.msrb.mxu2 %v2754_v20  ;;  %392 = vmatpush.msrb.mxu3 %v2756_v21  ;;  %89 = vst [vmem:[#allocation1 + $0x3] ss:$4 sm:$0xff] %v52_v31  ;;  %v2808_v38 = vld [vmem:[#allocation6 + $0x148] sm:$0xff]  ;;  %v2810_v39 = vld [vmem:[#allocation6 + $0xf0] sm:$0xff]  ;;  %v2812_v40 = vld [vmem:[#allocation6 + $0x140] sm:$0xff] }
  0x19   :  { %331 = vmatpush.msrb.mxu0 %v2783_v30  ;;  %352 = vmatpush.msrb.mxu1 %v2796_v34  ;;  %v2816_v41 = vld [vmem:[#allocation6 + $0xf8] sm:$0xff]  ;;  %v2818_v42 = vld [vmem:[#allocation6 + $0x128] sm:$0xff]  ;;  %v53_v43 = vld [vmem:[%s3947_s0 + $0x8] sm:$0x3] }
  0x1a   :  { %373 = vmatpush.msrb.mxu2 %v2762_v23  ;;  %393 = vmatpush.msrb.mxu3 %v2764_v24  ;;  %v2825_v44 = vld [vmem:[#allocation6 + $0x120] sm:$0xff]  ;;  %v54_v45 = vld [vmem:[%s3947_s0 + $0xa] sm:$0x3]  ;;  %v55_v46 = vld [vmem:[%s3947_s0 + $0xc] sm:$0x3] }
  0x1b   :  { %332 = vmatpush.msrb.mxu0 %v2798_v35  ;;  %353 = vmatpush.msrb.mxu1 %v2808_v38  ;;  %v2835_v47 = vld [vmem:[#allocation6 + $0xd0] sm:$0xff]  ;;  %v2837_v48 = vld [vmem:[#allocation6 + $0xd8] sm:$0xff]  ;;  %91 = vst [vmem:[#allocation1 + $0x20] ss:$4 sm:$0xff] %v53_v43  ;;  %v2846_v50 = vld [vmem:[#allocation6 + $0x108] sm:$0xff] }
  0x1c   :  { %374 = vmatpush.msrb.mxu2 %v2790_v32  ;;  %394 = vmatpush.msrb.mxu3 %v2792_v33  ;;  %v56_v49 = vld [vmem:[%s3947_s0 + $0xe] sm:$0x3]  ;;  %93 = vst [vmem:[#allocation1 + $0x21] ss:$4 sm:$0xff] %v54_v45  ;;  %v2852_v53 = vld [vmem:[#allocation6 + $0xb8] sm:$0xff]  ;;  %v2856_v54 = vld [vmem:[#allocation6 + $0x100] sm:$0xff] }
  0x1d   :  { %333 = vmatpush.msrb.mxu0 %v2812_v40  ;;  %354 = vmatpush.msrb.mxu1 %v2818_v42  ;;  %v2848_v51 = vld [vmem:[#allocation6 + $0xb0] sm:$0xff]  ;;  %95 = vst [vmem:[#allocation1 + $0x22] ss:$4 sm:$0xff] %v55_v46  ;;  %v2858_v55 = vld [vmem:[#allocation6 + $0xe8] sm:$0xff]  ;;  %v2864_v57 = vld [vmem:[#allocation6 + $0x98] sm:$0xff]  ;;  %v2686_v46 = vmov 0.0  }
  0x1e   :  { %375 = vmatpush.msrb.mxu2 %v2802_v36  ;;  %395 = vmatpush.msrb.mxu3 %v2804_v37  ;;  %97 = vst [vmem:[#allocation1 + $0x23] ss:$4 sm:$0xff] %v56_v49  ;;  %v2862_v56 = vld [vmem:[#allocation6 + $0x90] sm:$0xff]  ;;  %v2868_v58 = vld [vmem:[#allocation6 + $0xc8] sm:$0xff]  ;;  %v2872_v59 = vld [vmem:[#allocation6 + $0xe0] sm:$0xff] }
  0x1f   :  { %334 = vmatpush.msrb.mxu0 %v2825_v44  ;;  %v98_v52 = vld.sshfl [vmem:[#allocation1] sm:$0xff pattern:$0x73625140]  ;;  %355 = vmatpush.msrb.mxu1 %v2846_v50  ;;  %v2874_v60 = vld [vmem:[#allocation6 + $0x70] sm:$0xff]  ;;  %v2878_v61 = vld [vmem:[#allocation6 + $0x78] sm:$0xff] }
  0x20   :  { %376 = vmatpush.msrb.mxu2 %v2810_v39  ;;  %396 = vmatpush.msrb.mxu3 %v2816_v41  ;;  %v2880_v62 = vld [vmem:[#allocation6 + $0xa8] sm:$0xff]  ;;  %v2886_v0 = vld [vmem:[#allocation6 + $0xc0] sm:$0xff]  ;;  %v2888_v1 = vld [vmem:[#allocation6 + $0x50] sm:$0xff] }
  0x21   :  { %2431 = vmatmul.msk.f32.vlgmr.msra.gmra.mxu2 %vm100_vm0, %v98_v52  ;;  %2433 = vmatmul.msk.f32.vlgmr.msra.gmra.mxu3 %vm100_vm0, %v98_v52  ;;  %v2892_v2 = vld [vmem:[#allocation6 + $0x58] sm:$0xff]  ;;  %v2894_v3 = vld [vmem:[#allocation6 + $0x88] sm:$0xff]  ;;  %v2898_v6 = vld [vmem:[#allocation6 + $0xa0] sm:$0xff] }
  0x22   :  { %377 = vmatpush.msrb.mxu2 %v2835_v47  ;;  %397 = vmatpush.msrb.mxu3 %v2837_v48  ;;  %v2900_v9 = vld [vmem:[#allocation6 + $0x30] sm:$0xff]  ;;  %v2904_v10 = vld [vmem:[#allocation6 + $0x38] sm:$0xff]  ;;  %v2908_v13 = vld [vmem:[#allocation6 + $0x80] sm:$0xff] }
  0x23   :  { %2429 = vmatmul.msk.f32.vlgmr.msra.gmra.mxu1 %vm100_vm0, %v98_v52  ;;  %335 = vmatpush.msrb.mxu0 %v2856_v54  ;;  %v2910_v26 = vld [vmem:[#allocation6 + $0x68] sm:$0xff]  ;;  %v2914_v27 = vld [vmem:[#allocation6 + $0x10] sm:$0xff]  ;;  %v2916_v28 = vld [vmem:[#allocation6 + $0x18] sm:$0xff] }
  0x24   :  { %378 = vmatpush.msrb.mxu2 %v2848_v51  ;;  %398 = vmatpush.msrb.mxu3 %v2852_v53  ;;  %3990 = vst [vmem:[#allocation10_spill] sm:$0xff] %v2916_v28  ;;  %v2920_v31 = vld [vmem:[#allocation6 + $0x48] sm:$0xff]  ;;  %v2926_v43 = vld [vmem:[#allocation6 + $0x60] sm:$0xff] }
  0x25   :  { %356 = vmatpush.msrb.mxu1 %v2858_v55  ;;  %2427 = vmatmul.msk.f32.vlgmr.msra.gmra.mxu0 %vm100_vm0, %v98_v52  ;;  %v99_v63 = vld.sshfl [vmem:[#allocation1 + $0x20] sm:$0xff pattern:$0x73625140]  ;;  %v2932_v49 = vld [vmem:[#allocation6 + $0x40] sm:$0xff] }
  0x26   :  { %379 = vmatpush.msrb.mxu2 %v2862_v56  ;;  %399 = vmatpush.msrb.mxu3 %v2864_v57  ;;  %v2928_v45 = vld [vmem:[#allocation6 + $0x28] sm:$0xff] }
  0x27   :  { %357 = vmatpush.msrb.mxu1 %v2868_v58  ;;  %336 = vmatpush.msrb.mxu0 %v2872_v59  ;;  %v2934_v52 = vld [vmem:[#allocation6 + $0x8] sm:$0xff] }
  0x28   :  { %380 = vmatpush.msrb.mxu2 %v2874_v60  ;;  %400 = vmatpush.msrb.mxu3 %v2878_v61 }
  0x29   :  { %358 = vmatpush.msrb.mxu1 %v2880_v62  ;;  %2432 = vmatmul.msk.f32.gmra.mxu2 %vm100_vm0, %v99_v63 }
  0x2a   :  { %2434 = vmatmul.msk.f32.gmra.mxu3 %vm100_vm0, %v99_v63  ;;  %337 = vmatpush.msrb.mxu0 %v2886_v0 }
  0x2b   :  { %381 = vmatpush.msrb.mxu2 %v2888_v1  ;;  %401 = vmatpush.msrb.mxu3 %v2892_v2 }
  0x2c   :  { %359 = vmatpush.msrb.mxu1 %v2894_v3  ;;  %338 = vmatpush.msrb.mxu0 %v2898_v6 }
  0x2d   :  { %382 = vmatpush.msrb.mxu2 %v2900_v9  ;;  %402 = vmatpush.msrb.mxu3 %v2904_v10 }
  0x2e   :  { %2430 = vmatmul.msk.f32.gmra.mxu1 %vm100_vm0, %v99_v63  ;;  %339 = vmatpush.msrb.mxu0 %v2908_v13 }
  0x2f   :  { %360 = vmatpush.msrb.mxu1 %v2910_v26  ;;  %383 = vmatpush.msrb.mxu2 %v2914_v27 }
  0x30   :  { %403 = vmatpush.msrb.mxu3 %v2916_v28  ;;  %2428 = vmatmul.msk.f32.gmra.mxu0 %vm100_vm0, %v99_v63  ;;  %v2938_v28 = vld [vmem:[#allocation6 + $0x20] sm:$0xff] }
  0x31   :  { %361 = vmatpush.msrb.mxu1 %v2920_v31  ;;  %384 = vmatmul.f32.vlgmr.msrb.gmra.mxu2 %v2686_v46  ;;  %v2944_v63 = vld [vmem:[#allocation6] sm:$0xff] }
  0x32   :  { %404 = vmatmul.f32.vlgmr.msrb.gmra.mxu3 %v2686_v46  ;;  %340 = vmatpush.msrb.mxu0 %v2926_v43 }
  0x33   :  { %362 = vmatpush.msrb.mxu1 %v2928_v45  ;;  %597 = vmatpush.msra.mxu2 %v2722_v4 }
  0x34   :  { %617 = vmatpush.msra.mxu3 %v2724_v5  ;;  %341 = vmatpush.msrb.mxu0 %v2932_v49 }
  0x35   :  { %363 = vmatpush.msrb.mxu1 %v2934_v52  ;;  %598 = vmatpush.msra.mxu2 %v2726_v7 }
  0x36   :  { %364 = vmatmul.f32.vlgmr.msrb.gmra.mxu1 %v2686_v46  ;;  %342 = vmatpush.msrb.mxu0 %v2938_v28 }
  0x37   :  { %577 = vmatpush.msra.mxu1 %v2738_v14  ;;  %618 = vmatpush.msra.mxu3 %v2728_v8 }
  0x38   :  { %599 = vmatpush.msra.mxu2 %v2732_v11  ;;  %343 = vmatpush.msrb.mxu0 %v2944_v63 }
  0x39   :  { %578 = vmatpush.msra.mxu1 %v2748_v18  ;;  %344 = vmatmul.f32.vlgmr.msrb.gmra.mxu0 %v2686_v46  ;;  %v3991_v46 = vld [vmem:[#allocation10_spill] sm:$0xff] }
  0x3a   :  { %619 = vmatpush.msra.mxu3 %v2734_v12  ;;  %557 = vmatpush.msra.mxu0 %v2740_v15 }
  0x3b   :  { %579 = vmatpush.msra.mxu1 %v2758_v22  ;;  %600 = vmatpush.msra.mxu2 %v2742_v16 }
  0x3c   :  { %620 = vmatpush.msra.mxu3 %v2744_v17  ;;  %558 = vmatpush.msra.mxu0 %v2750_v19 }
  0x3d   :  { %580 = vmatpush.msra.mxu1 %v2781_v29  ;;  %601 = vmatpush.msra.mxu2 %v2754_v20 }
  0x3e   :  { %621 = vmatpush.msra.mxu3 %v2756_v21  ;;  %559 = vmatpush.msra.mxu0 %v2766_v25 }
  0x3f   :  { %581 = vmatpush.msra.mxu1 %v2796_v34  ;;  %602 = vmatpush.msra.mxu2 %v2762_v23 }
  0x40   :  { %622 = vmatpush.msra.mxu3 %v2764_v24  ;;  %560 = vmatpush.msra.mxu0 %v2783_v30 }
  0x41   :  { %582 = vmatpush.msra.mxu1 %v2808_v38  ;;  %603 = vmatpush.msra.mxu2 %v2790_v32 }
  0x42   :  { %623 = vmatpush.msra.mxu3 %v2792_v33  ;;  %561 = vmatpush.msra.mxu0 %v2798_v35 }
  0x43   :  { %583 = vmatpush.msra.mxu1 %v2818_v42  ;;  %604 = vmatpush.msra.mxu2 %v2802_v36 }
  0x44   :  { %624 = vmatpush.msra.mxu3 %v2804_v37  ;;  %562 = vmatpush.msra.mxu0 %v2812_v40 }
  0x45   :  { %584 = vmatpush.msra.mxu1 %v2846_v50  ;;  %605 = vmatpush.msra.mxu2 %v2810_v39 }
  0x46   :  { %625 = vmatpush.msra.mxu3 %v2816_v41  ;;  %563 = vmatpush.msra.mxu0 %v2825_v44 }
  0x47   :  { %585 = vmatpush.msra.mxu1 %v2858_v55  ;;  %606 = vmatpush.msra.mxu2 %v2835_v47 }
  0x48   :  { %626 = vmatpush.msra.mxu3 %v2837_v48  ;;  %564 = vmatpush.msra.mxu0 %v2856_v54 }
  0x49   :  { %586 = vmatpush.msra.mxu1 %v2868_v58  ;;  %607 = vmatpush.msra.mxu2 %v2848_v51 }
  0x4a   :  { %627 = vmatpush.msra.mxu3 %v2852_v53  ;;  %565 = vmatpush.msra.mxu0 %v2872_v59 }
  0x4b   :  { %587 = vmatpush.msra.mxu1 %v2880_v62  ;;  %608 = vmatpush.msra.mxu2 %v2862_v56 }
  0x4c   :  { %628 = vmatpush.msra.mxu3 %v2864_v57  ;;  %566 = vmatpush.msra.mxu0 %v2886_v0 }
  0x4d   :  { %588 = vmatpush.msra.mxu1 %v2894_v3  ;;  %609 = vmatpush.msra.mxu2 %v2874_v60 }
  0x4e   :  { %629 = vmatpush.msra.mxu3 %v2878_v61  ;;  %567 = vmatpush.msra.mxu0 %v2898_v6 }
  0x4f   :  { %589 = vmatpush.msra.mxu1 %v2910_v26  ;;  %610 = vmatpush.msra.mxu2 %v2888_v1 }
  0x50   :  { %630 = vmatpush.msra.mxu3 %v2892_v2  ;;  %568 = vmatpush.msra.mxu0 %v2908_v13 }
  0x51   :  { %590 = vmatpush.msra.mxu1 %v2920_v31  ;;  %611 = vmatpush.msra.mxu2 %v2900_v9 }
  0x52   :  { %631 = vmatpush.msra.mxu3 %v2904_v10  ;;  %569 = vmatpush.msra.mxu0 %v2926_v43 }
  0x53   :  { %591 = vmatpush.msra.mxu1 %v2928_v45  ;;  %612 = vmatpush.msra.mxu2 %v2914_v27 }
  0x54   :  { %632 = vmatpush.msra.mxu3 %v3991_v46  ;;  %570 = vmatpush.msra.mxu0 %v2932_v49 }
  0x55   :  { %592 = vmatpush.msra.mxu1 %v2934_v52  ;;  %827 = vmatpush.msrb.mxu2 %v2722_v4  ;;  %v65_v4 = vld [vmem:[%s3950_s3] sm:$0xf]  ;;  %s2687_s3 = smov 96  }
  0x56   :  { %571 = vmatpush.msra.mxu0 %v2938_v28  ;;  %847 = vmatpush.msrb.mxu3 %v2724_v5  ;;  %v68_v5 = vperm.slane %v65_v4, 1 }
  0x57   :  { %807 = vmatpush.msrb.mxu1 %v2738_v14  ;;  %828 = vmatpush.msrb.mxu2 %v2726_v7  ;;  %v70_v14 = vperm.slane %v65_v4, 3 }
  0x58   :  { %572 = vmatpush.msra.mxu0 %v2944_v63  ;;  %848 = vmatpush.msrb.mxu3 %v2728_v8  ;;  %v67_v8 = vperm.slane %v65_v4, 0 }
  0x59   :  { %808 = vmatpush.msrb.mxu1 %v2748_v18  ;;  %829 = vmatpush.msrb.mxu2 %v2732_v11 }
  0x5a   :  { %787 = vmatpush.msrb.mxu0 %v2740_v15  ;;  %849 = vmatpush.msrb.mxu3 %v2734_v12  ;;  %v69_v12 = vperm.slane %v65_v4, 2 }
  0x5b   :  { %809 = vmatpush.msrb.mxu1 %v2758_v22  ;;  %830 = vmatpush.msrb.mxu2 %v2742_v16 }
  0x5c   :  { %788 = vmatpush.msrb.mxu0 %v2750_v19  ;;  %850 = vmatpush.msrb.mxu3 %v2744_v17 }
  0x5d   :  { %810 = vmatpush.msrb.mxu1 %v2781_v29  ;;  %831 = vmatpush.msrb.mxu2 %v2754_v20 }
  0x5e   :  { %789 = vmatpush.msrb.mxu0 %v2766_v25  ;;  %851 = vmatpush.msrb.mxu3 %v2756_v21 }
  0x5f   :  { %811 = vmatpush.msrb.mxu1 %v2796_v34  ;;  %832 = vmatpush.msrb.mxu2 %v2762_v23 }
  0x60   :  { %790 = vmatpush.msrb.mxu0 %v2783_v30  ;;  %852 = vmatpush.msrb.mxu3 %v2764_v24 }
  0x61   :  { %812 = vmatpush.msrb.mxu1 %v2808_v38  ;;  %833 = vmatpush.msrb.mxu2 %v2790_v32 }
  0x62   :  { %791 = vmatpush.msrb.mxu0 %v2798_v35  ;;  %853 = vmatpush.msrb.mxu3 %v2792_v33 }
  0x63   :  { %813 = vmatpush.msrb.mxu1 %v2818_v42  ;;  %834 = vmatpush.msrb.mxu2 %v2802_v36 }
  0x64   :  { %792 = vmatpush.msrb.mxu0 %v2812_v40  ;;  %854 = vmatpush.msrb.mxu3 %v2804_v37 }
  0x65   :  { %814 = vmatpush.msrb.mxu1 %v2846_v50  ;;  %835 = vmatpush.msrb.mxu2 %v2810_v39 }
  0x66   :  { %793 = vmatpush.msrb.mxu0 %v2825_v44  ;;  %855 = vmatpush.msrb.mxu3 %v2816_v41 }
  0x67   :  { %815 = vmatpush.msrb.mxu1 %v2858_v55  ;;  %836 = vmatpush.msrb.mxu2 %v2835_v47 }
  0x68   :  { %794 = vmatpush.msrb.mxu0 %v2856_v54  ;;  %856 = vmatpush.msrb.mxu3 %v2837_v48 }
  0x69   :  { %816 = vmatpush.msrb.mxu1 %v2868_v58  ;;  %837 = vmatpush.msrb.mxu2 %v2848_v51 }
  0x6a   :  { %795 = vmatpush.msrb.mxu0 %v2872_v59  ;;  %857 = vmatpush.msrb.mxu3 %v2852_v53 }
  0x6b   :  { %817 = vmatpush.msrb.mxu1 %v2880_v62  ;;  %838 = vmatpush.msrb.mxu2 %v2862_v56 }
  0x6c   :  { %796 = vmatpush.msrb.mxu0 %v2886_v0  ;;  %858 = vmatpush.msrb.mxu3 %v2864_v57 }
  0x6d   :  { %818 = vmatpush.msrb.mxu1 %v2894_v3  ;;  %839 = vmatpush.msrb.mxu2 %v2874_v60 }
  0x6e   :  { %797 = vmatpush.msrb.mxu0 %v2898_v6  ;;  %859 = vmatpush.msrb.mxu3 %v2878_v61 }
  0x6f   :  { %819 = vmatpush.msrb.mxu1 %v2910_v26  ;;  %840 = vmatpush.msrb.mxu2 %v2888_v1 }
  0x70   :  { %798 = vmatpush.msrb.mxu0 %v2908_v13  ;;  %860 = vmatpush.msrb.mxu3 %v2892_v2 }
  0x71   :  { %820 = vmatpush.msrb.mxu1 %v2920_v31  ;;  %841 = vmatpush.msrb.mxu2 %v2900_v9 }
  0x72   :  { %799 = vmatpush.msrb.mxu0 %v2926_v43  ;;  %861 = vmatpush.msrb.mxu3 %v2904_v10 }
  0x73   :  { %821 = vmatpush.msrb.mxu1 %v2928_v45  ;;  %842 = vmatpush.msrb.mxu2 %v2914_v27 }
  0x74   :  { %800 = vmatpush.msrb.mxu0 %v2932_v49  ;;  %862 = vmatpush.msrb.mxu3 %v3991_v46 }
  0x75   :  { %822 = vmatpush.msrb.mxu1 %v2934_v52 }
  0x76   :  { %801 = vmatpush.msrb.mxu0 %v2938_v28 }
  0x78   :  { %802 = vmatpush.msrb.mxu0 %v2944_v63 }
  0xa0   :  { %v145_v7 = vpop.f32.mrf.mxu1 }
  0xa1   :  { %v146_v11 = vadd.f32 %v145_v7, %v68_v5 }
  0xa2   :  { %v122_v16 = vpop.f32.mrf.mxu0 }
  0xa3   :  { %v205_v15 = vrot.slane %v146_v11, 6  ;;  %v123_v19 = vadd.f32 %v122_v16, %v67_v8 }
  0xa4   :  { %v168_v17 = vpop.f32.mrf.mxu2  ;;  %v191_v18 = vpop.f32.mrf.mxu3 }
  0xa5   :  { %v169_v20 = vadd.f32 %v168_v17, %v69_v12  ;;  %v192_v21 = vadd.f32 %v191_v18, %v70_v14  ;;  %v218_v22 = vsel %vm217_vm1, %v123_v19, %v205_v15  ;;  %v224_v23 = vsel %vm213_vm3, %v123_v19, %v205_v15 }
  0xa6   :  { %v228_v24 = vsel %vm219_vm2, %v205_v15, %v123_v19  ;;  %v212_v26 = vsel %vm211_vm4, %v123_v19, %v205_v15 }
  0xa7   :  { %v206_v25 = vrot.slane %v169_v20, 4  ;;  %v207_v29 = vrot.slane %v192_v21, 2 }
  0xa9   :  { %v220_v30 = vsel %vm219_vm2, %v207_v29, %v206_v25  ;;  %v225_v32 = vsel %vm211_vm4, %v206_v25, %v207_v29  ;;  %v229_v33 = vsel %vm217_vm1, %v206_v25, %v207_v29  ;;  %v214_v27 = vsel %vm213_vm3, %v206_v25, %v207_v29 }
  0xaa   :  { %v3084_v35 = vsel %vm221_vm6, %v218_v22, %v220_v30  ;;  %v3087_v36 = vsel %vm215_vm5, %v225_v32, %v224_v23  ;;  %v3090_v37 = vsel %vm221_vm6, %v229_v33, %v228_v24  ;;  %v216_v45 = vsel %vm215_vm5, %v212_v26, %v214_v27 }
  0xab   :  { %v148_v34 = vpop.f32.mrf.mxu1  ;;  %3992 = vst [vmem:[#allocation10_spill] sm:$0xff] %v3090_v37 }
  0xac   :  { %v149_v38 = vadd.f32 %v148_v34, %v68_v5  ;;  %v171_v39 = vpop.f32.mrf.mxu2 }
  0xad   :  { %v194_v40 = vpop.f32.mrf.mxu3  ;;  %v172_v42 = vadd.f32 %v171_v39, %v69_v12  ;;  %v125_v47 = vpop.f32.mrf.mxu0 }
  0xae   :  { %v208_v41 = vrot.slane %v149_v38, 6  ;;  %v195_v44 = vadd.f32 %v194_v40, %v70_v14  ;;  %v126_v48 = vadd.f32 %v125_v47, %v67_v8 }
  0xaf   :  { %v209_v50 = vrot.slane %v172_v42, 4 }
  0xb0   :  { %v210_v51 = vrot.slane %v195_v44, 2  ;;  %v232_v53 = vsel %vm211_vm4, %v126_v48, %v208_v41  ;;  %v235_v54 = vsel %vm217_vm1, %v126_v48, %v208_v41  ;;  %v239_v55 = vsel %vm213_vm3, %v126_v48, %v208_v41 }
  0xb1   :  { %v243_v56 = vsel %vm219_vm2, %v208_v41, %v126_v48 }
  0xb2   :  { %v233_v57 = vsel %vm213_vm3, %v209_v50, %v210_v51  ;;  %v236_v58 = vsel %vm219_vm2, %v210_v51, %v209_v50  ;;  %v240_v59 = vsel %vm211_vm4, %v209_v50, %v210_v51  ;;  %v244_v60 = vsel %vm217_vm1, %v209_v50, %v210_v51 }
  0xb3   :  { %v365_v61 = vpop.f32.mrf.mxu1  ;;  %v3101_v62 = vsel %vm215_vm5, %v232_v53, %v233_v57  ;;  %v3104_v0 = vsel %vm221_vm6, %v235_v54, %v236_v58  ;;  %v3107_v1 = vsel %vm215_vm5, %v240_v59, %v239_v55  ;;  %v3110_v2 = vsel %vm221_vm6, %v244_v60, %v243_v56 }
  0xb4   :  { %3993 = vst [vmem:[#allocation11_spill] sm:$0xff] %v3101_v62  ;;  %v412_v3 = vrot.slane %v365_v61, 6  ;;  %v385_v6 = vpop.f32.mrf.mxu2  ;;  %v3315_v62 = vld [vmem:[#allocation6 + $0x38] sm:$0xff] }
  0xb5   :  { %3994 = vst [vmem:[#allocation12_spill] sm:$0xff] %v3104_v0  ;;  %v405_v9 = vpop.f32.mrf.mxu3  ;;  %v413_v10 = vrot.slane %v385_v6, 4  ;;  %v3309_v0 = vld [vmem:[#allocation6 + $0x28] sm:$0xff] }
  0xb6   :  { %3995 = vst [vmem:[#allocation13_spill] sm:$0xff] %v3107_v1  ;;  %v414_v13 = vrot.slane %v405_v9, 2  ;;  %v345_v28 = vpop.f32.mrf.mxu0  ;;  %v3303_v1 = vld [vmem:[#allocation6 + $0x58] sm:$0xff] }
  0xb7   :  { %3996 = vst [vmem:[#allocation14_spill] sm:$0xff] %v3110_v2  ;;  %v415_v43 = vsel %vm211_vm4, %v345_v28, %v412_v3  ;;  %v3291_v2 = vld [vmem:[#allocation6 + $0x78] sm:$0xff] }
  0xb8   :  { %v416_v31 = vsel %vm213_vm3, %v413_v10, %v414_v13  ;;  %4012 = vst [vmem:[#allocation30_spill] sm:$0xff] %v3291_v2 }
  0xb9   :  { %v417_v49 = vsel %vm215_vm5, %v415_v43, %v416_v31  ;;  %4016 = vst [vmem:[#allocation34_spill] sm:$0xff] %v3303_v1 }
  0xba   :  { %v419_v52 = vadd.f32 %v417_v49, %v216_v45 }
  0xbc   :  { %v2435_v63 = vmul.f32 -1.442695, %v419_v52  ;;  %v440_v46 = vrot.slane %v419_v52, 2  ;;  %v464_v4 = vrot.slane %v419_v52, 6  ;;  %v461_v21 = vrot.slane %v419_v52, 4 }
  0xbe   :  { %2466 = vpow2.f32 %v2435_v63  ;;  %v2436_v5 = vmul.f32 -1.442695, %v440_v46  ;;  %v2437_v7 = vmul.f32 -1.442695, %v464_v4  ;;  %v223_v63 = vrot.slane %v3084_v35, 2 }
  0xc0   :  { %2468 = vpow2.f32 %v2436_v5 }
  0xc1   :  { %2470 = vpow2.f32 %v2437_v7 }
  0xc4   :  { %v2467_v8 = vpop.eup %2466 }
  0xc5   :  { %v423_v11 = vadd.f32 1.0, %v2467_v8 }
  0xc6   :  { %v2469_v12 = vpop.eup %2468 }
  0xc7   :  { %v2471_v14 = vpop.eup %2470  ;;  %2472 = vrcp.f32 %v423_v11  ;;  %v445_v15 = vadd.f32 1.0, %v2469_v12  ;;  %v435_v25 = vand.u32 2147483648, %v423_v11  ;;  %v433_v30 = vand.u32 2147483647, %v423_v11 }
  0xc8   :  { %v469_v16 = vadd.f32 1.0, %v2471_v14  ;;  %vm429_vm8 = vweird.f32 %v423_v11 }
  0xc9   :  { %2474 = vrcp.f32 %v445_v15  ;;  %v457_v34 = vand.u32 2147483648, %v445_v15  ;;  %v455_v39 = vand.u32 2147483647, %v445_v15  ;;  %v436_v41 = vor.u32 1.1754944e-38, %v435_v25 }
  0xca   :  { %2476 = vrcp.f32 %v469_v16  ;;  %vm434_vm11 = vcmp.eq.f32.partialorder %v433_v30, 8.507059e+37  ;;  %vm451_vm12 = vweird.f32 %v445_v15  ;;  %v481_v59 = vand.u32 2147483648, %v469_v16 }
  0xcb   :  { %2478 = vtanh.f32 %v461_v21  ;;  %v458_v48 = vor.u32 1.1754944e-38, %v457_v34  ;;  %vm456_vm14 = vcmp.eq.f32.partialorder %v455_v39, 8.507059e+37  ;;  %vm475_vm0 = vweird.f32 %v469_v16 }
  0xcc   :  { %v479_v60 = vand.u32 2147483647, %v469_v16  ;;  %v482_v3 = vor.u32 1.1754944e-38, %v481_v59 }
  0xcd   :  { %v2473_v17 = vpop.eup %2472 }
  0xce   :  { %v425_v18 = vmul.f32 %v2473_v17, %v423_v11  ;;  %vm430_vm7 = vweird.f32 %v2473_v17  ;;  %vm480_vm2 = vcmp.eq.f32.partialorder %v479_v60, 8.507059e+37 }
  0xcf   :  { %v2475_v19 = vpop.eup %2474  ;;  %vm431_vm9 = vmor %vm429_vm8, %vm430_vm7 }
  0xd0   :  { %v426_v20 = vsub.f32 1.0, %v425_v18  ;;  %v2477_v22 = vpop.eup %2476  ;;  %v447_v23 = vmul.f32 %v2475_v19, %v445_v15  ;;  %vm452_vm10 = vweird.f32 %v2475_v19 }
  0xd1   :  { %v471_v29 = vmul.f32 %v2477_v22, %v469_v16  ;;  %vm453_vm13 = vmor %vm451_vm12, %vm452_vm10  ;;  %v2479_v51 = vpop.eup %2478  ;;  %vm476_vm15 = vweird.f32 %v2477_v22 }
  0xd2   :  { %v427_v24 = vmul.f32 %v2473_v17, %v426_v20  ;;  %v448_v32 = vsub.f32 1.0, %v447_v23  ;;  %vm477_vm1 = vmor %vm475_vm0, %vm476_vm15 }
  0xd3   :  { %v472_v42 = vsub.f32 1.0, %v471_v29 }
  0xd4   :  { %v428_v33 = vadd.f32 %v2473_v17, %v427_v24  ;;  %v449_v38 = vmul.f32 %v2475_v19, %v448_v32 }
  0xd5   :  { %v473_v54 = vmul.f32 %v2477_v22, %v472_v42 }
  0xd6   :  { %v432_v40 = vsel %vm431_vm9, %v2473_v17, %v428_v33  ;;  %v450_v44 = vadd.f32 %v2475_v19, %v449_v38 }
  0xd7   :  { %v437_v47 = vsel %vm434_vm11, %v436_v41, %v432_v40  ;;  %v474_v58 = vadd.f32 %v2477_v22, %v473_v54 }
  0xd8   :  { %v454_v50 = vsel %vm453_vm13, %v2475_v19, %v450_v44  ;;  %v486_v55 = vmul.f32 %v2479_v51, %v437_v47 }
  0xd9   :  { %v459_v53 = vsel %vm456_vm14, %v458_v48, %v454_v50  ;;  %v478_v61 = vsel %vm477_vm1, %v2477_v22, %v474_v58 }
  0xda   :  { %v485_v56 = vmul.f32 0.0, %v459_v53  ;;  %v483_v9 = vsel %vm480_vm2, %v482_v3, %v478_v61 }
  0xdc   :  { %v3118_v57 = vadd.f32 %v486_v55, %v485_v56 }
  0xde   :  { %2480 = vtanh.f32 %v3118_v57 }
  0xe4   :  { %v2481_v6 = vpop.eup %2480 }
  0xe5   :  { %v489_v10 = vmul.f32 %v2481_v6, %v483_v9 }
  0xe7   :  { %490 = vst [vmem:[#allocation3] sm:$0x3] %v489_v10  ;;  %573 = vmatmul.f32.vlgmr.msra.gmra.mxu0 %v489_v10  ;;  %593 = vmatmul.f32.vlgmr.msra.gmra.mxu1 %v489_v10 }
  0xe8   :  { %613 = vmatmul.f32.vlgmr.msra.gmra.mxu2 %v489_v10  ;;  %633 = vmatmul.f32.vlgmr.msra.gmra.mxu3 %v489_v10 }
  0xee   :  { %v3121_v13 = vld [vmem:[#allocation3] sm:$0x3] }
  0xef   :  { %3997 = vst [vmem:[#allocation15_spill] sm:$0xff] %v3121_v13  ;;  %2117 = vrot.lane.b32.xlu1 %v3121_v13, %s2687_s3  ;;  %v3319_v13 = vld [vmem:[#allocation6] sm:$0xff] }
 0x164   :  { %v594_v26 = vpop.f32.mrf.mxu1  ;;  %v574_v49 = vpop.f32.mrf.mxu0 }
 0x165   :  { %v641_v27 = vrot.slane %v594_v26, 6 }
 0x167   :  { %v644_v52 = vsel %vm211_vm4, %v574_v49, %v641_v27  ;;  %v3138_v49 = vld [vmem:[#allocation6 + $0x1f0] sm:$0xff] }
 0x168   :  { %1057 = vmatpush.msra.mxu2 %v3138_v49 }
 0x16b   :  { %v614_v28 = vpop.f32.mrf.mxu2  ;;  %v634_v31 = vpop.f32.mrf.mxu3 }
 0x16c   :  { %v642_v43 = vrot.slane %v614_v28, 4  ;;  %v643_v45 = vrot.slane %v634_v31, 2 }
 0x16e   :  { %v645_v46 = vsel %vm213_vm3, %v642_v43, %v643_v45  ;;  %v3134_v43 = vld [vmem:[#allocation6 + $0x1e0] sm:$0xff]  ;;  %v3136_v45 = vld [vmem:[#allocation6 + $0x1e8] sm:$0xff] }
 0x16f   :  { %v646_v4 = vsel %vm215_vm5, %v644_v52, %v645_v46  ;;  %1017 = vmatpush.msra.mxu0 %v3134_v43  ;;  %1037 = vmatpush.msra.mxu1 %v3136_v45  ;;  %v3142_v52 = vld [vmem:[#allocation6 + $0x1f8] sm:$0xff]  ;;  %v3148_v46 = vld [vmem:[#allocation6 + $0x1c8] sm:$0xff] }
 0x170   :  { %v648_v5 = vadd.f32 %v646_v4, %v223_v63  ;;  %3998 = vst [vmem:[#allocation16_spill] sm:$0xff] %v3142_v52  ;;  %1077 = vmatpush.msra.mxu3 %v3142_v52  ;;  %v3146_v63 = vld [vmem:[#allocation6 + $0x1c0] sm:$0xff]  ;;  %v3150_v4 = vld [vmem:[#allocation6 + $0x1d0] sm:$0xff] }
 0x171   :  { %3999 = vst [vmem:[#allocation17_spill] sm:$0xff] %v3146_v63  ;;  %1018 = vmatpush.msra.mxu0 %v3146_v63  ;;  %1038 = vmatpush.msra.mxu1 %v3148_v46 }
 0x172   :  { %v2438_v7 = vmul.f32 -1.442695, %v648_v5  ;;  %v669_v8 = vrot.slane %v648_v5, 2  ;;  %v693_v11 = vrot.slane %v648_v5, 6  ;;  %v690_v23 = vrot.slane %v648_v5, 4  ;;  %4000 = vst [vmem:[#allocation18_spill] sm:$0xff] %v3150_v4  ;;  %1058 = vmatpush.msra.mxu2 %v3150_v4 }
 0x173   :  { %v3154_v5 = vld [vmem:[#allocation6 + $0x1d8] sm:$0xff] }
 0x174   :  { %2482 = vpow2.f32 %v2438_v7  ;;  %v2439_v12 = vmul.f32 -1.442695, %v669_v8  ;;  %v2440_v14 = vmul.f32 -1.442695, %v693_v11  ;;  %4001 = vst [vmem:[#allocation19_spill] sm:$0xff] %v3154_v5  ;;  %1078 = vmatpush.msra.mxu3 %v3154_v5  ;;  %v3158_v7 = vld [vmem:[#allocation6 + $0x1a0] sm:$0xff] }
 0x175   :  { %4002 = vst [vmem:[#allocation20_spill] sm:$0xff] %v3158_v7  ;;  %v3160_v8 = vld [vmem:[#allocation6 + $0x1a8] sm:$0xff]  ;;  %v3162_v11 = vld [vmem:[#allocation6 + $0x1b0] sm:$0xff]  ;;  %1019 = vmatpush.msra.mxu0 %v3158_v7 }
 0x176   :  { %2484 = vpow2.f32 %v2439_v12  ;;  %4003 = vst [vmem:[#allocation21_spill] sm:$0xff] %v3162_v11  ;;  %1039 = vmatpush.msra.mxu1 %v3160_v8  ;;  %v3166_v12 = vld [vmem:[#allocation6 + $0x1b8] sm:$0xff]  ;;  %1059 = vmatpush.msra.mxu2 %v3162_v11 }
 0x177   :  { %2486 = vpow2.f32 %v2440_v14  ;;  %4004 = vst [vmem:[#allocation22_spill] sm:$0xff] %v3166_v12  ;;  %1079 = vmatpush.msra.mxu3 %v3166_v12  ;;  %v3170_v14 = vld [vmem:[#allocation6 + $0x180] sm:$0xff] }
 0x178   :  { %1020 = vmatpush.msra.mxu0 %v3170_v14 }
 0x17a   :  { %v2483_v15 = vpop.eup %2482 }
 0x17b   :  { %v652_v16 = vadd.f32 1.0, %v2483_v15  ;;  %v3172_v15 = vld [vmem:[#allocation6 + $0x188] sm:$0xff] }
 0x17c   :  { %v2485_v17 = vpop.eup %2484  ;;  %4005 = vst [vmem:[#allocation23_spill] sm:$0xff] %v3172_v15  ;;  %1040 = vmatpush.msra.mxu1 %v3172_v15 }
 0x17d   :  { %v2487_v18 = vpop.eup %2486  ;;  %2488 = vrcp.f32 %v652_v16  ;;  %v674_v19 = vadd.f32 1.0, %v2485_v17  ;;  %v664_v30 = vand.u32 2147483648, %v652_v16  ;;  %v662_v38 = vand.u32 2147483647, %v652_v16  ;;  %v3178_v17 = vld [vmem:[#allocation6 + $0x198] sm:$0xff] }
 0x17e   :  { %v698_v35 = vadd.f32 1.0, %v2487_v18  ;;  %vm658_vm7 = vweird.f32 %v652_v16  ;;  %4006 = vst [vmem:[#allocation24_spill] sm:$0xff] %v3178_v17  ;;  %1080 = vmatpush.msra.mxu3 %v3178_v17  ;;  %v3182_v18 = vld [vmem:[#allocation6 + $0x160] sm:$0xff] }
 0x17f   :  { %2490 = vrcp.f32 %v674_v19  ;;  %v686_v39 = vand.u32 2147483648, %v674_v19  ;;  %v684_v42 = vand.u32 2147483647, %v674_v19  ;;  %v665_v44 = vor.u32 1.1754944e-38, %v664_v30  ;;  %4007 = vst [vmem:[#allocation25_spill] sm:$0xff] %v3182_v18  ;;  %1021 = vmatpush.msra.mxu0 %v3182_v18  ;;  %v3206_v30 = vld [vmem:[#allocation6 + $0x128] sm:$0xff] }
 0x180   :  { %2492 = vrcp.f32 %v698_v35  ;;  %vm663_vm10 = vcmp.eq.f32.partialorder %v662_v38, 8.507059e+37  ;;  %vm680_vm11 = vweird.f32 %v674_v19  ;;  %v710_v6 = vand.u32 2147483648, %v698_v35  ;;  %v3214_v38 = vld [vmem:[#allocation6 + $0x100] sm:$0xff] }
 0x181   :  { %2494 = vtanh.f32 %v690_v23  ;;  %v687_v53 = vor.u32 1.1754944e-38, %v686_v39  ;;  %vm685_vm13 = vcmp.eq.f32.partialorder %v684_v42, 8.507059e+37  ;;  %vm704_vm15 = vweird.f32 %v698_v35  ;;  %v3196_v23 = vld [vmem:[#allocation6 + $0x148] sm:$0xff]  ;;  %v3220_v42 = vld [vmem:[#allocation6 + $0x110] sm:$0xff] }
 0x182   :  { %v708_v9 = vand.u32 2147483647, %v698_v35  ;;  %v711_v26 = vor.u32 1.1754944e-38, %v710_v6  ;;  %4009 = vst [vmem:[#allocation27_spill] sm:$0xff] %v3196_v23 }
 0x183   :  { %v2489_v20 = vpop.eup %2488 }
 0x184   :  { %v654_v21 = vmul.f32 %v2489_v20, %v652_v16  ;;  %vm659_vm6 = vweird.f32 %v2489_v20  ;;  %vm709_vm1 = vcmp.eq.f32.partialorder %v708_v9, 8.507059e+37  ;;  %v3174_v16 = vld [vmem:[#allocation6 + $0x190] sm:$0xff] }
 0x185   :  { %v2491_v22 = vpop.eup %2490  ;;  %vm660_vm9 = vmor %vm658_vm7, %vm659_vm6  ;;  %1060 = vmatpush.msra.mxu2 %v3174_v16  ;;  %v3248_v9 = vld [vmem:[#allocation6 + $0xd0] sm:$0xff] }
 0x186   :  { %v2493_v24 = vpop.eup %2492  ;;  %v655_v25 = vsub.f32 1.0, %v654_v21  ;;  %v676_v29 = vmul.f32 %v2491_v22, %v674_v19  ;;  %vm681_vm8 = vweird.f32 %v2491_v22  ;;  %v3184_v19 = vld [vmem:[#allocation6 + $0x168] sm:$0xff]  ;;  %v3190_v21 = vld [vmem:[#allocation6 + $0x178] sm:$0xff] }
 0x187   :  { %v700_v32 = vmul.f32 %v2493_v24, %v698_v35  ;;  %vm682_vm12 = vmor %vm680_vm11, %vm681_vm8  ;;  %v2495_v55 = vpop.eup %2494  ;;  %vm705_vm14 = vweird.f32 %v2493_v24  ;;  %4008 = vst [vmem:[#allocation26_spill] sm:$0xff] %v3184_v19  ;;  %v3186_v35 = vld [vmem:[#allocation6 + $0x170] sm:$0xff]  ;;  %1041 = vmatpush.msra.mxu1 %v3184_v19  ;;  %1081 = vmatpush.msra.mxu3 %v3190_v21 }
 0x188   :  { %v677_v33 = vsub.f32 1.0, %v676_v29  ;;  %v656_v34 = vmul.f32 %v2489_v20, %v655_v25  ;;  %vm706_vm0 = vmor %vm704_vm15, %vm705_vm14  ;;  %1061 = vmatpush.msra.mxu2 %v3186_v35  ;;  %v3202_v25 = vld [vmem:[#allocation6 + $0x158] sm:$0xff]  ;;  %v3204_v29 = vld [vmem:[#allocation6 + $0x120] sm:$0xff] }
 0x189   :  { %v701_v47 = vsub.f32 1.0, %v700_v32  ;;  %1042 = vmatpush.msra.mxu1 %v3196_v23  ;;  %1082 = vmatpush.msra.mxu3 %v3202_v25 }
 0x18a   :  { %v657_v40 = vadd.f32 %v2489_v20, %v656_v34  ;;  %v678_v41 = vmul.f32 %v2491_v22, %v677_v33  ;;  %v3210_v33 = vld [vmem:[#allocation6 + $0x130] sm:$0xff]  ;;  %v3212_v34 = vld [vmem:[#allocation6 + $0x138] sm:$0xff] }
 0x18b   :  { %v702_v58 = vmul.f32 %v2493_v24, %v701_v47  ;;  %1043 = vmatpush.msra.mxu1 %v3206_v30  ;;  %1083 = vmatpush.msra.mxu3 %v3212_v34 }
 0x18c   :  { %v661_v48 = vsel %vm660_vm9, %v2489_v20, %v657_v40  ;;  %v679_v50 = vadd.f32 %v2491_v22, %v678_v41  ;;  %v3218_v41 = vld [vmem:[#allocation6 + $0x108] sm:$0xff] }
 0x18d   :  { %v666_v51 = vsel %vm663_vm10, %v665_v44, %v661_v48  ;;  %v703_v3 = vadd.f32 %v2493_v24, %v702_v58  ;;  %v3222_v44 = vld [vmem:[#allocation6 + $0x118] sm:$0xff]  ;;  %1044 = vmatpush.msra.mxu1 %v3218_v41  ;;  %v227_v58 = vrot.slane %v3087_v36, 4 }
 0x18e   :  { %v683_v54 = vsel %vm682_vm12, %v2491_v22, %v679_v50  ;;  %v715_v60 = vmul.f32 %v2495_v55, %v666_v51  ;;  %v3194_v22 = vld [vmem:[#allocation6 + $0x140] sm:$0xff]  ;;  %v3228_v51 = vld [vmem:[#allocation6 + $0xe8] sm:$0xff]  ;;  %v3234_v55 = vld [vmem:[#allocation6 + $0xf8] sm:$0xff]  ;;  %1084 = vmatpush.msra.mxu3 %v3222_v44 }
 0x18f   :  { %v688_v56 = vsel %vm685_vm13, %v687_v53, %v683_v54  ;;  %v707_v10 = vsel %vm706_vm0, %v2493_v24, %v703_v3  ;;  %v3198_v24 = vld [vmem:[#allocation6 + $0x150] sm:$0xff]  ;;  %1022 = vmatpush.msra.mxu0 %v3194_v22  ;;  %v3226_v50 = vld [vmem:[#allocation6 + $0xe0] sm:$0xff]  ;;  %v3243_v3 = vld [vmem:[#allocation6 + $0xc8] sm:$0xff]  ;;  %1045 = vmatpush.msra.mxu1 %v3228_v51 }
 0x190   :  { %v714_v59 = vmul.f32 %v688_v56, %v3118_v57  ;;  %v712_v28 = vsel %vm709_vm1, %v711_v26, %v707_v10  ;;  %1062 = vmatpush.msra.mxu2 %v3198_v24  ;;  %v3232_v54 = vld [vmem:[#allocation6 + $0xf0] sm:$0xff]  ;;  %v3250_v10 = vld [vmem:[#allocation6 + $0xd8] sm:$0xff]  ;;  %1085 = vmatpush.msra.mxu3 %v3234_v55  ;;  %v3256_v26 = vld [vmem:[#allocation6 + $0xa0] sm:$0xff]  ;;  %vm2149_vm1 = vcmask 254976  }
 0x191   :  { %1023 = vmatpush.msra.mxu0 %v3204_v29  ;;  %1046 = vmatpush.msra.mxu1 %v3243_v3 }
 0x192   :  { %v3130_v61 = vadd.f32 %v715_v60, %v714_v59  ;;  %1063 = vmatpush.msra.mxu2 %v3210_v33  ;;  %v3241_v60 = vld [vmem:[#allocation6 + $0xc0] sm:$0xff]  ;;  %1086 = vmatpush.msra.mxu3 %v3250_v10 }
 0x193   :  { %1024 = vmatpush.msra.mxu0 %v3214_v38 }
 0x194   :  { %2496 = vtanh.f32 %v3130_v61  ;;  %1064 = vmatpush.msra.mxu2 %v3220_v42 }
 0x195   :  { %1025 = vmatpush.msra.mxu0 %v3226_v50 }
 0x196   :  { %1065 = vmatpush.msra.mxu2 %v3232_v54 }
 0x197   :  { %1026 = vmatpush.msra.mxu0 %v3241_v60 }
 0x198   :  { %1066 = vmatpush.msra.mxu2 %v3248_v9 }
 0x199   :  { %1027 = vmatpush.msra.mxu0 %v3256_v26 }
 0x19a   :  { %v2497_v27 = vpop.eup %2496 }
 0x19b   :  { %v718_v31 = vmul.f32 %v2497_v27, %v712_v28  ;;  %v3258_v27 = vld [vmem:[#allocation6 + $0xa8] sm:$0xff]  ;;  %v3262_v28 = vld [vmem:[#allocation6 + $0xb0] sm:$0xff] }
 0x19c   :  { %1047 = vmatpush.msra.mxu1 %v3258_v27  ;;  %1067 = vmatpush.msra.mxu2 %v3262_v28 }
 0x19d   :  { %720 = vst [vmem:[#allocation3 + $0x2] sm:$0x3] %v718_v31  ;;  %803 = vmatmul.f32.vlgmr.msrb.gmra.mxu0 %v718_v31  ;;  %823 = vmatmul.f32.vlgmr.msrb.gmra.mxu1 %v718_v31 }
 0x19e   :  { %843 = vmatmul.f32.vlgmr.msrb.gmra.mxu2 %v718_v31  ;;  %863 = vmatmul.f32.vlgmr.msrb.gmra.mxu3 %v718_v31  ;;  %v3264_v31 = vld [vmem:[#allocation6 + $0xb8] sm:$0xff] }
 0x19f   :  { %1087 = vmatpush.msra.mxu3 %v3264_v31 }
 0x1a4   :  { %v2102_v57 = vld [vmem:[#allocation3 + $0x2] sm:$0x3] }
 0x1a5   :  { %2119 = vrot.lane.b32.xlu1 %v2102_v57, %s2687_s3 }
 0x21a   :  { %v824_v20 = vpop.f32.mrf.mxu1  ;;  %v804_v53 = vpop.f32.mrf.mxu0 }
 0x21b   :  { %v871_v32 = vrot.slane %v824_v20, 6 }
 0x21d   :  { %v874_v56 = vsel %vm211_vm4, %v804_v53, %v871_v32 }
 0x221   :  { %v844_v39 = vpop.f32.mrf.mxu2  ;;  %v864_v40 = vpop.f32.mrf.mxu3 }
 0x222   :  { %v872_v47 = vrot.slane %v844_v39, 4  ;;  %v873_v48 = vrot.slane %v864_v40, 2  ;;  %v3271_v39 = vld [vmem:[#allocation6 + $0x80] sm:$0xff]  ;;  %v3273_v40 = vld [vmem:[#allocation6 + $0x88] sm:$0xff] }
 0x223   :  { %1028 = vmatpush.msra.mxu0 %v3271_v39  ;;  %1048 = vmatpush.msra.mxu1 %v3273_v40 }
 0x224   :  { %v875_v59 = vsel %vm213_vm3, %v872_v47, %v873_v48  ;;  %v3277_v47 = vld [vmem:[#allocation6 + $0x90] sm:$0xff]  ;;  %v3279_v48 = vld [vmem:[#allocation6 + $0x98] sm:$0xff] }
 0x225   :  { %v876_v6 = vsel %vm215_vm5, %v874_v56, %v875_v59  ;;  %v3285_v59 = vld [vmem:[#allocation6 + $0x68] sm:$0xff]  ;;  %1068 = vmatpush.msra.mxu2 %v3277_v47  ;;  %1088 = vmatpush.msra.mxu3 %v3279_v48 }
 0x226   :  { %v3252_v36 = vadd.f32 %v876_v6, %v227_v58  ;;  %v3283_v58 = vld [vmem:[#allocation6 + $0x60] sm:$0xff]  ;;  %4010 = vst [vmem:[#allocation28_spill] sm:$0xff] %v3285_v59  ;;  %v3289_v6 = vld [vmem:[#allocation6 + $0x70] sm:$0xff]  ;;  %1049 = vmatpush.msra.mxu1 %v3285_v59 }
 0x227   :  { %4011 = vst [vmem:[#allocation29_spill] sm:$0xff] %v3289_v6  ;;  %1029 = vmatpush.msra.mxu0 %v3283_v58  ;;  %1069 = vmatpush.msra.mxu2 %v3289_v6 }
 0x228   :  { %v2441_v57 = vmul.f32 -1.442695, %v3252_v36  ;;  %v899_v20 = vrot.slane %v3252_v36, 2  ;;  %v923_v32 = vrot.slane %v3252_v36, 6  ;;  %1089 = vmatpush.msra.mxu3 %v3291_v2  ;;  %v3321_v2 = vld [vmem:[#allocation6 + $0x8] sm:$0xff] }
 0x22a   :  { %2498 = vpow2.f32 %v2441_v57  ;;  %v2442_v53 = vmul.f32 -1.442695, %v899_v20  ;;  %v2443_v56 = vmul.f32 -1.442695, %v923_v32  ;;  %v3295_v57 = vld [vmem:[#allocation6 + $0x40] sm:$0xff]  ;;  %v3297_v20 = vld [vmem:[#allocation6 + $0x48] sm:$0xff]  ;;  %1090 = vmatpush.msra.mxu3 %v3303_v1 }
 0x22b   :  { %4013 = vst [vmem:[#allocation31_spill] sm:$0xff] %v3295_v57  ;;  %v3301_v32 = vld [vmem:[#allocation6 + $0x50] sm:$0xff]  ;;  %1030 = vmatpush.msra.mxu0 %v3295_v57  ;;  %1050 = vmatpush.msra.mxu1 %v3297_v20  ;;  %v3329_v57 = vld [vmem:[#allocation6 + $0x18] sm:$0xff] }
 0x22c   :  { %2500 = vpow2.f32 %v2442_v53  ;;  %4014 = vst [vmem:[#allocation32_spill] sm:$0xff] %v3297_v20  ;;  %v3307_v53 = vld [vmem:[#allocation6 + $0x20] sm:$0xff]  ;;  %1070 = vmatpush.msra.mxu2 %v3301_v32  ;;  %v3327_v20 = vld [vmem:[#allocation6 + $0x10] sm:$0xff]  ;;  %1091 = vmatpush.msra.mxu3 %v3315_v62 }
 0x22d   :  { %2502 = vpow2.f32 %v2443_v56  ;;  %4015 = vst [vmem:[#allocation33_spill] sm:$0xff] %v3301_v32  ;;  %v3313_v56 = vld [vmem:[#allocation6 + $0x30] sm:$0xff]  ;;  %1031 = vmatpush.msra.mxu0 %v3307_v53  ;;  %1051 = vmatpush.msra.mxu1 %v3309_v0 }
 0x22e   :  { %1071 = vmatpush.msra.mxu2 %v3313_v56  ;;  %1092 = vmatpush.msra.mxu3 %v3329_v57 }
 0x22f   :  { %1032 = vmatpush.msra.mxu0 %v3319_v13  ;;  %1052 = vmatpush.msra.mxu1 %v3321_v2 }
 0x230   :  { %v2499_v37 = vpop.eup %2498  ;;  %1072 = vmatpush.msra.mxu2 %v3327_v20  ;;  %1307 = vmatpush.msrb.mxu3 %v3142_v52 }
 0x231   :  { %v3323_v6 = vadd.f32 1.0, %v2499_v37  ;;  %1247 = vmatpush.msrb.mxu0 %v3134_v43  ;;  %1267 = vmatpush.msrb.mxu1 %v3136_v45 }
 0x232   :  { %v2501_v59 = vpop.eup %2500  ;;  %1287 = vmatpush.msrb.mxu2 %v3138_v49  ;;  %1308 = vmatpush.msrb.mxu3 %v3154_v5 }
 0x233   :  { %v2503_v1 = vpop.eup %2502  ;;  %2504 = vrcp.f32 %v3323_v6  ;;  %v3334_v32 = vadd.f32 1.0, %v2501_v59  ;;  %1248 = vmatpush.msrb.mxu0 %v3146_v63  ;;  %1268 = vmatpush.msrb.mxu1 %v3148_v46  ;;  %v920_v63 = vrot.slane %v3252_v36, 4  ;;  %vm888_vm6 = vweird.f32 %v3323_v6 }
 0x234   :  { %v3338_v37 = vadd.f32 1.0, %v2503_v1  ;;  %1288 = vmatpush.msrb.mxu2 %v3150_v4  ;;  %1309 = vmatpush.msrb.mxu3 %v3166_v12 }
 0x235   :  { %2506 = vrcp.f32 %v3334_v32  ;;  %1249 = vmatpush.msrb.mxu0 %v3158_v7  ;;  %1269 = vmatpush.msrb.mxu1 %v3160_v8  ;;  %vm910_vm10 = vweird.f32 %v3334_v32 }
 0x236   :  { %2508 = vrcp.f32 %v3338_v37  ;;  %1289 = vmatpush.msrb.mxu2 %v3162_v11  ;;  %1310 = vmatpush.msrb.mxu3 %v3178_v17  ;;  %v894_v11 = vand.u32 2147483648, %v3323_v6  ;;  %v916_v17 = vand.u32 2147483648, %v3334_v32  ;;  %vm934_vm14 = vweird.f32 %v3338_v37 }
 0x237   :  { %1250 = vmatpush.msrb.mxu0 %v3170_v14  ;;  %1270 = vmatpush.msrb.mxu1 %v3172_v15  ;;  %2510 = vtanh.f32 %v920_v63 }
 0x238   :  { %1290 = vmatpush.msrb.mxu2 %v3174_v16  ;;  %1311 = vmatpush.msrb.mxu3 %v3190_v21  ;;  %v895_v63 = vor.u32 1.1754944e-38, %v894_v11 }
 0x239   :  { %v2505_v1 = vpop.eup %2504  ;;  %1251 = vmatpush.msrb.mxu0 %v3182_v18  ;;  %1271 = vmatpush.msrb.mxu1 %v3184_v19 }
 0x23a   :  { %v884_v59 = vmul.f32 %v2505_v1, %v3323_v6  ;;  %vm889_vm2 = vweird.f32 %v2505_v1  ;;  %1291 = vmatpush.msrb.mxu2 %v3186_v35  ;;  %1312 = vmatpush.msrb.mxu3 %v3202_v25 }
 0x23b   :  { %v2507_v52 = vpop.eup %2506  ;;  %1252 = vmatpush.msrb.mxu0 %v3194_v22  ;;  %1272 = vmatpush.msrb.mxu1 %v3196_v23  ;;  %vm890_vm8 = vmor %vm888_vm6, %vm889_vm2 }
 0x23c   :  { %v3360_v4 = vpop.eup %2508  ;;  %v885_v5 = vsub.f32 1.0, %v884_v59  ;;  %v906_v7 = vmul.f32 %v2507_v52, %v3334_v32  ;;  %v892_v59 = vand.u32 2147483647, %v3323_v6  ;;  %vm911_vm7 = vweird.f32 %v2507_v52  ;;  %1292 = vmatpush.msrb.mxu2 %v3198_v24  ;;  %1313 = vmatpush.msrb.mxu3 %v3212_v34 }
 0x23d   :  { %v930_v12 = vmul.f32 %v3360_v4, %v3338_v37  ;;  %1253 = vmatpush.msrb.mxu0 %v3204_v29  ;;  %1273 = vmatpush.msrb.mxu1 %v3206_v30  ;;  %vm912_vm11 = vmor %vm910_vm10, %vm911_vm7  ;;  %vm935_vm13 = vweird.f32 %v3360_v4 }
 0x23e   :  { %v907_v36 = vsub.f32 1.0, %v906_v7  ;;  %v886_v15 = vmul.f32 %v2505_v1, %v885_v5  ;;  %v914_v5 = vand.u32 2147483647, %v3334_v32  ;;  %vm893_vm9 = vcmp.eq.f32.partialorder %v892_v59, 8.507059e+37  ;;  %1293 = vmatpush.msrb.mxu2 %v3210_v33  ;;  %1314 = vmatpush.msrb.mxu3 %v3222_v44  ;;  %vm936_vm15 = vmor %vm934_vm14, %vm935_vm13 }
 0x23f   :  { %v931_v7 = vsub.f32 1.0, %v930_v12  ;;  %1254 = vmatpush.msrb.mxu0 %v3214_v38  ;;  %1274 = vmatpush.msrb.mxu1 %v3218_v41  ;;  %v2511_v12 = vpop.eup %2510 }
 0x240   :  { %v887_v18 = vadd.f32 %v2505_v1, %v886_v15  ;;  %v908_v19 = vmul.f32 %v2507_v52, %v907_v36  ;;  %v917_v36 = vor.u32 1.1754944e-38, %v916_v17  ;;  %vm915_vm12 = vcmp.eq.f32.partialorder %v914_v5, 8.507059e+37  ;;  %1294 = vmatpush.msrb.mxu2 %v3220_v42  ;;  %1315 = vmatpush.msrb.mxu3 %v3234_v55  ;;  %v4017_v5 = vld [vmem:[#allocation28_spill] sm:$0xff] }
 0x241   :  { %1255 = vmatpush.msrb.mxu0 %v3226_v50  ;;  %1275 = vmatpush.msrb.mxu1 %v3228_v51 }
 0x242   :  { %v891_v6 = vsel %vm890_vm8, %v2505_v1, %v887_v18  ;;  %v909_v23 = vadd.f32 %v2507_v52, %v908_v19  ;;  %v932_v19 = vmul.f32 %v3360_v4, %v931_v7  ;;  %1295 = vmatpush.msrb.mxu2 %v3232_v54  ;;  %1316 = vmatpush.msrb.mxu3 %v3250_v10  ;;  %v938_v1 = vand.u32 2147483647, %v3338_v37  ;;  %v4018_v7 = vld [vmem:[#allocation29_spill] sm:$0xff] }
 0x243   :  { %v896_v15 = vsel %vm893_vm9, %v895_v63, %v891_v6  ;;  %1256 = vmatpush.msrb.mxu0 %v3241_v60  ;;  %1276 = vmatpush.msrb.mxu1 %v3243_v3  ;;  %v4019_v6 = vld [vmem:[#allocation30_spill] sm:$0xff] }
 0x244   :  { %v913_v11 = vsel %vm912_vm11, %v2507_v52, %v909_v23  ;;  %v945_v32 = vmul.f32 %v2511_v12, %v896_v15  ;;  %1296 = vmatpush.msrb.mxu2 %v3248_v9  ;;  %v933_v23 = vadd.f32 %v3360_v4, %v932_v19  ;;  %1317 = vmatpush.msrb.mxu3 %v3264_v31  ;;  %vm939_vm0 = vcmp.eq.f32.partialorder %v938_v1, 8.507059e+37  ;;  %v4021_v15 = vld [vmem:[#allocation32_spill] sm:$0xff]  ;;  %v4022_v12 = vld [vmem:[#allocation33_spill] sm:$0xff] }
 0x245   :  { %v918_v18 = vsel %vm915_vm12, %v917_v36, %v913_v11  ;;  %1257 = vmatpush.msrb.mxu0 %v3256_v26  ;;  %1277 = vmatpush.msrb.mxu1 %v3258_v27  ;;  %v4024_v19 = vld [vmem:[#allocation16_spill] sm:$0xff] }
 0x246   :  { %v944_v17 = vmul.f32 %v918_v18, %v3130_v61  ;;  %v940_v61 = vand.u32 2147483648, %v3338_v37  ;;  %1297 = vmatpush.msrb.mxu2 %v3262_v28  ;;  %1318 = vmatpush.msrb.mxu3 %v3279_v48  ;;  %v937_v59 = vsel %vm936_vm15, %v3360_v4, %v933_v23  ;;  %v4020_v37 = vld [vmem:[#allocation31_spill] sm:$0xff]  ;;  %v4023_v18 = vld [vmem:[#allocation34_spill] sm:$0xff]  ;;  %v4028_v1 = vld [vmem:[#allocation20_spill] sm:$0xff] }
 0x247   :  { %1258 = vmatpush.msrb.mxu0 %v3271_v39  ;;  %1278 = vmatpush.msrb.mxu1 %v3273_v40  ;;  %v4026_v23 = vld [vmem:[#allocation18_spill] sm:$0xff] }
 0x248   :  { %v3399_v52 = vadd.f32 %v945_v32, %v944_v17  ;;  %1298 = vmatpush.msrb.mxu2 %v3277_v47  ;;  %v941_v63 = vor.u32 1.1754944e-38, %v940_v61  ;;  %1319 = vmatpush.msrb.mxu3 %v4019_v6  ;;  %v4025_v17 = vld [vmem:[#allocation17_spill] sm:$0xff]  ;;  %v4027_v61 = vld [vmem:[#allocation19_spill] sm:$0xff] }
 0x249   :  { %1259 = vmatpush.msrb.mxu0 %v3283_v58  ;;  %1279 = vmatpush.msrb.mxu1 %v4017_v5 }
 0x24a   :  { %2512 = vtanh.f32 %v3399_v52  ;;  %1299 = vmatpush.msrb.mxu2 %v4018_v7  ;;  %v942_v11 = vsel %vm939_vm0, %v941_v63, %v937_v59  ;;  %1320 = vmatpush.msrb.mxu3 %v4023_v18  ;;  %v4033_v59 = vld [vmem:[#allocation25_spill] sm:$0xff]  ;;  %v4034_v63 = vld [vmem:[#allocation26_spill] sm:$0xff] }
 0x24b   :  { %1260 = vmatpush.msrb.mxu0 %v4020_v37  ;;  %1280 = vmatpush.msrb.mxu1 %v4021_v15 }
 0x24c   :  { %1300 = vmatpush.msrb.mxu2 %v4022_v12  ;;  %1321 = vmatpush.msrb.mxu3 %v3315_v62 }
 0x24d   :  { %1261 = vmatpush.msrb.mxu0 %v3307_v53  ;;  %1281 = vmatpush.msrb.mxu1 %v3309_v0 }
 0x24e   :  { %1301 = vmatpush.msrb.mxu2 %v3313_v56  ;;  %1322 = vmatpush.msrb.mxu3 %v3329_v57 }
 0x24f   :  { %1262 = vmatpush.msrb.mxu0 %v3319_v13  ;;  %1282 = vmatpush.msrb.mxu1 %v3321_v2 }
 0x250   :  { %v2513_v36 = vpop.eup %2512  ;;  %1302 = vmatpush.msrb.mxu2 %v3327_v20 }
 0x251   :  { %v948_v4 = vmul.f32 %v2513_v36, %v942_v11 }
 0x253   :  { %950 = vst [vmem:[#allocation3 + $0x4] sm:$0x3] %v948_v4  ;;  %1033 = vmatmul.f32.vlgmr.msra.gmra.mxu0 %v948_v4  ;;  %1053 = vmatmul.f32.vlgmr.msra.gmra.mxu1 %v948_v4 }
 0x254   :  { %1073 = vmatmul.f32.vlgmr.msra.gmra.mxu2 %v948_v4  ;;  %1093 = vmatmul.f32.vlgmr.msra.gmra.mxu3 %v948_v4 }
 0x255   :  { %1477 = vmatpush.msra.mxu0 %v3134_v43  ;;  %1497 = vmatpush.msra.mxu1 %v3136_v45  ;;  %v4029_v43 = vld [vmem:[#allocation21_spill] sm:$0xff]  ;;  %v4030_v45 = vld [vmem:[#allocation22_spill] sm:$0xff] }
 0x256   :  { %1517 = vmatpush.msra.mxu2 %v3138_v49  ;;  %1537 = vmatpush.msra.mxu3 %v4024_v19  ;;  %v4031_v49 = vld [vmem:[#allocation23_spill] sm:$0xff] }
 0x257   :  { %1478 = vmatpush.msra.mxu0 %v4025_v17  ;;  %1498 = vmatpush.msra.mxu1 %v3148_v46  ;;  %v4032_v46 = vld [vmem:[#allocation24_spill] sm:$0xff] }
 0x258   :  { %1518 = vmatpush.msra.mxu2 %v4026_v23  ;;  %1538 = vmatpush.msra.mxu3 %v4027_v61 }
 0x259   :  { %1479 = vmatpush.msra.mxu0 %v4028_v1  ;;  %1499 = vmatpush.msra.mxu1 %v3160_v8  ;;  %v4035_v8 = vld [vmem:[#allocation27_spill] sm:$0xff] }
 0x25a   :  { %v2103_v32 = vld [vmem:[#allocation3 + $0x4] sm:$0x3]  ;;  %1519 = vmatpush.msra.mxu2 %v4029_v43  ;;  %1539 = vmatpush.msra.mxu3 %v4030_v45 }
 0x25b   :  { %2121 = vrot.lane.b32.xlu1 %v2103_v32, %s2687_s3  ;;  %1480 = vmatpush.msra.mxu0 %v3170_v14  ;;  %v2118_v14 = vpop.permute.xlu1 %2117 }
 0x25c   :  { %1500 = vmatpush.msra.mxu1 %v4031_v49  ;;  %1520 = vmatpush.msra.mxu2 %v3174_v16  ;;  %v4036_v16 = vld [vmem:[#allocation15_spill] sm:$0xff] }
 0x25d   :  { %1540 = vmatpush.msra.mxu3 %v4032_v46  ;;  %1481 = vmatpush.msra.mxu0 %v4033_v59 }
 0x25e   :  { %1501 = vmatpush.msra.mxu1 %v4034_v63  ;;  %1521 = vmatpush.msra.mxu2 %v3186_v35  ;;  %v3500_v35 = vmul.f32 %v2118_v14, %v4036_v16 }
 0x25f   :  { %1541 = vmatpush.msra.mxu3 %v3190_v21  ;;  %1482 = vmatpush.msra.mxu0 %v3194_v22 }
 0x260   :  { %1502 = vmatpush.msra.mxu1 %v4035_v8  ;;  %1522 = vmatpush.msra.mxu2 %v3198_v24  ;;  %4037 = vst [vmem:[#allocation28_spill] sm:$0xff] %v3500_v35 }
 0x261   :  { %1542 = vmatpush.msra.mxu3 %v3202_v25  ;;  %1483 = vmatpush.msra.mxu0 %v3204_v29 }
 0x262   :  { %1503 = vmatpush.msra.mxu1 %v3206_v30  ;;  %1523 = vmatpush.msra.mxu2 %v3210_v33  ;;  %v4038_v30 = vld [vmem:[#allocation10_spill] sm:$0xff] }
 0x263   :  { %1543 = vmatpush.msra.mxu3 %v3212_v34  ;;  %1484 = vmatpush.msra.mxu0 %v3214_v38  ;;  %v231_v33 = vrot.slane %v4038_v30, 6  ;;  %v4039_v30 = vld [vmem:[#allocation11_spill] sm:$0xff] }
 0x264   :  { %1504 = vmatpush.msra.mxu1 %v3218_v41  ;;  %1524 = vmatpush.msra.mxu2 %v3220_v42 }
 0x265   :  { %1544 = vmatpush.msra.mxu3 %v3222_v44  ;;  %1485 = vmatpush.msra.mxu0 %v3226_v50 }
 0x266   :  { %1505 = vmatpush.msra.mxu1 %v3228_v51  ;;  %1525 = vmatpush.msra.mxu2 %v3232_v54 }
 0x267   :  { %1545 = vmatpush.msra.mxu3 %v3234_v55  ;;  %1486 = vmatpush.msra.mxu0 %v3241_v60 }
 0x268   :  { %1506 = vmatpush.msra.mxu1 %v3243_v3  ;;  %1526 = vmatpush.msra.mxu2 %v3248_v9 }
 0x269   :  { %1546 = vmatpush.msra.mxu3 %v3250_v10  ;;  %1487 = vmatpush.msra.mxu0 %v3256_v26 }
 0x26a   :  { %1507 = vmatpush.msra.mxu1 %v3258_v27  ;;  %1527 = vmatpush.msra.mxu2 %v3262_v28 }
 0x26b   :  { %1547 = vmatpush.msra.mxu3 %v3264_v31  ;;  %1488 = vmatpush.msra.mxu0 %v3271_v39 }
 0x26c   :  { %1508 = vmatpush.msra.mxu1 %v3273_v40  ;;  %1528 = vmatpush.msra.mxu2 %v3277_v47 }
 0x26d   :  { %1548 = vmatpush.msra.mxu3 %v3279_v48  ;;  %1489 = vmatpush.msra.mxu0 %v3283_v58 }
 0x26e   :  { %1509 = vmatpush.msra.mxu1 %v4017_v5  ;;  %1529 = vmatpush.msra.mxu2 %v4018_v7 }
 0x26f   :  { %1549 = vmatpush.msra.mxu3 %v4019_v6  ;;  %1490 = vmatpush.msra.mxu0 %v4020_v37 }
 0x270   :  { %1510 = vmatpush.msra.mxu1 %v4021_v15  ;;  %1530 = vmatpush.msra.mxu2 %v4022_v12 }
 0x271   :  { %1550 = vmatpush.msra.mxu3 %v4023_v18  ;;  %1491 = vmatpush.msra.mxu0 %v3307_v53 }
 0x272   :  { %1511 = vmatpush.msra.mxu1 %v3309_v0  ;;  %1531 = vmatpush.msra.mxu2 %v3313_v56  ;;  %v2150_v0 = vsel %vm2149_vm1, %v3500_v35, -inf }
 0x273   :  { %1551 = vmatpush.msra.mxu3 %v3315_v62  ;;  %1492 = vmatpush.msra.mxu0 %v3319_v13 }
 0x274   :  { %1512 = vmatpush.msra.mxu1 %v3321_v2  ;;  %1532 = vmatpush.msra.mxu2 %v3327_v20 }
 0x275   :  { %1552 = vmatpush.msra.mxu3 %v3329_v57 }
 0x285   :  { %2151 = vmax.xlane.f32.xlu1 %v2150_v0 }
 0x2d0   :  { %v1054_v21 = vpop.f32.mrf.mxu1  ;;  %v1034_v2 = vpop.f32.mrf.mxu0 }
 0x2d1   :  { %v1101_v22 = vrot.slane %v1054_v21, 6 }
 0x2d3   :  { %v1104_v29 = vsel %vm211_vm4, %v1034_v2, %v1101_v22 }
 0x2d7   :  { %v1074_v62 = vpop.f32.mrf.mxu2  ;;  %v1094_v24 = vpop.f32.mrf.mxu3 }
 0x2d8   :  { %v1102_v13 = vrot.slane %v1074_v62, 4  ;;  %v1103_v25 = vrot.slane %v1094_v24, 2 }
 0x2da   :  { %v1105_v34 = vsel %vm213_vm3, %v1102_v13, %v1103_v25 }
 0x2db   :  { %v1106_v38 = vsel %vm215_vm5, %v1104_v29, %v1105_v34 }
 0x2dc   :  { %v1108_v41 = vadd.f32 %v1106_v38, %v231_v33 }
 0x2de   :  { %v2444_v42 = vmul.f32 -1.442695, %v1108_v41  ;;  %v1129_v44 = vrot.slane %v1108_v41, 2  ;;  %v1153_v50 = vrot.slane %v1108_v41, 6  ;;  %v1150_v39 = vrot.slane %v1108_v41, 4 }
 0x2e0   :  { %2514 = vpow2.f32 %v2444_v42  ;;  %v2445_v51 = vmul.f32 -1.442695, %v1129_v44  ;;  %v2446_v54 = vmul.f32 -1.442695, %v1153_v50 }
 0x2e2   :  { %2516 = vpow2.f32 %v2445_v51 }
 0x2e3   :  { %2518 = vpow2.f32 %v2446_v54 }
 0x2e6   :  { %v2515_v55 = vpop.eup %2514 }
 0x2e7   :  { %v1112_v60 = vadd.f32 1.0, %v2515_v55 }
 0x2e8   :  { %v2517_v3 = vpop.eup %2516 }
 0x2e9   :  { %v2519_v9 = vpop.eup %2518  ;;  %2520 = vrcp.f32 %v1112_v60  ;;  %v1134_v10 = vadd.f32 1.0, %v2517_v3  ;;  %v1124_v58 = vand.u32 2147483648, %v1112_v60  ;;  %v1122_v56 = vand.u32 2147483647, %v1112_v60 }
 0x2ea   :  { %v1158_v26 = vadd.f32 1.0, %v2519_v9  ;;  %vm1118_vm6 = vweird.f32 %v1112_v60 }
 0x2eb   :  { %2522 = vrcp.f32 %v1134_v10  ;;  %v1146_v5 = vand.u32 2147483648, %v1134_v10  ;;  %v1144_v37 = vand.u32 2147483647, %v1134_v10  ;;  %v1125_v15 = vor.u32 1.1754944e-38, %v1124_v58 }
 0x2ec   :  { %2524 = vrcp.f32 %v1158_v26  ;;  %vm1123_vm9 = vcmp.eq.f32.partialorder %v1122_v56, 8.507059e+37  ;;  %vm1140_vm10 = vweird.f32 %v1134_v10  ;;  %v1170_v49 = vand.u32 2147483648, %v1158_v26 }
 0x2ed   :  { %2526 = vtanh.f32 %v1150_v39  ;;  %v1147_v4 = vor.u32 1.1754944e-38, %v1146_v5  ;;  %vm1145_vm12 = vcmp.eq.f32.partialorder %v1144_v37, 8.507059e+37  ;;  %vm1164_vm14 = vweird.f32 %v1158_v26 }
 0x2ee   :  { %v1168_v46 = vand.u32 2147483647, %v1158_v26  ;;  %v1171_v63 = vor.u32 1.1754944e-38, %v1170_v49 }
 0x2ef   :  { %v2521_v27 = vpop.eup %2520 }
 0x2f0   :  { %v1114_v28 = vmul.f32 %v2521_v27, %v1112_v60  ;;  %vm1119_vm2 = vweird.f32 %v2521_v27  ;;  %vm1169_vm0 = vcmp.eq.f32.partialorder %v1168_v46, 8.507059e+37 }
 0x2f1   :  { %v2523_v31 = vpop.eup %2522  ;;  %vm1120_vm8 = vmor %vm1118_vm6, %vm1119_vm2 }
 0x2f2   :  { %v2525_v40 = vpop.eup %2524  ;;  %v1115_v47 = vsub.f32 1.0, %v1114_v28  ;;  %v1136_v48 = vmul.f32 %v2523_v31, %v1134_v10  ;;  %vm1141_vm7 = vweird.f32 %v2523_v31 }
 0x2f3   :  { %v1160_v57 = vmul.f32 %v2525_v40, %v1158_v26  ;;  %vm1142_vm11 = vmor %vm1140_vm10, %vm1141_vm7  ;;  %v2527_v17 = vpop.eup %2526  ;;  %vm1165_vm13 = vweird.f32 %v2525_v40 }
 0x2f4   :  { %v1137_v20 = vsub.f32 1.0, %v1136_v48  ;;  %v1116_v53 = vmul.f32 %v2521_v27, %v1115_v47  ;;  %vm1166_vm15 = vmor %vm1164_vm14, %vm1165_vm13 }
 0x2f5   :  { %v1161_v36 = vsub.f32 1.0, %v1160_v57 }
 0x2f6   :  { %v1117_v7 = vadd.f32 %v2521_v27, %v1116_v53  ;;  %v1138_v6 = vmul.f32 %v2523_v31, %v1137_v20 }
 0x2f7   :  { %v1162_v23 = vmul.f32 %v2525_v40, %v1161_v36 }
 0x2f8   :  { %v1121_v11 = vsel %vm1120_vm8, %v2521_v27, %v1117_v7  ;;  %v1139_v12 = vadd.f32 %v2523_v31, %v1138_v6 }
 0x2f9   :  { %v1126_v18 = vsel %vm1123_vm9, %v1125_v15, %v1121_v11  ;;  %v1163_v45 = vadd.f32 %v2525_v40, %v1162_v23 }
 0x2fa   :  { %v1143_v19 = vsel %vm1142_vm11, %v2523_v31, %v1139_v12  ;;  %v1175_v1 = vmul.f32 %v2527_v17, %v1126_v18 }
 0x2fb   :  { %v1148_v32 = vsel %vm1145_vm12, %v1147_v4, %v1143_v19  ;;  %v1167_v59 = vsel %vm1166_vm15, %v2525_v40, %v1163_v45 }
 0x2fc   :  { %v1174_v61 = vmul.f32 %v1148_v32, %v3399_v52  ;;  %v1172_v14 = vsel %vm1169_vm0, %v1171_v63, %v1167_v59 }
 0x2fe   :  { %v3509_v43 = vadd.f32 %v1175_v1, %v1174_v61 }
 0x300   :  { %2528 = vtanh.f32 %v3509_v43 }
 0x306   :  { %v2529_v8 = vpop.eup %2528 }
 0x307   :  { %v1178_v16 = vmul.f32 %v2529_v8, %v1172_v14  ;;  %v3524_v14 = vld [vmem:[#allocation6 + $0x1e0] sm:$0xff] }
 0x309   :  { %1180 = vst [vmem:[#allocation3 + $0x6] sm:$0x3] %v1178_v16  ;;  %1263 = vmatmul.f32.vlgmr.msrb.gmra.mxu0 %v1178_v16  ;;  %1283 = vmatmul.f32.vlgmr.msrb.gmra.mxu1 %v1178_v16 }
 0x30a   :  { %1303 = vmatmul.f32.vlgmr.msrb.gmra.mxu2 %v1178_v16  ;;  %1323 = vmatmul.f32.vlgmr.msrb.gmra.mxu3 %v1178_v16  ;;  %v3526_v16 = vld [vmem:[#allocation6 + $0x1e8] sm:$0xff] }
 0x30b   :  { %1707 = vmatpush.msrb.mxu0 %v3524_v14  ;;  %1727 = vmatpush.msrb.mxu1 %v3526_v16 }
 0x386   :  { %v1284_v52 = vpop.f32.mrf.mxu1  ;;  %v1264_v13 = vpop.f32.mrf.mxu0 }
 0x387   :  { %v1331_v0 = vrot.slane %v1284_v52, 6  ;;  %v3528_v52 = vld [vmem:[#allocation6 + $0x1f0] sm:$0xff] }
 0x388   :  { %1747 = vmatpush.msrb.mxu2 %v3528_v52 }
 0x389   :  { %v1334_v25 = vsel %vm211_vm4, %v1264_v13, %v1331_v0  ;;  %v3532_v0 = vld [vmem:[#allocation6 + $0x1f8] sm:$0xff]  ;;  %v3548_v13 = vld [vmem:[#allocation6 + $0x1a0] sm:$0xff] }
 0x38a   :  { %1767 = vmatpush.msrb.mxu3 %v3532_v0 }
 0x38d   :  { %v1304_v21 = vpop.f32.mrf.mxu2  ;;  %v1324_v22 = vpop.f32.mrf.mxu3 }
 0x38e   :  { %v1332_v62 = vrot.slane %v1304_v21, 4  ;;  %v1333_v24 = vrot.slane %v1324_v22, 2  ;;  %v3536_v21 = vld [vmem:[#allocation6 + $0x1c0] sm:$0xff]  ;;  %v3538_v22 = vld [vmem:[#allocation6 + $0x1c8] sm:$0xff] }
 0x38f   :  { %1708 = vmatpush.msrb.mxu0 %v3536_v21  ;;  %1728 = vmatpush.msrb.mxu1 %v3538_v22 }
 0x390   :  { %v1335_v2 = vsel %vm213_vm3, %v1332_v62, %v1333_v24  ;;  %v3540_v62 = vld [vmem:[#allocation6 + $0x1d0] sm:$0xff]  ;;  %v3544_v24 = vld [vmem:[#allocation6 + $0x1d8] sm:$0xff] }
 0x391   :  { %v1336_v29 = vsel %vm215_vm5, %v1334_v25, %v1335_v2  ;;  %1748 = vmatpush.msrb.mxu2 %v3540_v62  ;;  %1768 = vmatpush.msrb.mxu3 %v3544_v24  ;;  %v3550_v25 = vld [vmem:[#allocation6 + $0x1a8] sm:$0xff]  ;;  %v3552_v2 = vld [vmem:[#allocation6 + $0x1b0] sm:$0xff] }
 0x392   :  { %v1338_v33 = vadd.f32 %v1336_v29, %v4039_v30  ;;  %1709 = vmatpush.msrb.mxu0 %v3548_v13  ;;  %1729 = vmatpush.msrb.mxu1 %v3550_v25  ;;  %v3556_v29 = vld [vmem:[#allocation6 + $0x1b8] sm:$0xff]  ;;  %v3560_v30 = vld [vmem:[#allocation6 + $0x180] sm:$0xff] }
 0x393   :  { %1749 = vmatpush.msrb.mxu2 %v3552_v2  ;;  %1769 = vmatpush.msrb.mxu3 %v3556_v29 }
 0x394   :  { %v2447_v34 = vmul.f32 -1.442695, %v1338_v33  ;;  %v1359_v38 = vrot.slane %v1338_v33, 2  ;;  %v1383_v41 = vrot.slane %v1338_v33, 6  ;;  %v1380_v27 = vrot.slane %v1338_v33, 4  ;;  %v3562_v33 = vld [vmem:[#allocation6 + $0x188] sm:$0xff]  ;;  %1710 = vmatpush.msrb.mxu0 %v3560_v30 }
 0x395   :  { %1730 = vmatpush.msrb.mxu1 %v3562_v33 }
 0x396   :  { %2530 = vpow2.f32 %v2447_v34  ;;  %v2448_v42 = vmul.f32 -1.442695, %v1359_v38  ;;  %v2449_v44 = vmul.f32 -1.442695, %v1383_v41  ;;  %v3564_v34 = vld [vmem:[#allocation6 + $0x190] sm:$0xff]  ;;  %v3568_v38 = vld [vmem:[#allocation6 + $0x198] sm:$0xff] }
 0x397   :  { %1750 = vmatpush.msrb.mxu2 %v3564_v34  ;;  %1770 = vmatpush.msrb.mxu3 %v3568_v38  ;;  %v3572_v41 = vld [vmem:[#allocation6 + $0x160] sm:$0xff] }
 0x398   :  { %2532 = vpow2.f32 %v2448_v42  ;;  %v3574_v42 = vld [vmem:[#allocation6 + $0x168] sm:$0xff]  ;;  %1711 = vmatpush.msrb.mxu0 %v3572_v41 }
 0x399   :  { %2534 = vpow2.f32 %v2449_v44  ;;  %v3576_v44 = vld [vmem:[#allocation6 + $0x170] sm:$0xff]  ;;  %1731 = vmatpush.msrb.mxu1 %v3574_v42 }
 0x39a   :  { %1751 = vmatpush.msrb.mxu2 %v3576_v44 }
 0x39c   :  { %v2531_v50 = vpop.eup %2530 }
 0x39d   :  { %v1342_v51 = vadd.f32 1.0, %v2531_v50 }
 0x39e   :  { %v2533_v54 = vpop.eup %2532 }
 0x39f   :  { %v2535_v55 = vpop.eup %2534  ;;  %2536 = vrcp.f32 %v1342_v51  ;;  %v1364_v60 = vadd.f32 1.0, %v2533_v54  ;;  %v1354_v40 = vand.u32 2147483648, %v1342_v51  ;;  %v1352_v57 = vand.u32 2147483647, %v1342_v51  ;;  %v3584_v54 = vld [vmem:[#allocation6 + $0x140] sm:$0xff] }
 0x3a0   :  { %v1388_v3 = vadd.f32 1.0, %v2535_v55  ;;  %vm1348_vm6 = vweird.f32 %v1342_v51  ;;  %v3586_v55 = vld [vmem:[#allocation6 + $0x148] sm:$0xff]  ;;  %1712 = vmatpush.msrb.mxu0 %v3584_v54 }
 0x3a1   :  { %2538 = vrcp.f32 %v1364_v60  ;;  %v1376_v20 = vand.u32 2147483648, %v1364_v60  ;;  %v1374_v5 = vand.u32 2147483647, %v1364_v60  ;;  %v1355_v7 = vor.u32 1.1754944e-38, %v1354_v40  ;;  %1732 = vmatpush.msrb.mxu1 %v3586_v55 }
 0x3a2   :  { %2540 = vrcp.f32 %v1388_v3  ;;  %vm1353_vm9 = vcmp.eq.f32.partialorder %v1352_v57, 8.507059e+37  ;;  %vm1370_vm10 = vweird.f32 %v1364_v60  ;;  %v1400_v1 = vand.u32 2147483648, %v1388_v3 }
 0x3a3   :  { %2542 = vtanh.f32 %v1380_v27  ;;  %v1377_v11 = vor.u32 1.1754944e-38, %v1376_v20  ;;  %vm1375_vm12 = vcmp.eq.f32.partialorder %v1374_v5, 8.507059e+37  ;;  %vm1394_vm14 = vweird.f32 %v1388_v3  ;;  %v3600_v27 = vld [vmem:[#allocation6 + $0x130] sm:$0xff] }
 0x3a4   :  { %v1398_v45 = vand.u32 2147483647, %v1388_v3  ;;  %v1401_v46 = vor.u32 1.1754944e-38, %v1400_v1  ;;  %v3648_v1 = vld [vmem:[#allocation6 + $0xa8] sm:$0xff] }
 0x3a5   :  { %v2537_v9 = vpop.eup %2536 }
 0x3a6   :  { %v1344_v10 = vmul.f32 %v2537_v9, %v1342_v51  ;;  %vm1349_vm2 = vweird.f32 %v2537_v9  ;;  %vm1399_vm0 = vcmp.eq.f32.partialorder %v1398_v45, 8.507059e+37  ;;  %v3580_v51 = vld [vmem:[#allocation6 + $0x178] sm:$0xff]  ;;  %v3652_v45 = vld [vmem:[#allocation6 + $0xb0] sm:$0xff] }
 0x3a7   :  { %v2539_v26 = vpop.eup %2538  ;;  %vm1350_vm8 = vmor %vm1348_vm6, %vm1349_vm2  ;;  %1771 = vmatpush.msrb.mxu3 %v3580_v51 }
 0x3a8   :  { %v2541_v28 = vpop.eup %2540  ;;  %v1345_v31 = vsub.f32 1.0, %v1344_v10  ;;  %v1366_v39 = vmul.f32 %v2539_v26, %v1364_v60  ;;  %vm1371_vm7 = vweird.f32 %v2539_v26  ;;  %v3588_v60 = vld [vmem:[#allocation6 + $0x150] sm:$0xff]  ;;  %v3596_v10 = vld [vmem:[#allocation6 + $0x128] sm:$0xff] }
 0x3a9   :  { %v1390_v47 = vmul.f32 %v2541_v28, %v1388_v3  ;;  %vm1372_vm11 = vmor %vm1370_vm10, %vm1371_vm7  ;;  %v2543_v18 = vpop.eup %2542  ;;  %vm1395_vm13 = vweird.f32 %v2541_v28  ;;  %v3592_v3 = vld [vmem:[#allocation6 + $0x158] sm:$0xff]  ;;  %1752 = vmatpush.msrb.mxu2 %v3588_v60  ;;  %1733 = vmatpush.msrb.mxu1 %v3596_v10 }
 0x3aa   :  { %v1367_v48 = vsub.f32 1.0, %v1366_v39  ;;  %v1346_v58 = vmul.f32 %v2537_v9, %v1345_v31  ;;  %vm1396_vm15 = vmor %vm1394_vm14, %vm1395_vm13  ;;  %1772 = vmatpush.msrb.mxu3 %v3592_v3  ;;  %v3604_v31 = vld [vmem:[#allocation6 + $0x100] sm:$0xff] }
 0x3ab   :  { %v1391_v6 = vsub.f32 1.0, %v1390_v47  ;;  %v3608_v47 = vld [vmem:[#allocation6 + $0x108] sm:$0xff]  ;;  %1753 = vmatpush.msrb.mxu2 %v3600_v27 }
 0x3ac   :  { %v1347_v53 = vadd.f32 %v2537_v9, %v1346_v58  ;;  %v1368_v56 = vmul.f32 %v2539_v26, %v1367_v48  ;;  %v3610_v48 = vld [vmem:[#allocation6 + $0x110] sm:$0xff]  ;;  %v3612_v58 = vld [vmem:[#allocation6 + $0x118] sm:$0xff]  ;;  %1734 = vmatpush.msrb.mxu1 %v3608_v47 }
 0x3ad   :  { %v1392_v19 = vmul.f32 %v2541_v28, %v1391_v6  ;;  %v3624_v6 = vld [vmem:[#allocation6 + $0xf8] sm:$0xff]  ;;  %1754 = vmatpush.msrb.mxu2 %v3610_v48 }
 0x3ae   :  { %v1351_v37 = vsel %vm1350_vm8, %v2537_v9, %v1347_v53  ;;  %v1369_v15 = vadd.f32 %v2539_v26, %v1368_v56  ;;  %v3594_v9 = vld [vmem:[#allocation6 + $0x120] sm:$0xff]  ;;  %v3618_v56 = vld [vmem:[#allocation6 + $0xe8] sm:$0xff] }
 0x3af   :  { %v1356_v36 = vsel %vm1353_vm9, %v1355_v7, %v1351_v37  ;;  %v1393_v61 = vadd.f32 %v2541_v28, %v1392_v19  ;;  %1713 = vmatpush.msrb.mxu0 %v3594_v9  ;;  %v3616_v53 = vld [vmem:[#allocation6 + $0xe0] sm:$0xff]  ;;  %v3622_v7 = vld [vmem:[#allocation6 + $0xf0] sm:$0xff]  ;;  %1735 = vmatpush.msrb.mxu1 %v3618_v56 }
 0x3b0   :  { %v1373_v12 = vsel %vm1372_vm11, %v2539_v26, %v1369_v15  ;;  %v1405_v32 = vmul.f32 %v2543_v18, %v1356_v36  ;;  %v4041_v15 = vld [vmem:[#allocation12_spill] sm:$0xff]  ;;  %v3633_v18 = vld [vmem:[#allocation6 + $0xc8] sm:$0xff]  ;;  %1755 = vmatpush.msrb.mxu2 %v3622_v7 }
 0x3b1   :  { %v1378_v4 = vsel %vm1375_vm12, %v1377_v11, %v1373_v12  ;;  %v1397_v49 = vsel %vm1396_vm15, %v2541_v28, %v1393_v61  ;;  %v3602_v28 = vld [vmem:[#allocation6 + $0x138] sm:$0xff]  ;;  %1714 = vmatpush.msrb.mxu0 %v3604_v31  ;;  %v238_v36 = vrot.slane %v4041_v15, 2  ;;  %v3631_v12 = vld [vmem:[#allocation6 + $0xc0] sm:$0xff]  ;;  %v3638_v19 = vld [vmem:[#allocation6 + $0xd0] sm:$0xff]  ;;  %1736 = vmatpush.msrb.mxu1 %v3633_v18 }
 0x3b2   :  { %v1404_v17 = vmul.f32 %v1378_v4, %v3509_v43  ;;  %v1402_v63 = vsel %vm1399_vm0, %v1401_v46, %v1397_v49  ;;  %1773 = vmatpush.msrb.mxu3 %v3602_v28  ;;  %v3646_v61 = vld [vmem:[#allocation6 + $0xa0] sm:$0xff]  ;;  %v3654_v49 = vld [vmem:[#allocation6 + $0xb8] sm:$0xff]  ;;  %1756 = vmatpush.msrb.mxu2 %v3638_v19 }
 0x3b3   :  { %1715 = vmatpush.msrb.mxu0 %v3616_v53  ;;  %1737 = vmatpush.msrb.mxu1 %v3648_v1  ;;  %v3681_v15 = vld [vmem:[#allocation6 + $0x78] sm:$0xff] }
 0x3b4   :  { %v3517_v23 = vadd.f32 %v1405_v32, %v1404_v17  ;;  %1774 = vmatpush.msrb.mxu3 %v3612_v58  ;;  %v3640_v17 = vld [vmem:[#allocation6 + $0xd8] sm:$0xff]  ;;  %1757 = vmatpush.msrb.mxu2 %v3652_v45  ;;  %4044 = vst [vmem:[#allocation32_spill] sm:$0xff] %v3681_v15 }
 0x3b5   :  { %1716 = vmatpush.msrb.mxu0 %v3631_v12 }
 0x3b6   :  { %2544 = vtanh.f32 %v3517_v23  ;;  %1775 = vmatpush.msrb.mxu3 %v3624_v6 }
 0x3b7   :  { %1717 = vmatpush.msrb.mxu0 %v3646_v61 }
 0x3b8   :  { %1776 = vmatpush.msrb.mxu3 %v3640_v17 }
 0x3ba   :  { %1777 = vmatpush.msrb.mxu3 %v3654_v49 }
 0x3bc   :  { %v2545_v59 = vpop.eup %2544 }
 0x3bd   :  { %v1408_v8 = vmul.f32 %v2545_v59, %v1402_v63 }
 0x3bf   :  { %1410 = vst [vmem:[#allocation3 + $0x8] sm:$0x3] %v1408_v8  ;;  %1493 = vmatmul.f32.vlgmr.msra.gmra.mxu0 %v1408_v8  ;;  %1513 = vmatmul.f32.vlgmr.msra.gmra.mxu1 %v1408_v8 }
 0x3c0   :  { %1533 = vmatmul.f32.vlgmr.msra.gmra.mxu2 %v1408_v8  ;;  %1553 = vmatmul.f32.vlgmr.msra.gmra.mxu3 %v1408_v8  ;;  %v3661_v8 = vld [vmem:[#allocation6 + $0x80] sm:$0xff] }
 0x3c1   :  { %1718 = vmatpush.msrb.mxu0 %v3661_v8 }
 0x3c6   :  { %v3520_v43 = vld [vmem:[#allocation3 + $0x8] sm:$0x3] }
 0x3c7   :  { %4040 = vst [vmem:[#allocation29_spill] sm:$0xff] %v3520_v43  ;;  %2125 = vrot.lane.b32.xlu0 %v3520_v43, %s2687_s3  ;;  %v3709_v43 = vld [vmem:[#allocation6] sm:$0xff] }
 0x43c   :  { %v1514_v50 = vpop.f32.mrf.mxu1  ;;  %v1494_v5 = vpop.f32.mrf.mxu0 }
 0x43d   :  { %v1561_v26 = vrot.slane %v1514_v50, 6  ;;  %v3663_v50 = vld [vmem:[#allocation6 + $0x88] sm:$0xff] }
 0x43e   :  { %1738 = vmatpush.msrb.mxu1 %v3663_v50 }
 0x43f   :  { %v1564_v37 = vsel %vm211_vm4, %v1494_v5, %v1561_v26  ;;  %v3667_v26 = vld [vmem:[#allocation6 + $0x90] sm:$0xff]  ;;  %v3675_v5 = vld [vmem:[#allocation6 + $0x68] sm:$0xff] }
 0x440   :  { %4042 = vst [vmem:[#allocation30_spill] sm:$0xff] %v3675_v5  ;;  %1758 = vmatpush.msrb.mxu2 %v3667_v26  ;;  %1739 = vmatpush.msrb.mxu1 %v3675_v5 }
 0x443   :  { %v1534_v39 = vpop.f32.mrf.mxu2  ;;  %v1554_v40 = vpop.f32.mrf.mxu3 }
 0x444   :  { %v1562_v57 = vrot.slane %v1534_v39, 4  ;;  %v1563_v20 = vrot.slane %v1554_v40, 2  ;;  %v3669_v39 = vld [vmem:[#allocation6 + $0x98] sm:$0xff] }
 0x445   :  { %1778 = vmatpush.msrb.mxu3 %v3669_v39 }
 0x446   :  { %v1565_v11 = vsel %vm213_vm3, %v1562_v57, %v1563_v20  ;;  %v3673_v20 = vld [vmem:[#allocation6 + $0x60] sm:$0xff] }
 0x447   :  { %v1566_v4 = vsel %vm215_vm5, %v1564_v37, %v1565_v11  ;;  %v3679_v37 = vld [vmem:[#allocation6 + $0x70] sm:$0xff]  ;;  %v3687_v11 = vld [vmem:[#allocation6 + $0x48] sm:$0xff]  ;;  %1719 = vmatpush.msrb.mxu0 %v3673_v20  ;;  %1779 = vmatpush.msrb.mxu3 %v3681_v15 }
 0x448   :  { %v3642_v32 = vadd.f32 %v1566_v4, %v238_v36  ;;  %4043 = vst [vmem:[#allocation31_spill] sm:$0xff] %v3679_v37  ;;  %v3685_v36 = vld [vmem:[#allocation6 + $0x40] sm:$0xff]  ;;  %v3691_v4 = vld [vmem:[#allocation6 + $0x50] sm:$0xff]  ;;  %1759 = vmatpush.msrb.mxu2 %v3679_v37  ;;  %1740 = vmatpush.msrb.mxu1 %v3687_v11  ;;  %v3711_v15 = vld [vmem:[#allocation6 + $0x8] sm:$0xff] }
 0x449   :  { %4045 = vst [vmem:[#allocation33_spill] sm:$0xff] %v3685_v36  ;;  %1720 = vmatpush.msrb.mxu0 %v3685_v36  ;;  %v3719_v36 = vld [vmem:[#allocation6 + $0x18] sm:$0xff] }
 0x44a   :  { %v2450_v46 = vmul.f32 -1.442695, %v3642_v32  ;;  %v1589_v59 = vrot.slane %v3642_v32, 2  ;;  %v1613_v63 = vrot.slane %v3642_v32, 6  ;;  %4046 = vst [vmem:[#allocation34_spill] sm:$0xff] %v3687_v11  ;;  %1760 = vmatpush.msrb.mxu2 %v3691_v4  ;;  %v3717_v11 = vld [vmem:[#allocation6 + $0x10] sm:$0xff] }
 0x44b   :  { %4047 = vst [vmem:[#allocation16_spill] sm:$0xff] %v3691_v4 }
 0x44c   :  { %2546 = vpow2.f32 %v2450_v46  ;;  %v2451_v40 = vmul.f32 -1.442695, %v1589_v59  ;;  %v2452_v57 = vmul.f32 -1.442695, %v1613_v63  ;;  %v3693_v46 = vld [vmem:[#allocation6 + $0x58] sm:$0xff]  ;;  %v3697_v59 = vld [vmem:[#allocation6 + $0x20] sm:$0xff] }
 0x44d   :  { %4048 = vst [vmem:[#allocation17_spill] sm:$0xff] %v3693_v46  ;;  %v3699_v63 = vld [vmem:[#allocation6 + $0x28] sm:$0xff]  ;;  %1780 = vmatpush.msrb.mxu3 %v3693_v46  ;;  %1721 = vmatpush.msrb.mxu0 %v3697_v59 }
 0x44e   :  { %2548 = vpow2.f32 %v2451_v40  ;;  %v3703_v40 = vld [vmem:[#allocation6 + $0x30] sm:$0xff]  ;;  %1741 = vmatpush.msrb.mxu1 %v3699_v63 }
 0x44f   :  { %2550 = vpow2.f32 %v2452_v57  ;;  %v3705_v57 = vld [vmem:[#allocation6 + $0x38] sm:$0xff]  ;;  %1761 = vmatpush.msrb.mxu2 %v3703_v40  ;;  %1722 = vmatpush.msrb.mxu0 %v3709_v43 }
 0x450   :  { %1781 = vmatpush.msrb.mxu3 %v3705_v57  ;;  %1742 = vmatpush.msrb.mxu1 %v3711_v15 }
 0x451   :  { %1762 = vmatpush.msrb.mxu2 %v3717_v11  ;;  %1937 = vmatpush.msra.mxu0 %v3524_v14 }
 0x452   :  { %v2547_v35 = vpop.eup %2546  ;;  %1782 = vmatpush.msrb.mxu3 %v3719_v36  ;;  %1957 = vmatpush.msra.mxu1 %v3526_v16 }
 0x453   :  { %v3713_v37 = vadd.f32 1.0, %v2547_v35  ;;  %1977 = vmatpush.msra.mxu2 %v3528_v52  ;;  %1938 = vmatpush.msra.mxu0 %v3536_v21  ;;  %v1610_v52 = vrot.slane %v3642_v32, 4 }
 0x454   :  { %v2549_v5 = vpop.eup %2548  ;;  %1997 = vmatpush.msra.mxu3 %v3532_v0  ;;  %1958 = vmatpush.msra.mxu1 %v3538_v22  ;;  %v4055_v32 = vld [vmem:[#allocation17_spill] sm:$0xff] }
 0x455   :  { %v2551_v46 = vpop.eup %2550  ;;  %2552 = vrcp.f32 %v3713_v37  ;;  %v3724_v4 = vadd.f32 1.0, %v2549_v5  ;;  %1978 = vmatpush.msra.mxu2 %v3540_v62  ;;  %1939 = vmatpush.msra.mxu0 %v3548_v13  ;;  %v1584_v62 = vand.u32 2147483648, %v3713_v37  ;;  %vm1578_vm6 = vweird.f32 %v3713_v37 }
 0x456   :  { %v3728_v35 = vadd.f32 1.0, %v2551_v46  ;;  %1998 = vmatpush.msra.mxu3 %v3544_v24  ;;  %1959 = vmatpush.msra.mxu1 %v3550_v25 }
 0x457   :  { %2554 = vrcp.f32 %v3724_v4  ;;  %1979 = vmatpush.msra.mxu2 %v3552_v2  ;;  %1940 = vmatpush.msra.mxu0 %v3560_v30  ;;  %v1582_v2 = vand.u32 2147483647, %v3713_v37  ;;  %vm1600_vm10 = vweird.f32 %v3724_v4 }
 0x458   :  { %2556 = vrcp.f32 %v3728_v35  ;;  %1999 = vmatpush.msra.mxu3 %v3556_v29  ;;  %1960 = vmatpush.msra.mxu1 %v3562_v33  ;;  %v1606_v29 = vand.u32 2147483648, %v3724_v4  ;;  %vm1624_vm14 = vweird.f32 %v3728_v35 }
 0x459   :  { %1980 = vmatpush.msra.mxu2 %v3564_v34  ;;  %1941 = vmatpush.msra.mxu0 %v3572_v41  ;;  %2558 = vtanh.f32 %v1610_v52  ;;  %v1604_v34 = vand.u32 2147483647, %v3724_v4  ;;  %vm1583_vm9 = vcmp.eq.f32.partialorder %v1582_v2, 8.507059e+37 }
 0x45a   :  { %2000 = vmatpush.msra.mxu3 %v3568_v38  ;;  %1961 = vmatpush.msra.mxu1 %v3574_v42  ;;  %v1585_v38 = vor.u32 1.1754944e-38, %v1584_v62 }
 0x45b   :  { %v2553_v5 = vpop.eup %2552  ;;  %1981 = vmatpush.msra.mxu2 %v3576_v44  ;;  %1942 = vmatpush.msra.mxu0 %v3584_v54  ;;  %v1607_v54 = vor.u32 1.1754944e-38, %v1606_v29  ;;  %vm1605_vm12 = vcmp.eq.f32.partialorder %v1604_v34, 8.507059e+37 }
 0x45c   :  { %v1574_v14 = vmul.f32 %v2553_v5, %v3713_v37  ;;  %vm1579_vm2 = vweird.f32 %v2553_v5  ;;  %2001 = vmatpush.msra.mxu3 %v3580_v51  ;;  %1962 = vmatpush.msra.mxu1 %v3586_v55  ;;  %v4056_v37 = vld [vmem:[#allocation13_spill] sm:$0xff] }
 0x45d   :  { %v2555_v16 = vpop.eup %2554  ;;  %1982 = vmatpush.msra.mxu2 %v3588_v60  ;;  %vm1580_vm8 = vmor %vm1578_vm6, %vm1579_vm2  ;;  %1943 = vmatpush.msra.mxu0 %v3594_v9 }
 0x45e   :  { %v3750_v0 = vpop.eup %2556  ;;  %v1575_v21 = vsub.f32 1.0, %v1574_v14  ;;  %v1596_v22 = vmul.f32 %v2555_v16, %v3724_v4  ;;  %vm1601_vm7 = vweird.f32 %v2555_v16  ;;  %2002 = vmatpush.msra.mxu3 %v3592_v3  ;;  %1963 = vmatpush.msra.mxu1 %v3596_v10 }
 0x45f   :  { %v1620_v24 = vmul.f32 %v3750_v0, %v3728_v35  ;;  %1983 = vmatpush.msra.mxu2 %v3600_v27  ;;  %vm1602_vm11 = vmor %vm1600_vm10, %vm1601_vm7  ;;  %1944 = vmatpush.msra.mxu0 %v3604_v31  ;;  %v2559_v60 = vpop.eup %2558  ;;  %vm1625_vm13 = vweird.f32 %v3750_v0 }
 0x460   :  { %v1597_v13 = vsub.f32 1.0, %v1596_v22  ;;  %v1576_v25 = vmul.f32 %v2553_v5, %v1575_v21  ;;  %2003 = vmatpush.msra.mxu3 %v3602_v28  ;;  %1964 = vmatpush.msra.mxu1 %v3608_v47  ;;  %v1628_v47 = vand.u32 2147483647, %v3728_v35  ;;  %vm1626_vm15 = vmor %vm1624_vm14, %vm1625_vm13 }
 0x461   :  { %v1621_v41 = vsub.f32 1.0, %v1620_v24  ;;  %1984 = vmatpush.msra.mxu2 %v3610_v48  ;;  %1945 = vmatpush.msra.mxu0 %v3616_v53 }
 0x462   :  { %v1577_v30 = vadd.f32 %v2553_v5, %v1576_v25  ;;  %v1598_v33 = vmul.f32 %v2555_v16, %v1597_v13  ;;  %2004 = vmatpush.msra.mxu3 %v3612_v58  ;;  %1965 = vmatpush.msra.mxu1 %v3618_v56  ;;  %v4049_v58 = vld [vmem:[#allocation30_spill] sm:$0xff]  ;;  %v4050_v56 = vld [vmem:[#allocation31_spill] sm:$0xff]  ;;  %vm1629_vm0 = vcmp.eq.f32.partialorder %v1628_v47, 8.507059e+37 }
 0x463   :  { %v1622_v9 = vmul.f32 %v3750_v0, %v1621_v41  ;;  %1985 = vmatpush.msra.mxu2 %v3622_v7  ;;  %1946 = vmatpush.msra.mxu0 %v3631_v12  ;;  %v4051_v7 = vld [vmem:[#allocation32_spill] sm:$0xff]  ;;  %v4053_v12 = vld [vmem:[#allocation34_spill] sm:$0xff] }
 0x464   :  { %v1581_v42 = vsel %vm1580_vm8, %v2553_v5, %v1577_v30  ;;  %v1599_v44 = vadd.f32 %v2555_v16, %v1598_v33  ;;  %2005 = vmatpush.msra.mxu3 %v3624_v6  ;;  %1966 = vmatpush.msra.mxu1 %v3633_v18  ;;  %v4052_v6 = vld [vmem:[#allocation33_spill] sm:$0xff] }
 0x465   :  { %v1586_v51 = vsel %vm1583_vm9, %v1585_v38, %v1581_v42  ;;  %1986 = vmatpush.msra.mxu2 %v3638_v19  ;;  %v1623_v31 = vadd.f32 %v3750_v0, %v1622_v9  ;;  %1947 = vmatpush.msra.mxu0 %v3646_v61 }
 0x466   :  { %v1603_v55 = vsel %vm1602_vm11, %v2555_v16, %v1599_v44  ;;  %v1635_v27 = vmul.f32 %v2559_v60, %v1586_v51  ;;  %2006 = vmatpush.msra.mxu3 %v3640_v17  ;;  %1967 = vmatpush.msra.mxu1 %v3648_v1  ;;  %v4054_v17 = vld [vmem:[#allocation16_spill] sm:$0xff] }
 0x467   :  { %v1608_v3 = vsel %vm1605_vm12, %v1607_v54, %v1603_v55  ;;  %1987 = vmatpush.msra.mxu2 %v3652_v45  ;;  %1948 = vmatpush.msra.mxu0 %v3661_v8  ;;  %v1627_v48 = vsel %vm1626_vm15, %v3750_v0, %v1623_v31 }
 0x468   :  { %v1634_v10 = vmul.f32 %v1608_v3, %v3517_v23  ;;  %v1630_v23 = vand.u32 2147483648, %v3728_v35  ;;  %2007 = vmatpush.msra.mxu3 %v3654_v49  ;;  %1968 = vmatpush.msra.mxu1 %v3663_v50 }
 0x469   :  { %1988 = vmatpush.msra.mxu2 %v3667_v26  ;;  %1949 = vmatpush.msra.mxu0 %v3673_v20 }
 0x46a   :  { %v3789_v28 = vadd.f32 %v1635_v27, %v1634_v10  ;;  %2008 = vmatpush.msra.mxu3 %v3669_v39  ;;  %1969 = vmatpush.msra.mxu1 %v4049_v58  ;;  %v1631_v53 = vor.u32 1.1754944e-38, %v1630_v23 }
 0x46b   :  { %1989 = vmatpush.msra.mxu2 %v4050_v56  ;;  %1950 = vmatpush.msra.mxu0 %v4052_v6 }
 0x46c   :  { %2560 = vtanh.f32 %v3789_v28  ;;  %2009 = vmatpush.msra.mxu3 %v4051_v7  ;;  %1970 = vmatpush.msra.mxu1 %v4053_v12  ;;  %v1632_v19 = vsel %vm1629_vm0, %v1631_v53, %v1627_v48 }
 0x46d   :  { %1990 = vmatpush.msra.mxu2 %v4054_v17  ;;  %1951 = vmatpush.msra.mxu0 %v3697_v59 }
 0x46e   :  { %2010 = vmatpush.msra.mxu3 %v4055_v32  ;;  %1971 = vmatpush.msra.mxu1 %v3699_v63 }
 0x46f   :  { %1991 = vmatpush.msra.mxu2 %v3703_v40  ;;  %1952 = vmatpush.msra.mxu0 %v3709_v43 }
 0x470   :  { %2011 = vmatpush.msra.mxu3 %v3705_v57  ;;  %1972 = vmatpush.msra.mxu1 %v3711_v15  ;;  %v242_v15 = vrot.slane %v4056_v37, 4 }
 0x471   :  { %1992 = vmatpush.msra.mxu2 %v3717_v11 }
 0x472   :  { %v2561_v18 = vpop.eup %2560  ;;  %2012 = vmatpush.msra.mxu3 %v3719_v36 }
 0x473   :  { %v1638_v61 = vmul.f32 %v2561_v18, %v1632_v19 }
 0x475   :  { %1640 = vst [vmem:[#allocation3 + $0xa] sm:$0x3] %v1638_v61  ;;  %1723 = vmatmul.f32.vlgmr.msrb.gmra.mxu0 %v1638_v61  ;;  %1743 = vmatmul.f32.vlgmr.msrb.gmra.mxu1 %v1638_v61 }
 0x476   :  { %1763 = vmatmul.f32.vlgmr.msrb.gmra.mxu2 %v1638_v61  ;;  %1783 = vmatmul.f32.vlgmr.msrb.gmra.mxu3 %v1638_v61  ;;  %v3840_v61 = vpop.permute.xlu0 %2125 }
 0x47c   :  { %v3824_v1 = vld [vmem:[#allocation3 + $0xa] sm:$0x3] }
 0x47d   :  { %2127 = vrot.lane.b32.xlu0 %v3824_v1, %s2687_s3 }
 0x4f2   :  { %v1744_v45 = vpop.f32.mrf.mxu1  ;;  %v1724_v20 = vpop.f32.mrf.mxu0 }
 0x4f3   :  { %v1791_v49 = vrot.slane %v1744_v45, 6  ;;  %v2128_v45 = vpop.permute.xlu0 %2127 }
 0x4f5   :  { %v1794_v43 = vsel %vm211_vm4, %v1724_v20, %v1791_v49  ;;  %v3843_v49 = vmul.f32 %v2128_v45, %v3824_v1 }
 0x4f9   :  { %v1764_v8 = vpop.f32.mrf.mxu2  ;;  %v1784_v50 = vpop.f32.mrf.mxu3 }
 0x4fa   :  { %v1792_v26 = vrot.slane %v1764_v8, 4  ;;  %v1793_v39 = vrot.slane %v1784_v50, 2  ;;  %v2165_v8 = vsel %vm2149_vm1, %v3843_v49, -inf }
 0x4fc   :  { %v1795_v11 = vsel %vm213_vm3, %v1792_v26, %v1793_v39 }
 0x4fd   :  { %v1796_v36 = vsel %vm215_vm5, %v1794_v43, %v1795_v11 }
 0x4fe   :  { %v1798_v4 = vadd.f32 %v1796_v36, %v242_v15 }
 0x500   :  { %v2453_v46 = vmul.f32 -1.442695, %v1798_v4  ;;  %v1819_v59 = vrot.slane %v1798_v4, 2  ;;  %v1843_v63 = vrot.slane %v1798_v4, 6  ;;  %v1840_v24 = vrot.slane %v1798_v4, 4 }
 0x502   :  { %2562 = vpow2.f32 %v2453_v46  ;;  %v2454_v40 = vmul.f32 -1.442695, %v1819_v59  ;;  %v2455_v57 = vmul.f32 -1.442695, %v1843_v63  ;;  %v4057_v59 = vld [vmem:[#allocation14_spill] sm:$0xff] }
 0x503   :  { %v246_v63 = vrot.slane %v4057_v59, 6  ;;  %v4058_v59 = vld [vmem:[#allocation29_spill] sm:$0xff] }
 0x504   :  { %2564 = vpow2.f32 %v2454_v40 }
 0x505   :  { %2566 = vpow2.f32 %v2455_v57 }
 0x508   :  { %v2563_v35 = vpop.eup %2562 }
 0x509   :  { %v1802_v5 = vadd.f32 1.0, %v2563_v35 }
 0x50a   :  { %v2565_v14 = vpop.eup %2564 }
 0x50b   :  { %v2567_v16 = vpop.eup %2566  ;;  %2568 = vrcp.f32 %v1802_v5  ;;  %v1824_v52 = vadd.f32 1.0, %v2565_v14  ;;  %v1814_v29 = vand.u32 2147483648, %v1802_v5  ;;  %v1812_v38 = vand.u32 2147483647, %v1802_v5 }
 0x50c   :  { %v1848_v0 = vadd.f32 1.0, %v2567_v16  ;;  %vm1808_vm6 = vweird.f32 %v1802_v5 }
 0x50d   :  { %2570 = vrcp.f32 %v1824_v52  ;;  %v1836_v41 = vand.u32 2147483648, %v1824_v52  ;;  %v1834_v51 = vand.u32 2147483647, %v1824_v52  ;;  %v1815_v54 = vor.u32 1.1754944e-38, %v1814_v29 }
 0x50e   :  { %2572 = vrcp.f32 %v1848_v0  ;;  %vm1813_vm9 = vcmp.eq.f32.partialorder %v1812_v38, 8.507059e+37  ;;  %vm1830_vm10 = vweird.f32 %v1824_v52  ;;  %v1860_v7 = vand.u32 2147483648, %v1848_v0 }
 0x50f   :  { %2574 = vtanh.f32 %v1840_v24  ;;  %v1837_v10 = vor.u32 1.1754944e-38, %v1836_v41  ;;  %vm1835_vm12 = vcmp.eq.f32.partialorder %v1834_v51, 8.507059e+37  ;;  %vm1854_vm14 = vweird.f32 %v1848_v0 }
 0x510   :  { %v1858_v6 = vand.u32 2147483647, %v1848_v0  ;;  %v1861_v18 = vor.u32 1.1754944e-38, %v1860_v7 }
 0x511   :  { %v2569_v21 = vpop.eup %2568 }
 0x512   :  { %v1804_v22 = vmul.f32 %v2569_v21, %v1802_v5  ;;  %vm1809_vm2 = vweird.f32 %v2569_v21  ;;  %vm1859_vm0 = vcmp.eq.f32.partialorder %v1858_v6, 8.507059e+37 }
 0x513   :  { %v2571_v62 = vpop.eup %2570  ;;  %vm1810_vm8 = vmor %vm1808_vm6, %vm1809_vm2 }
 0x514   :  { %v2573_v13 = vpop.eup %2572  ;;  %v1805_v25 = vsub.f32 1.0, %v1804_v22  ;;  %v1826_v2 = vmul.f32 %v2571_v62, %v1824_v52  ;;  %vm1831_vm7 = vweird.f32 %v2571_v62 }
 0x515   :  { %v1850_v30 = vmul.f32 %v2573_v13, %v1848_v0  ;;  %vm1832_vm11 = vmor %vm1830_vm10, %vm1831_vm7  ;;  %v2575_v31 = vpop.eup %2574  ;;  %vm1855_vm13 = vweird.f32 %v2573_v13 }
 0x516   :  { %v1827_v33 = vsub.f32 1.0, %v1826_v2  ;;  %v1806_v34 = vmul.f32 %v2569_v21, %v1805_v25  ;;  %vm1856_vm15 = vmor %vm1854_vm14, %vm1855_vm13 }
 0x517   :  { %v1851_v55 = vsub.f32 1.0, %v1850_v30 }
 0x518   :  { %v1807_v42 = vadd.f32 %v2569_v21, %v1806_v34  ;;  %v1828_v44 = vmul.f32 %v2571_v62, %v1827_v33 }
 0x519   :  { %v1852_v47 = vmul.f32 %v2573_v13, %v1851_v55 }
 0x51a   :  { %v1811_v60 = vsel %vm1810_vm8, %v2569_v21, %v1807_v42  ;;  %v1829_v3 = vadd.f32 %v2571_v62, %v1828_v44 }
 0x51b   :  { %v1816_v9 = vsel %vm1813_vm9, %v1815_v54, %v1811_v60  ;;  %v1853_v56 = vadd.f32 %v2573_v13, %v1852_v47 }
 0x51c   :  { %v1833_v27 = vsel %vm1832_vm11, %v2571_v62, %v1829_v3  ;;  %v1865_v58 = vmul.f32 %v2575_v31, %v1816_v9 }
 0x51d   :  { %v1838_v23 = vsel %vm1835_vm12, %v1837_v10, %v1833_v27  ;;  %v1857_v12 = vsel %vm1856_vm15, %v2573_v13, %v1853_v56 }
 0x51e   :  { %v1864_v48 = vmul.f32 %v1838_v23, %v3789_v28  ;;  %v1862_v17 = vsel %vm1859_vm0, %v1861_v18, %v1857_v12 }
 0x520   :  { %v3833_v53 = vadd.f32 %v1865_v58, %v1864_v48 }
 0x522   :  { %2576 = vtanh.f32 %v3833_v53 }
 0x528   :  { %v2577_v19 = vpop.eup %2576 }
 0x529   :  { %v1868_v32 = vmul.f32 %v2577_v19, %v1862_v17 }
 0x52b   :  { %1870 = vst [vmem:[#allocation3 + $0xc] sm:$0x3] %v1868_v32  ;;  %1953 = vmatmul.f32.vlgmr.msra.gmra.mxu0 %v1868_v32  ;;  %1973 = vmatmul.f32.vlgmr.msra.gmra.mxu1 %v1868_v32 }
 0x52c   :  { %1993 = vmatmul.f32.vlgmr.msra.gmra.mxu2 %v1868_v32  ;;  %2013 = vmatmul.f32.vlgmr.msra.gmra.mxu3 %v1868_v32 }
 0x532   :  { %v3836_v28 = vld [vmem:[#allocation3 + $0xc] sm:$0x3] }
 0x533   :  { %2129 = vrot.lane.b32.xlu0 %v3836_v28, %s2687_s3 }
 0x55d   :  { %2166 = vmax.xlane.f32.xlu0 %v2165_v8 }
 0x5a5   :  { %v2130_v50 = vpop.permute.xlu0 %2129 }
 0x5a6   :  { %v3848_v26 = vmul.f32 %v2130_v50, %v3836_v28 }
 0x5a8   :  { %v2168_v39 = vsel %vm2149_vm1, %v3848_v26, -inf  ;;  %v1974_v20 = vpop.f32.mrf.mxu1  ;;  %v1954_v4 = vpop.f32.mrf.mxu0 }
 0x5a9   :  { %2169 = vmax.xlane.f32.xlu1 %v2168_v39  ;;  %v2021_v43 = vrot.slane %v1974_v20, 6 }
 0x5ab   :  { %v2024_v46 = vsel %vm211_vm4, %v1954_v4, %v2021_v43 }
 0x5af   :  { %v1994_v37 = vpop.f32.mrf.mxu2  ;;  %v2014_v15 = vpop.f32.mrf.mxu3 }
 0x5b0   :  { %v2022_v11 = vrot.slane %v1994_v37, 4  ;;  %v2023_v36 = vrot.slane %v2014_v15, 2 }
 0x5b2   :  { %v2025_v40 = vsel %vm213_vm3, %v2022_v11, %v2023_v36 }
 0x5b3   :  { %v2026_v57 = vsel %vm215_vm5, %v2024_v46, %v2025_v40  ;;  %v3866_v46 = vld [vmem:[#allocation3 + $0x6] sm:$0x3] }
 0x5b4   :  { %v2028_v35 = vadd.f32 %v2026_v57, %v246_v63  ;;  %v2145_v63 = vmul.f32 %v3840_v61, %v4058_v59  ;;  %v2120_v57 = vpop.permute.xlu1 %2119 }
 0x5b6   :  { %v2456_v5 = vmul.f32 -1.442695, %v2028_v35  ;;  %v2049_v14 = vrot.slane %v2028_v35, 2  ;;  %v2073_v16 = vrot.slane %v2028_v35, 6  ;;  %v2070_v34 = vrot.slane %v2028_v35, 4 }
 0x5b7   :  { %v2162_v40 = vsel %vm2149_vm1, %v2145_v63, -inf  ;;  %v3873_v35 = vld [vmem:[#allocation3 + $0x2] sm:$0x3] }
 0x5b8   :  { %2578 = vpow2.f32 %v2456_v5  ;;  %v2457_v52 = vmul.f32 -1.442695, %v2049_v14  ;;  %v2458_v0 = vmul.f32 -1.442695, %v2073_v16  ;;  %v2142_v5 = vmul.f32 %v3873_v35, %v2120_v57 }
 0x5ba   :  { %2580 = vpow2.f32 %v2457_v52  ;;  %v2153_v14 = vsel %vm2149_vm1, %v2142_v5, -inf }
 0x5bb   :  { %2582 = vpow2.f32 %v2458_v0 }
 0x5bc   :  { %v2122_v16 = vpop.permute.xlu1 %2121 }
 0x5be   :  { %v2579_v21 = vpop.eup %2578 }
 0x5bf   :  { %v2032_v22 = vadd.f32 1.0, %v2579_v21 }
 0x5c0   :  { %v2581_v62 = vpop.eup %2580 }
 0x5c1   :  { %v2583_v24 = vpop.eup %2582  ;;  %2584 = vrcp.f32 %v2032_v22  ;;  %v2054_v13 = vadd.f32 1.0, %v2581_v62  ;;  %v2044_v44 = vand.u32 2147483648, %v2032_v22  ;;  %v2042_v54 = vand.u32 2147483647, %v2032_v22 }
 0x5c2   :  { %v2078_v25 = vadd.f32 1.0, %v2583_v24  ;;  %vm2038_vm5 = vweird.f32 %v2032_v22 }
 0x5c3   :  { %2586 = vrcp.f32 %v2054_v13  ;;  %v2066_v3 = vand.u32 2147483648, %v2054_v13  ;;  %v2064_v10 = vand.u32 2147483647, %v2054_v13  ;;  %v2045_v31 = vor.u32 1.1754944e-38, %v2044_v44 }
 0x5c4   :  { %2588 = vrcp.f32 %v2078_v25  ;;  %vm2043_vm7 = vcmp.eq.f32.partialorder %v2042_v54, 8.507059e+37  ;;  %vm2060_vm8 = vweird.f32 %v2054_v13  ;;  %v2090_v39 = vand.u32 2147483648, %v2078_v25  ;;  %v2152_v52 = vpop.xlane.xlu1 %2151 }
 0x5c5   :  { %2590 = vtanh.f32 %v2070_v34  ;;  %v2067_v7 = vor.u32 1.1754944e-38, %v2066_v3  ;;  %vm2065_vm10 = vcmp.eq.f32.partialorder %v2064_v10, 8.507059e+37  ;;  %vm2084_vm12 = vweird.f32 %v2078_v25 }
 0x5c6   :  { %v2091_v15 = vor.u32 1.1754944e-38, %v2090_v39 }
 0x5c7   :  { %v2585_v2 = vpop.eup %2584 }
 0x5c8   :  { %v2034_v29 = vmul.f32 %v2585_v2, %v2032_v22  ;;  %vm2039_vm3 = vweird.f32 %v2585_v2  ;;  %v4059_v22 = vld [vmem:[#allocation28_spill] sm:$0xff] }
 0x5c9   :  { %v2587_v30 = vpop.eup %2586  ;;  %vm2040_vm2 = vmor %vm2038_vm5, %vm2039_vm3  ;;  %v2174_v62 = vsub.f32 %v4059_v22, %v2152_v52 }
 0x5ca   :  { %v2035_v33 = vsub.f32 1.0, %v2034_v29  ;;  %v2589_v38 = vpop.eup %2588  ;;  %v2056_v41 = vmul.f32 %v2587_v30, %v2054_v13  ;;  %vm2061_vm6 = vweird.f32 %v2587_v30  ;;  %v3880_v13 = vld [vmem:[#allocation3 + $0x4] sm:$0x3] }
 0x5cb   :  { %v2080_v51 = vmul.f32 %v2589_v38, %v2078_v25  ;;  %vm2062_vm9 = vmor %vm2060_vm8, %vm2061_vm6  ;;  %v2591_v18 = vpop.eup %2590  ;;  %vm2085_vm11 = vweird.f32 %v2589_v38  ;;  %v2182_v24 = vmul.f32 1.442695, %v2174_v62 }
 0x5cc   :  { %v2036_v42 = vmul.f32 %v2585_v2, %v2035_v33  ;;  %v2057_v55 = vsub.f32 1.0, %v2056_v41  ;;  %vm2086_vm13 = vmor %vm2084_vm12, %vm2085_vm11 }
 0x5cd   :  { %v2081_v23 = vsub.f32 1.0, %v2080_v51 }
 0x5ce   :  { %v2037_v60 = vadd.f32 %v2585_v2, %v2036_v42  ;;  %v2058_v9 = vmul.f32 %v2587_v30, %v2057_v55 }
 0x5cf   :  { %v2082_v17 = vmul.f32 %v2589_v38, %v2081_v23 }
 0x5d0   :  { %v2041_v27 = vsel %vm2040_vm2, %v2585_v2, %v2037_v60  ;;  %v2167_v47 = vpop.xlane.xlu0 %2166  ;;  %v2059_v48 = vadd.f32 %v2587_v30, %v2058_v9 }
 0x5d1   :  { %v2179_v58 = vsub.f32 %v3843_v49, %v2167_v47  ;;  %v2046_v56 = vsel %vm2043_vm7, %v2045_v31, %v2041_v27  ;;  %v2083_v50 = vadd.f32 %v2589_v38, %v2082_v17  ;;  %v2088_v49 = vand.u32 2147483647, %v2078_v25 }
 0x5d2   :  { %v2063_v6 = vsel %vm2062_vm9, %v2587_v30, %v2059_v48  ;;  %v2095_v45 = vmul.f32 %v2591_v18, %v2046_v56  ;;  %v2143_v25 = vmul.f32 %v3880_v13, %v2122_v16 }
 0x5d3   :  { %v2192_v12 = vmul.f32 1.442695, %v2179_v58  ;;  %v2068_v19 = vsel %vm2065_vm10, %v2067_v7, %v2063_v6  ;;  %v2087_v43 = vsel %vm2086_vm13, %v2589_v38, %v2083_v50  ;;  %vm2089_vm14 = vcmp.eq.f32.partialorder %v2088_v49, 8.507059e+37 }
 0x5d4   :  { %v2094_v32 = vmul.f32 %v2068_v19, %v3833_v53  ;;  %v2092_v11 = vsel %vm2089_vm14, %v2091_v15, %v2087_v43  ;;  %v2156_v33 = vsel %vm2149_vm1, %v2143_v25, -inf }
 0x5d5   :  { %2592 = vpow2.f32 %v2192_v12 }
 0x5d6   :  { %v2096_v8 = vadd.f32 %v2095_v45, %v2094_v32 }
 0x5d8   :  { %2594 = vtanh.f32 %v2096_v8 }
 0x5d9   :  { %2596 = vpow2.f32 %v2182_v24 }
 0x5db   :  { %v3858_v20 = vpop.eup %2592 }
 0x5dc   :  { %v2213_v37 = vsel %vm2149_vm1, %v3858_v20, 0.0 }
 0x5dd   :  { %2214 = vadd.xlane.f32.xlu1 %v2213_v37 }
 0x5de   :  { %v2595_v53 = vpop.eup %2594 }
 0x5df   :  { %v2098_v36 = vmul.f32 %v2595_v53, %v2092_v11  ;;  %v3886_v34 = vpop.eup %2596 }
 0x5e0   :  { %v2198_v38 = vsel %vm2149_vm1, %v3886_v34, 0.0 }
 0x5e1   :  { %2100 = vst [vmem:[#allocation3 + $0xe] sm:$0x3] %v2098_v36 }
 0x5e8   :  { %v3862_v4 = vld [vmem:[#allocation3 + $0xe] sm:$0x3] }
 0x5e9   :  { %2131 = vrot.lane.b32.xlu2 %v3862_v4, %s2687_s3 }
 0x5f1   :  { %2123 = vrot.lane.b32.xlu2 %v3866_v46, %s2687_s3 }
 0x61a   :  { %2163 = vmax.xlane.f32.xlu2 %v2162_v40 }
 0x61c   :  { %v2170_v51 = vpop.xlane.xlu1 %2169 }
 0x61d   :  { %v2180_v3 = vsub.f32 %v3848_v26, %v2170_v51 }
 0x61f   :  { %v2194_v31 = vmul.f32 1.442695, %v2180_v3 }
 0x622   :  { %2154 = vmax.xlane.f32.xlu2 %v2153_v14 }
 0x643   :  { %v2132_v0 = vpop.permute.xlu2 %2131 }
 0x644   :  { %v2148_v21 = vmul.f32 %v2132_v0, %v3862_v4 }
 0x646   :  { %v2171_v61 = vsel %vm2149_vm1, %v2148_v21, -inf }
 0x647   :  { %2172 = vmax.xlane.f32.xlu2 %v2171_v61 }
 0x64b   :  { %v2124_v2 = vpop.permute.xlu2 %2123 }
 0x64c   :  { %v2144_v29 = vmul.f32 %v2124_v2, %v3866_v46 }
 0x64e   :  { %v2159_v30 = vsel %vm2149_vm1, %v2144_v29, -inf }
 0x64f   :  { %2160 = vmax.xlane.f32.xlu0 %v2159_v30  ;;  %2157 = vmax.xlane.f32.xlu2 %v2156_v33 }
 0x650   :  { %v2215_v27 = vpop.xlane.xlu1 %2214 }
 0x651   :  { %v2308_v18 = vand.u32 2147483648, %v2215_v27  ;;  %vm2302_vm0 = vweird.f32 %v2215_v27  ;;  %v2306_v19 = vand.u32 2147483647, %v2215_v27 }
 0x653   :  { %v2309_v32 = vor.u32 1.1754944e-38, %v2308_v18  ;;  %vm2307_vm5 = vcmp.eq.f32.partialorder %v2306_v19, 8.507059e+37 }
 0x657   :  { %2199 = vadd.xlane.f32.xlu2 %v2198_v38 }
 0x68d   :  { %v2164_v41 = vpop.xlane.xlu2 %2163 }
 0x68e   :  { %v2178_v42 = vsub.f32 %v2145_v63, %v2164_v41 }
 0x690   :  { %v2190_v44 = vmul.f32 1.442695, %v2178_v42 }
 0x692   :  { %2598 = vpow2.f32 %v2190_v44 }
 0x695   :  { %v2155_v54 = vpop.xlane.xlu2 %2154 }
 0x696   :  { %v2175_v55 = vsub.f32 %v2142_v5, %v2155_v54 }
 0x698   :  { %v3890_v60 = vpop.eup %2598  ;;  %v2184_v9 = vmul.f32 1.442695, %v2175_v55 }
 0x699   :  { %v2210_v10 = vsel %vm2149_vm1, %v3890_v60, 0.0 }
 0x69a   :  { %2600 = vpow2.f32 %v2184_v9  ;;  %2211 = vadd.xlane.f32.xlu0 %v2210_v10 }
 0x69b   :  { %2602 = vrcp.f32 %v2215_v27 }
 0x69c   :  { %2604 = vpow2.f32 %v2194_v31 }
 0x6a0   :  { %v3895_v23 = vpop.eup %2600 }
 0x6a1   :  { %v2201_v47 = vsel %vm2149_vm1, %v3895_v23, 0.0  ;;  %v2603_v48 = vpop.eup %2602 }
 0x6a2   :  { %2202 = vadd.xlane.f32.xlu0 %v2201_v47  ;;  %v3899_v58 = vpop.eup %2604  ;;  %v2298_v26 = vmul.f32 %v2603_v48, %v2215_v27  ;;  %vm2303_vm15 = vweird.f32 %v2603_v48 }
 0x6a3   :  { %v2216_v56 = vsel %vm2149_vm1, %v3899_v58, 0.0  ;;  %vm2304_vm3 = vmor %vm2302_vm0, %vm2303_vm15 }
 0x6a4   :  { %v2299_v7 = vsub.f32 1.0, %v2298_v26 }
 0x6a6   :  { %v2300_v6 = vmul.f32 %v2603_v48, %v2299_v7 }
 0x6a8   :  { %v2301_v12 = vadd.f32 %v2603_v48, %v2300_v6 }
 0x6aa   :  { %2217 = vadd.xlane.f32.xlu0 %v2216_v56  ;;  %v2305_v17 = vsel %vm2304_vm3, %v2603_v48, %v2301_v12 }
 0x6ab   :  { %v2310_v45 = vsel %vm2307_vm5, %v2309_v32, %v2305_v17 }
 0x6ac   :  { %v2311_v39 = vmul.f32 %v3858_v20, %v2310_v45 }
 0x6ba   :  { %v2173_v8 = vpop.xlane.xlu2 %2172 }
 0x6bb   :  { %v2181_v50 = vsub.f32 %v2148_v21, %v2173_v8 }
 0x6bd   :  { %v2196_v49 = vmul.f32 1.442695, %v2181_v50 }
 0x6be   :  { %2360 = vrot.lane.b32.xlu0 %v2311_v39, %s2688_s16 }
 0x6bf   :  { %2606 = vpow2.f32 %v2196_v49 }
 0x6c2   :  { %v2161_v43 = vpop.xlane.xlu0 %2160  ;;  %v2158_v37 = vpop.xlane.xlu2 %2157 }
 0x6c3   :  { %v2177_v15 = vsub.f32 %v2144_v29, %v2161_v43  ;;  %v2176_v53 = vsub.f32 %v2143_v25, %v2158_v37 }
 0x6c5   :  { %v3905_v11 = vpop.eup %2606  ;;  %v2188_v36 = vmul.f32 1.442695, %v2177_v15  ;;  %v2186_v59 = vmul.f32 1.442695, %v2176_v53 }
 0x6c6   :  { %v2219_v63 = vsel %vm2149_vm1, %v3905_v11, 0.0 }
 0x6c7   :  { %2608 = vpow2.f32 %v2188_v36  ;;  %2220 = vadd.xlane.f32.xlu1 %v2219_v63 }
 0x6c8   :  { %2610 = vpow2.f32 %v2186_v59 }
 0x6ca   :  { %v2200_v20 = vpop.xlane.xlu2 %2199 }
 0x6cb   :  { %2612 = vrcp.f32 %v2200_v20  ;;  %v2233_v62 = vand.u32 2147483648, %v2200_v20  ;;  %vm2227_vm6 = vweird.f32 %v2200_v20  ;;  %v2231_v61 = vand.u32 2147483647, %v2200_v20 }
 0x6cd   :  { %v3909_v40 = vpop.eup %2608  ;;  %v2234_v25 = vor.u32 1.1754944e-38, %v2233_v62  ;;  %vm2232_vm8 = vcmp.eq.f32.partialorder %v2231_v61, 8.507059e+37 }
 0x6ce   :  { %v3911_v57 = vpop.eup %2610  ;;  %v2207_v5 = vsel %vm2149_vm1, %v3909_v40, 0.0 }
 0x6cf   :  { %v2204_v14 = vsel %vm2149_vm1, %v3911_v57, 0.0  ;;  %2208 = vadd.xlane.f32.xlu2 %v2207_v5 }
 0x6d0   :  { %2205 = vadd.xlane.f32.xlu1 %v2204_v14 }
 0x6d1   :  { %v2613_v16 = vpop.eup %2612 }
 0x6d2   :  { %v2223_v52 = vmul.f32 %v2613_v16, %v2200_v20  ;;  %vm2228_vm2 = vweird.f32 %v2613_v16 }
 0x6d3   :  { %vm2229_vm7 = vmor %vm2227_vm6, %vm2228_vm2 }
 0x6d4   :  { %v2224_v0 = vsub.f32 1.0, %v2223_v52 }
 0x6d6   :  { %v2225_v21 = vmul.f32 %v2613_v16, %v2224_v0 }
 0x6d8   :  { %v2226_v22 = vadd.f32 %v2613_v16, %v2225_v21 }
 0x6da   :  { %v2230_v24 = vsel %vm2229_vm7, %v2613_v16, %v2226_v22 }
 0x6db   :  { %v2235_v2 = vsel %vm2232_vm8, %v2234_v25, %v2230_v24 }
 0x6dc   :  { %v2236_v29 = vmul.f32 %v3886_v34, %v2235_v2 }
 0x6e9   :  { %2350 = vrot.lane.b32.xlu1 %v2236_v29, %s2688_s16 }
 0x70d   :  { %v2212_v30 = vpop.xlane.xlu0 %2211 }
 0x70e   :  { %2614 = vrcp.f32 %v2212_v30  ;;  %v2293_v44 = vand.u32 2147483648, %v2212_v30  ;;  %v2291_v54 = vand.u32 2147483647, %v2212_v30  ;;  %vm2287_vm9 = vweird.f32 %v2212_v30 }
 0x710   :  { %v2294_v9 = vor.u32 1.1754944e-38, %v2293_v44  ;;  %vm2292_vm11 = vcmp.eq.f32.partialorder %v2291_v54, 8.507059e+37 }
 0x714   :  { %v2615_v33 = vpop.eup %2614 }
 0x715   :  { %v2283_v38 = vmul.f32 %v2615_v33, %v2212_v30  ;;  %v2203_v41 = vpop.xlane.xlu0 %2202  ;;  %vm2288_vm1 = vweird.f32 %v2615_v33 }
 0x716   :  { %2616 = vrcp.f32 %v2203_v41  ;;  %vm2289_vm10 = vmor %vm2287_vm9, %vm2288_vm1  ;;  %v2248_v26 = vand.u32 2147483648, %v2203_v41  ;;  %v2246_v7 = vand.u32 2147483647, %v2203_v41  ;;  %vm2242_vm13 = vweird.f32 %v2203_v41 }
 0x717   :  { %v2284_v42 = vsub.f32 1.0, %v2283_v38 }
 0x718   :  { %v2249_v18 = vor.u32 1.1754944e-38, %v2248_v26  ;;  %vm2247_vm15 = vcmp.eq.f32.partialorder %v2246_v7, 8.507059e+37  ;;  %v2628_v7 = vld [vmem:[#allocation3 + $0x8] sm:$0x3] }
 0x719   :  { %v2285_v51 = vmul.f32 %v2615_v33, %v2284_v42 }
 0x71b   :  { %v2286_v55 = vadd.f32 %v2615_v33, %v2285_v51 }
 0x71c   :  { %v2617_v3 = vpop.eup %2616 }
 0x71d   :  { %v2238_v10 = vmul.f32 %v2617_v3, %v2203_v41  ;;  %v2218_v34 = vpop.xlane.xlu0 %2217  ;;  %v2290_v27 = vsel %vm2289_vm10, %v2615_v33, %v2286_v55  ;;  %vm2243_vm12 = vweird.f32 %v2617_v3 }
 0x71e   :  { %2618 = vrcp.f32 %v2218_v34  ;;  %v2295_v31 = vsel %vm2292_vm11, %v2294_v9, %v2290_v27  ;;  %vm2244_vm14 = vmor %vm2242_vm13, %vm2243_vm12  ;;  %v2323_v50 = vand.u32 2147483648, %v2218_v34  ;;  %v2321_v39 = vand.u32 2147483647, %v2218_v34 }
 0x71f   :  { %v2239_v47 = vsub.f32 1.0, %v2238_v10  ;;  %v2296_v48 = vmul.f32 %v3890_v60, %v2295_v31  ;;  %vm2317_vm3 = vweird.f32 %v2218_v34 }
 0x720   :  { %v2324_v43 = vor.u32 1.1754944e-38, %v2323_v50  ;;  %vm2322_vm2 = vcmp.eq.f32.partialorder %v2321_v39, 8.507059e+37 }
 0x721   :  { %v2240_v56 = vmul.f32 %v2617_v3, %v2239_v47  ;;  %2358 = vrot.lane.b32.xlu2 %v2296_v48, %s2688_s16 }
 0x723   :  { %v2241_v6 = vadd.f32 %v2617_v3, %v2240_v56 }
 0x724   :  { %v2619_v12 = vpop.eup %2618 }
 0x725   :  { %v2313_v19 = vmul.f32 %v2619_v12, %v2218_v34  ;;  %v2245_v17 = vsel %vm2244_vm14, %v2617_v3, %v2241_v6  ;;  %vm2318_vm0 = vweird.f32 %v2619_v12 }
 0x726   :  { %v2250_v32 = vsel %vm2247_vm15, %v2249_v18, %v2245_v17  ;;  %vm2319_vm5 = vmor %vm2317_vm3, %vm2318_vm0  ;;  %v2629_v18 = vld [vmem:[#allocation3] sm:$0x3]  ;;  %vm2406_vm3 = vcmask 261120  }
 0x727   :  { %v2314_v45 = vsub.f32 1.0, %v2313_v19  ;;  %v2251_v8 = vmul.f32 %v3895_v23, %v2250_v32 }
 0x729   :  { %v2315_v60 = vmul.f32 %v2619_v12, %v2314_v45  ;;  %2352 = vrot.lane.b32.xlu0 %v2251_v8, %s2688_s16 }
 0x72b   :  { %v2316_v49 = vadd.f32 %v2619_v12, %v2315_v60 }
 0x72d   :  { %v2320_v37 = vsel %vm2319_vm5, %v2619_v12, %v2316_v49  ;;  %vm2408_vm5 = vcmask 523264  }
 0x72e   :  { %v2325_v15 = vsel %vm2322_vm2, %v2324_v43, %v2320_v37  ;;  %vm2410_vm2 = vcmask 785408  }
 0x72f   :  { %v2326_v53 = vmul.f32 %v3899_v58, %v2325_v15 }
 0x730   :  { %v2361_v48 = vpop.permute.xlu0 %2360 }
 0x731   :  { %2362 = vrot.lane.b32.xlu0 %v2326_v53, %s2688_s16  ;;  %v2379_v26 = vmul.f32 %v2361_v48, %v3824_v1 }
 0x73a   :  { %v2221_v36 = vpop.xlane.xlu1 %2220 }
 0x73b   :  { %2620 = vrcp.f32 %v2221_v36  ;;  %v2338_v14 = vand.u32 2147483648, %v2221_v36  ;;  %v2336_v52 = vand.u32 2147483647, %v2221_v36  ;;  %vm2332_vm7 = vweird.f32 %v2221_v36 }
 0x73d   :  { %v2339_v22 = vor.u32 1.1754944e-38, %v2338_v14  ;;  %vm2337_vm1 = vcmp.eq.f32.partialorder %v2336_v52, 8.507059e+37 }
 0x741   :  { %v2621_v23 = vpop.eup %2620 }
 0x742   :  { %v2328_v59 = vmul.f32 %v2621_v23, %v2221_v36  ;;  %v2209_v63 = vpop.xlane.xlu2 %2208  ;;  %vm2333_vm6 = vweird.f32 %v2621_v23 }
 0x743   :  { %2622 = vrcp.f32 %v2209_v63  ;;  %v2206_v20 = vpop.xlane.xlu1 %2205  ;;  %vm2334_vm8 = vmor %vm2332_vm7, %vm2333_vm6  ;;  %v2278_v30 = vand.u32 2147483648, %v2209_v63  ;;  %v2276_v42 = vand.u32 2147483647, %v2209_v63  ;;  %vm2272_vm11 = vweird.f32 %v2209_v63 }
 0x744   :  { %v2329_v5 = vsub.f32 1.0, %v2328_v59  ;;  %2624 = vrcp.f32 %v2206_v20  ;;  %v2263_v41 = vand.u32 2147483648, %v2206_v20  ;;  %v2261_v51 = vand.u32 2147483647, %v2206_v20 }
 0x745   :  { %v2279_v55 = vor.u32 1.1754944e-38, %v2278_v30  ;;  %vm2257_vm12 = vweird.f32 %v2206_v20  ;;  %vm2277_vm14 = vcmp.eq.f32.partialorder %v2276_v42, 8.507059e+37 }
 0x746   :  { %v2330_v16 = vmul.f32 %v2621_v23, %v2329_v5  ;;  %v2264_v9 = vor.u32 1.1754944e-38, %v2263_v41  ;;  %vm2262_vm0 = vcmp.eq.f32.partialorder %v2261_v51, 8.507059e+37 }
 0x748   :  { %v2331_v0 = vadd.f32 %v2621_v23, %v2330_v16 }
 0x749   :  { %v2623_v21 = vpop.eup %2622 }
 0x74a   :  { %v2625_v58 = vpop.eup %2624  ;;  %v2268_v62 = vmul.f32 %v2623_v21, %v2209_v63  ;;  %v2335_v61 = vsel %vm2334_vm8, %v2621_v23, %v2331_v0  ;;  %vm2273_vm9 = vweird.f32 %v2623_v21 }
 0x74b   :  { %v2253_v24 = vmul.f32 %v2625_v58, %v2206_v20  ;;  %v2340_v25 = vsel %vm2337_vm1, %v2339_v22, %v2335_v61  ;;  %vm2258_vm10 = vweird.f32 %v2625_v58  ;;  %vm2274_vm13 = vmor %vm2272_vm11, %vm2273_vm9 }
 0x74c   :  { %v2269_v2 = vsub.f32 1.0, %v2268_v62  ;;  %v2341_v29 = vmul.f32 %v3905_v11, %v2340_v25  ;;  %vm2259_vm15 = vmor %vm2257_vm12, %vm2258_vm10 }
 0x74d   :  { %v2254_v33 = vsub.f32 1.0, %v2253_v24 }
 0x74e   :  { %v2270_v38 = vmul.f32 %v2623_v21, %v2269_v2  ;;  %2364 = vrot.lane.b32.xlu2 %v2341_v29, %s2688_s16 }
 0x74f   :  { %v2255_v44 = vmul.f32 %v2625_v58, %v2254_v33 }
 0x750   :  { %v2271_v54 = vadd.f32 %v2623_v21, %v2270_v38 }
 0x751   :  { %v2256_v3 = vadd.f32 %v2625_v58, %v2255_v44 }
 0x752   :  { %v2275_v10 = vsel %vm2274_vm13, %v2623_v21, %v2271_v54 }
 0x753   :  { %v2280_v11 = vsel %vm2277_vm14, %v2279_v55, %v2275_v10  ;;  %v2260_v34 = vsel %vm2259_vm15, %v2625_v58, %v2256_v3 }
 0x754   :  { %v2281_v27 = vmul.f32 %v3909_v40, %v2280_v11  ;;  %v2265_v31 = vsel %vm2262_vm0, %v2264_v9, %v2260_v34 }
 0x755   :  { %v2266_v47 = vmul.f32 %v3911_v57, %v2265_v31 }
 0x756   :  { %2356 = vrot.lane.b32.xlu1 %v2281_v27, %s2688_s16 }
 0x757   :  { %2354 = vrot.lane.b32.xlu0 %v2266_v47, %s2688_s16 }
 0x75b   :  { %v2351_v12 = vpop.permute.xlu1 %2350 }
 0x75c   :  { %v2374_v40 = vmul.f32 %v2629_v18, %v2351_v12 }
 0x75e   :  { %2399 = vrot.lane.b32.xlu1 %v2379_v26, %s2687_s3 }
 0x77b   :  { %v2359_v56 = vpop.permute.xlu2 %2358 }
 0x77c   :  { %v2378_v6 = vmul.f32 %v2628_v7, %v2359_v56 }
 0x77e   :  { %2395 = vrot.lane.b32.xlu2 %v2378_v6, %s2688_s16 }
 0x786   :  { %2383 = vrot.lane.b32.xlu2 %v2374_v40, %s2688_s16 }
 0x79b   :  { %v2353_v57 = vpop.permute.xlu0 %2352 }
 0x79c   :  { %v2375_v19 = vmul.f32 %v3873_v35, %v2353_v57 }
 0x79e   :  { %2387 = vrot.lane.b32.xlu1 %v2375_v19, %s2687_s3 }
 0x7a3   :  { %v2363_v8 = vpop.permute.xlu0 %2362 }
 0x7a4   :  { %v2380_v35 = vmul.f32 %v2363_v8, %v3836_v28 }
 0x7a8   :  { %v2365_v17 = vpop.permute.xlu2 %2364 }
 0x7a9   :  { %v2381_v1 = vmul.f32 %v2365_v17, %v3862_v4 }
 0x7ab   :  { %2403 = vrot.lane.b32.xlu0 %v2381_v1, %s2684_s24 }
 0x7c8   :  { %v2357_v32 = vpop.permute.xlu1 %2356 }
 0x7c9   :  { %v2377_v45 = vmul.f32 %v2357_v32, %v3866_v46  ;;  %v2355_v60 = vpop.permute.xlu0 %2354 }
 0x7ca   :  { %v2376_v46 = vmul.f32 %v3880_v13, %v2355_v60 }
 0x7cb   :  { %2391 = vrot.lane.b32.xlu2 %v2377_v45, %s2684_s24 }
 0x7d0   :  { %v2400_v39 = vpop.permute.xlu1 %2399 }
 0x7d8   :  { %v2396_v50 = vpop.permute.xlu2 %2395 }
 0x7d9   :  { %v2412_v43 = vsel %vm2406_vm3, %v2396_v50, %v2400_v39 }
 0x7da   :  { %v2413_v15 = vsel %vm2408_vm5, %v2412_v43, %v2380_v35 }
 0x7e0   :  { %v2384_v49 = vpop.permute.xlu2 %2383 }
 0x810   :  { %v2388_v37 = vpop.permute.xlu1 %2387 }
 0x811   :  { %v2407_v53 = vsel %vm2406_vm3, %v2384_v49, %v2388_v37 }
 0x812   :  { %v2409_v63 = vsel %vm2408_vm5, %v2407_v53, %v2376_v46 }
 0x81d   :  { %v2404_v4 = vpop.permute.xlu0 %2403 }
 0x81e   :  { %v2414_v36 = vsel %vm2410_vm2, %v2413_v15, %v2404_v4 }
 0x81f   :  { %v2417_v23 = vrot.slane %v2414_v36, 6 }
 0x825   :  { %v2392_v59 = vpop.permute.xlu2 %2391 }
 0x826   :  { %v2411_v20 = vsel %vm2410_vm2, %v2409_v63, %v2392_v59 }
 0x827   :  { %v2418_v5 = vsel %vm211_vm4, %v2411_v20, %v2417_v23 }
 0x828   :  { %2420 = vst [vmem:[%s3951_s4] sm:$0xf] %v2418_v5 }
 0x829   :  { %2425 = vsyncpa [#allocation5], 1 }
 0x82a   :  { %2426 = vsyncpa [#allocation7], 1 }

</bundles_post_ra>
